<compile_context>
chip_gen: v7x
topology: tpu7x:2x2x1
jax: 0.10.0
libtpu: 0.0.40
codegen_flags: <defaults>
</compile_context>

<pallas_src>
import jax
import jax.numpy as jnp
from jax import lax
from jax.experimental import pallas as pl
from jax.experimental.pallas import tpu as pltpu


# ----------------------------------------------------------------------------
# Pallas kernel
# ----------------------------------------------------------------------------
def make_node_kernel(T: int, A: int, matmul_dtype):
    """Kernel per batch block: z0 = initial(x0); serial affine recurrence
    z_{t+1} = z_t @ Q[b] + v[b]; packed act/ttne/rrt heads (2 GEMMs)."""

    def kernel(x0_ref, q_ref, v_ref,
               wi_ref, bi_ref,
               w1p_ref, b1p_ref, w2p_ref, b2p_ref,
               act_ref, ttne_ref, rrt_ref):
        f32 = jnp.float32
        BB = x0_ref.shape[0]                  # batch rows in this block
        H = q_ref.shape[1]

        # ---- z0 = initial(X.evaluate(0)) ---------------------------------
        z0 = jnp.dot(x0_ref[...], wi_ref[...],
                     preferred_element_type=f32) + bi_ref[...]          # (BB, H)

        # ---- serial integration over output intervals --------------------
        Q = q_ref[...]                        # (BB, H, H)  precomputed propagator
        v = v_ref[...]                        # (BB, H)

        zs = [z0]
        z = z0
        for _ in range(T - 1):                # static unroll; z_t live in registers
            # per-batch mat-vec as VPU broadcast-multiply + sublane reduce
            # (avoids BB pathological 1xHxH MXU batched matmuls per step).
            z = jnp.sum(z[:, :, None] * Q, axis=1) + v
            zs.append(z)

        # t-major stack: row = t*BB + b  (one sublane-direction concat; no
        # per-step masked (BB,1,H) scratch stores, no zs VMEM round trip).
        zstack = jnp.concatenate(zs, axis=0)                             # (T*BB, H)

        # ---- heads (eval branch), packed weights: 2 GEMMs total -----------
        md = matmul_dtype
        h1 = jnp.maximum(
            jnp.dot(zstack.astype(md), w1p_ref[...].astype(md),
                    preferred_element_type=f32) + b1p_ref[...], 0.0)     # (T*BB, 3H)
        out2 = jnp.dot(h1.astype(md), w2p_ref[...].astype(md),
                       preferred_element_type=f32) + b2p_ref[...]        # (T*BB, A+2)

        # act head: argmax over logits (lowest index on ties, same as torch)
        logits = out2[:, :A]
        lane = lax.broadcasted_iota(jnp.int32, logits.shape, 1)
        maxv = jnp.max(logits, axis=-1, keepdims=True)
        act_ref[...] = jnp.min(jnp.where(logits == maxv, lane, A),
                               axis=-1, keepdims=True).astype(jnp.int32)

        # ttne head
        ttne_ref[...] = out2[:, A:A + 1]

        # rrt head acts on z_t[:, 0, :] == z0 == the first BB (t = 0) rows.
        rrt_ref[...] = out2[:BB, A + 1:A + 2]

    return kernel


# ----------------------------------------------------------------------------
# Wrapper-side (XLA) helpers
# ----------------------------------------------------------------------------
def _round_up(x, m):
    return ((x + m - 1) // m) * m


def _affine_rk4_propagator(W, c, dt_out, n_sub):
    """Exact fixed-step-RK4 propagator (Q, v) for dz/dt = z @ W[b] + c[b] over one
    output interval dt_out split into n_sub substeps.  Composition of substeps is
    done by repeated squaring of the affine map (z -> z P + u)."""
    f32 = jnp.float32
    B, H, _ = W.shape
    h = dt_out / n_sub
    I = jnp.eye(H, dtype=f32)[None]

    def bmm(a, b):
        return jnp.einsum('bij,bjk->bik', a, b)

    hW = h * W
    hW2 = bmm(hW, hW)
    hW3 = bmm(hW2, hW)
    M = h * (I + 0.5 * hW + hW2 / 6.0 + hW3 / 24.0)
    P = I + bmm(W, M)                                   # (B, H, H)
    u = jnp.einsum('bh,bhk->bk', c, M)                  # (B, H)

    def compose(m1, m2):                                # apply m1 then m2
        A1, b1 = m1
        A2, b2 = m2
        return bmm(A1, A2), jnp.einsum('bh,bhk->bk', b1, A2) + b2

    acc = (jnp.broadcast_to(I, (B, H, H)), jnp.zeros((B, H), f32))
    base = (P, u)
    n = int(n_sub)
    while n > 0:                                        # binary exponentiation
        if n & 1:
            acc = compose(acc, base)
        n >>= 1
        if n:
            base = compose(base, base)
    return acc


def init_linear(key, fan_in, fan_out):
    """PyTorch nn.Linear default init, stored as (in, out) / (1, out)."""
    kw, kb = jax.random.split(key)
    bound = fan_in ** -0.5
    w = jax.random.uniform(kw, (fan_in, fan_out), jnp.float32, -bound, bound)
    b = jax.random.uniform(kb, (1, fan_out), jnp.float32, -bound, bound)
    return w, b


def make_params(key, input_channels, hidden_dim, num_activities):
    keys = jax.random.split(key, 8)
    p = {}
    p["wi"], p["bi"] = init_linear(keys[0], input_channels, hidden_dim)
    p["wf"], p["bf"] = init_linear(keys[1], hidden_dim, hidden_dim * input_channels)
    p["w1"], p["b1"] = init_linear(keys[2], hidden_dim, hidden_dim)
    p["w2"], p["b2"] = init_linear(keys[3], hidden_dim, num_activities)
    p["w3"], p["b3"] = init_linear(keys[4], hidden_dim, hidden_dim)
    p["w4"], p["b4"] = init_linear(keys[5], hidden_dim, 1)
    p["w5"], p["b5"] = init_linear(keys[6], hidden_dim, hidden_dim)
    p["w6"], p["b6"] = init_linear(keys[7], hidden_dim, 1)
    return p


def node_hermit_inter_forward(data, pad, params, n_sub=8, block_b=None,
                              matmul_dtype=jnp.float32):
    """Eval-mode forward of NODE_hermitInter.

    data: (B, T, C) float32, pad: (B, T) bool.
    Returns (act (B,T) int32, ttne (B,T) f32, rrt (B,) f32).
    """
    f32 = jnp.float32
    B, T, C = data.shape
    H = params["wi"].shape[1]
    A = params["w2"].shape[1]

    # ---- pad-fix: positions j >= valid[b] get row valid[b]-1 (valid==0 -> row T-1),
    # exactly as `data_fix[b, leng:] = data_fix[b, leng - 1]` in the PyTorch forward.
    valid = jnp.sum(jnp.logical_not(pad), axis=1).astype(jnp.int32)       # (B,)
    j = jnp.arange(T, dtype=jnp.int32)
    gather_idx = jnp.where(valid[:, None] > 0,
                           jnp.minimum(j[None, :], valid[:, None] - 1),
                           T - 1)                                         # (B, T)
    data_fix = jnp.take_along_axis(data, gather_idx[:, :, None], axis=1)

    # ---- Hermite cubic (backward differences, torchcde defaults): ts = [0,1] lies
    # inside segment 0, whose derivative is the constant backward difference x1-x0.
    x0 = data_fix[:, 0, :]                                                # (B, C)
    db = (data_fix[:, 1, :] - x0) if T > 1 else jnp.zeros_like(x0)        # (B, C)

    # ---- batch block size: fill MXU rows for real batches, keep 8-row alignment.
    if block_b is None:
        block_b = min(128, max(8, _round_up(B, 8)))
    BB = int(block_b)
    B_pad = _round_up(B, BB)
    G = B_pad // BB
    padn = B_pad - B
    x0p = jnp.pad(x0.astype(f32), ((0, padn), (0, 0)))
    dbp = jnp.pad(db.astype(f32), ((0, padn), (0, 0)))

    # ---- fold the constant control derivative into the CDE weights (XLA side) ----
    # dz/dt[b,h] = sum_k z[b,k] * W_eff[b,k,h] + c_eff[b,h]
    wf3 = params["wf"].reshape(H, H, C)                 # wf[k, h*C + c] -> [k, h, c]
    bf2 = params["bf"].reshape(H, C)                    # bf[h*C + c]    -> [h, c]
    W_eff = jnp.einsum('khc,bc->bkh', wf3, dbp)         # (B_pad, H, H)
    c_eff = jnp.einsum('hc,bc->bh', bf2, dbp)           # (B_pad, H)

    dt_out = 1.0 / max(T - 1, 1)
    Q, v = _affine_rk4_propagator(W_eff, c_eff, dt_out, n_sub)   # (B_pad,H,H),(B_pad,H)

    # ---- pack head weights: layer 1 concat, layer 2 block-diagonal ---------------
    w1p = jnp.concatenate([params["w1"], params["w3"], params["w5"]], axis=1)  # (H,3H)
    b1p = jnp.concatenate([params["b1"], params["b3"], params["b5"]], axis=1)  # (1,3H)
    w2p = jnp.zeros((3 * H, A + 2), f32)
    w2p = w2p.at[0:H, 0:A].set(params["w2"])
    w2p = w2p.at[H:2 * H, A:A + 1].set(params["w4"])
    w2p = w2p.at[2 * H:3 * H, A + 1:A + 2].set(params["w6"])                   # (3H,A+2)
    b2p = jnp.concatenate([params["b2"], params["b4"], params["b6"]], axis=1)  # (1,A+2)

    kernel = make_node_kernel(T, A, matmul_dtype)
    inputs = [x0p, Q, v, params["wi"], params["bi"], w1p, b1p, w2p, b2p]

    in_specs = [
        pl.BlockSpec((BB, C), lambda g: (g, 0)),          # x0
        pl.BlockSpec((BB, H, H), lambda g: (g, 0, 0)),    # Q
        pl.BlockSpec((BB, H), lambda g: (g, 0)),          # v
        pl.BlockSpec((C, H), lambda g: (0, 0)),           # wi
        pl.BlockSpec((1, H), lambda g: (0, 0)),           # bi
        pl.BlockSpec((H, 3 * H), lambda g: (0, 0)),       # w1p
        pl.BlockSpec((1, 3 * H), lambda g: (0, 0)),       # b1p
        pl.BlockSpec((3 * H, A + 2), lambda g: (0, 0)),   # w2p
        pl.BlockSpec((1, A + 2), lambda g: (0, 0)),       # b2p
    ]
    out_specs = (pl.BlockSpec((BB * T, 1), lambda g: (g, 0)),
                 pl.BlockSpec((BB * T, 1), lambda g: (g, 0)),
                 pl.BlockSpec((BB, 1), lambda g: (g, 0)))
    out_shape = (jax.ShapeDtypeStruct((B_pad * T, 1), jnp.int32),
                 jax.ShapeDtypeStruct((B_pad * T, 1), jnp.float32),
                 jax.ShapeDtypeStruct((B_pad, 1), jnp.float32))

    act_col, ttne_col, rrt_col = pl.pallas_call(
        kernel,
        grid=(G,),
        out_shape=out_shape,
        in_specs=in_specs,
        out_specs=out_specs,
        compiler_params=pltpu.CompilerParams(
            dimension_semantics=("parallel",)),           # megacore / v7x 2-TC split
    )(*inputs)

    # kernel rows within a batch block are t-major: global row = g*BB*T + t*BB + b.
    act = act_col.reshape(G, T, BB).transpose(0, 2, 1).reshape(B_pad, T)[:B]
    ttne = ttne_col.reshape(G, T, BB).transpose(0, 2, 1).reshape(B_pad, T)[:B]
    rrt = rrt_col.reshape(B_pad)[:B]
    return act, ttne, rrt


# ----------------------------------------------------------------------------
# Pure-JAX reference (literal fixed-step RK4 with the 3-matmul vector field)
# ----------------------------------------------------------------------------
def node_reference(data, pad, params, n_sub=8):
    B, T, C = data.shape
    H = params["wi"].shape[1]
    valid = jnp.sum(jnp.logical_not(pad), axis=1).astype(jnp.int32)
    j = jnp.arange(T, dtype=jnp.int32)
    gidx = jnp.where(valid[:, None] > 0,
                     jnp.minimum(j[None, :], valid[:, None] - 1), T - 1)
    dfix = jnp.take_along_axis(data, gidx[:, :, None], axis=1)
    x0 = dfix[:, 0]
    db = (dfix[:, 1] - x0) if T > 1 else jnp.zeros_like(x0)

    def f(z):
        out = (z @ params["wf"] + params["bf"]).reshape(B, H, C)
        return jnp.einsum('bhc,bc->bh', out, db)

    z = x0 @ params["wi"] + params["bi"]
    dt = (1.0 / max(T - 1, 1)) / n_sub
    zs = [z]
    for _ in range(T - 1):
        for _ in range(n_sub):
            k1 = f(z)
            k2 = f(z + 0.5 * dt * k1)
            k3 = f(z + 0.5 * dt * k2)
            k4 = f(z + dt * k3)
            z = z + (dt / 6.0) * (k1 + 2.0 * k2 + 2.0 * k3 + k4)
        zs.append(z)
    zt = jnp.stack(zs, axis=1)                                           # (B, T, H)

    relu = lambda a: jnp.maximum(a, 0.0)
    act = jnp.argmax(relu(zt @ params["w1"] + params["b1"]) @ params["w2"]
                     + params["b2"], axis=-1)
    ttne = (relu(zt @ params["w3"] + params["b3"]) @ params["w4"]
            + params["b4"])[..., 0]
    rrt = (relu(zt[:, 0] @ params["w5"] + params["b5"]) @ params["w6"]
           + params["b6"])[:, 0]
    return act, ttne, rrt


if __name__ == "__main__":
    B, T, C = 2, 8, 4       # batch, sequence length, input channels
    H, A = 32, 6            # hidden_dim, num_activities

    key = jax.random.PRNGKey(0)
    k_data, k_params = jax.random.split(key)

    data = jax.random.normal(k_data, (B, T, C), dtype=jnp.float32)
    valid_lens = jnp.array([5, 8], dtype=jnp.int32)
    pad = jnp.arange(T)[None, :] >= valid_lens[:, None]     # (B, T) bool

    params = make_params(k_params, C, H, A)

    act, ttne, rrt = node_hermit_inter_forward(data, pad, params)
    jax.block_until_ready((act, ttne, rrt))

    assert act.shape == (B, T) and ttne.shape == (B, T) and rrt.shape == (B,)
    assert bool(jnp.all(jnp.isfinite(ttne))) and bool(jnp.all(jnp.isfinite(rrt)))

    # correctness check against a literal fixed-step RK4 reference
    act_r, ttne_r, rrt_r = node_reference(data, pad, params)
    assert bool(jnp.array_equal(act, act_r))
    assert bool(jnp.allclose(ttne, ttne_r, rtol=5e-3, atol=5e-3))
    assert bool(jnp.allclose(rrt, rrt_r, rtol=5e-3, atol=5e-3))

    print("KERNEL_OK")
</pallas_src>

<mosaic_0001>
module attributes {stable_mosaic.version = 11 : i64} {
  func.func @kernel(%arg0: i32, %arg1: memref<8x4xf32, #tpu.memory_space<vmem>>, %arg2: memref<8x32x32xf32, #tpu.memory_space<vmem>>, %arg3: memref<8x32xf32, #tpu.memory_space<vmem>>, %arg4: memref<4x32xf32, #tpu.memory_space<vmem>>, %arg5: memref<1x32xf32, #tpu.memory_space<vmem>>, %arg6: memref<32x96xf32, #tpu.memory_space<vmem>>, %arg7: memref<1x96xf32, #tpu.memory_space<vmem>>, %arg8: memref<96x8xf32, #tpu.memory_space<vmem>>, %arg9: memref<1x8xf32, #tpu.memory_space<vmem>>, %arg10: memref<64x1xi32, #tpu.memory_space<vmem>>, %arg11: memref<64x1xf32, #tpu.memory_space<vmem>>, %arg12: memref<8x1xf32, #tpu.memory_space<vmem>>) attributes {dimension_semantics = [#tpu.dimension_semantics<parallel>], iteration_bounds = array<i64: 1>, scalar_prefetch = 0 : i64, scratch_operands = 0 : i64, tpu.core_type = #tpu.core_type<tc>, window_params = [{transform_indices = @transform_0, window_bounds = array<i64: 8, 4>}, {transform_indices = @transform_1, window_bounds = array<i64: 8, 32, 32>}, {transform_indices = @transform_2, window_bounds = array<i64: 8, 32>}, {pipeline_mode = #tpu.pipeline_mode<synchronous>, transform_indices = @transform_3, window_bounds = array<i64: 4, 32>}, {pipeline_mode = #tpu.pipeline_mode<synchronous>, transform_indices = @transform_4, window_bounds = array<i64: 1, 32>}, {pipeline_mode = #tpu.pipeline_mode<synchronous>, transform_indices = @transform_5, window_bounds = array<i64: 32, 96>}, {pipeline_mode = #tpu.pipeline_mode<synchronous>, transform_indices = @transform_6, window_bounds = array<i64: 1, 96>}, {pipeline_mode = #tpu.pipeline_mode<synchronous>, transform_indices = @transform_7, window_bounds = array<i64: 96, 8>}, {pipeline_mode = #tpu.pipeline_mode<synchronous>, transform_indices = @transform_8, window_bounds = array<i64: 1, 8>}, {transform_indices = @transform_9, window_bounds = array<i64: 64, 1>}, {transform_indices = @transform_10, window_bounds = array<i64: 64, 1>}, {transform_indices = @transform_11, window_bounds = array<i64: 8, 1>}]} {
    %c0 = arith.constant 0 : index
    %c0_0 = arith.constant 0 : index
    %0 = vector.load %arg1[%c0, %c0_0] : memref<8x4xf32, #tpu.memory_space<vmem>>, vector<8x4xf32>
    %c0_1 = arith.constant 0 : index
    %c0_2 = arith.constant 0 : index
    %1 = vector.load %arg4[%c0_1, %c0_2] : memref<4x32xf32, #tpu.memory_space<vmem>>, vector<4x32xf32>
    %cst = arith.constant dense<0.000000e+00> : vector<8x32xf32>
    %2 = tpu.matmul %0, %1, %cst {dimension_numbers = #tpu.dot_dimension_numbers<[1], [0], [0], [1], [0, 0, 1, 1], [], []>} : vector<8x4xf32>, vector<4x32xf32>, vector<8x32xf32> -> vector<8x32xf32>
    %c0_3 = arith.constant 0 : index
    %c0_4 = arith.constant 0 : index
    %3 = vector.load %arg5[%c0_3, %c0_4] : memref<1x32xf32, #tpu.memory_space<vmem>>, vector<1x32xf32>
    %4 = vector.broadcast %3 : vector<1x32xf32> to vector<8x32xf32>
    %5 = arith.addf %2, %4 : vector<8x32xf32>
    %c0_5 = arith.constant 0 : index
    %c0_6 = arith.constant 0 : index
    %c0_7 = arith.constant 0 : index
    %6 = vector.load %arg2[%c0_5, %c0_6, %c0_7] : memref<8x32x32xf32, #tpu.memory_space<vmem>>, vector<8x32x32xf32>
    %c0_8 = arith.constant 0 : index
    %c0_9 = arith.constant 0 : index
    %7 = vector.load %arg3[%c0_8, %c0_9] : memref<8x32xf32, #tpu.memory_space<vmem>>, vector<8x32xf32>
    %8 = vector.shape_cast %5 : vector<8x32xf32> to vector<8x32x1xf32>
    %9 = vector.broadcast %8 : vector<8x32x1xf32> to vector<8x32x32xf32>
    %10 = arith.mulf %9, %6 : vector<8x32x32xf32>
    %cst_10 = arith.constant dense<0.000000e+00> : vector<8x32xf32>
    %11 = vector.multi_reduction <add>, %10, %cst_10 [1] : vector<8x32x32xf32> to vector<8x32xf32>
    %12 = arith.addf %11, %7 : vector<8x32xf32>
    %13 = vector.shape_cast %12 : vector<8x32xf32> to vector<8x32x1xf32>
    %14 = vector.broadcast %13 : vector<8x32x1xf32> to vector<8x32x32xf32>
    %15 = arith.mulf %14, %6 : vector<8x32x32xf32>
    %cst_11 = arith.constant dense<0.000000e+00> : vector<8x32xf32>
    %16 = vector.multi_reduction <add>, %15, %cst_11 [1] : vector<8x32x32xf32> to vector<8x32xf32>
    %17 = arith.addf %16, %7 : vector<8x32xf32>
    %18 = vector.shape_cast %17 : vector<8x32xf32> to vector<8x32x1xf32>
    %19 = vector.broadcast %18 : vector<8x32x1xf32> to vector<8x32x32xf32>
    %20 = arith.mulf %19, %6 : vector<8x32x32xf32>
    %cst_12 = arith.constant dense<0.000000e+00> : vector<8x32xf32>
    %21 = vector.multi_reduction <add>, %20, %cst_12 [1] : vector<8x32x32xf32> to vector<8x32xf32>
    %22 = arith.addf %21, %7 : vector<8x32xf32>
    %23 = vector.shape_cast %22 : vector<8x32xf32> to vector<8x32x1xf32>
    %24 = vector.broadcast %23 : vector<8x32x1xf32> to vector<8x32x32xf32>
    %25 = arith.mulf %24, %6 : vector<8x32x32xf32>
    %cst_13 = arith.constant dense<0.000000e+00> : vector<8x32xf32>
    %26 = vector.multi_reduction <add>, %25, %cst_13 [1] : vector<8x32x32xf32> to vector<8x32xf32>
    %27 = arith.addf %26, %7 : vector<8x32xf32>
    %28 = vector.shape_cast %27 : vector<8x32xf32> to vector<8x32x1xf32>
    %29 = vector.broadcast %28 : vector<8x32x1xf32> to vector<8x32x32xf32>
    %30 = arith.mulf %29, %6 : vector<8x32x32xf32>
    %cst_14 = arith.constant dense<0.000000e+00> : vector<8x32xf32>
    %31 = vector.multi_reduction <add>, %30, %cst_14 [1] : vector<8x32x32xf32> to vector<8x32xf32>
    %32 = arith.addf %31, %7 : vector<8x32xf32>
    %33 = vector.shape_cast %32 : vector<8x32xf32> to vector<8x32x1xf32>
    %34 = vector.broadcast %33 : vector<8x32x1xf32> to vector<8x32x32xf32>
    %35 = arith.mulf %34, %6 : vector<8x32x32xf32>
    %cst_15 = arith.constant dense<0.000000e+00> : vector<8x32xf32>
    %36 = vector.multi_reduction <add>, %35, %cst_15 [1] : vector<8x32x32xf32> to vector<8x32xf32>
    %37 = arith.addf %36, %7 : vector<8x32xf32>
    %38 = vector.shape_cast %37 : vector<8x32xf32> to vector<8x32x1xf32>
    %39 = vector.broadcast %38 : vector<8x32x1xf32> to vector<8x32x32xf32>
    %40 = arith.mulf %39, %6 : vector<8x32x32xf32>
    %cst_16 = arith.constant dense<0.000000e+00> : vector<8x32xf32>
    %41 = vector.multi_reduction <add>, %40, %cst_16 [1] : vector<8x32x32xf32> to vector<8x32xf32>
    %42 = arith.addf %41, %7 : vector<8x32xf32>
    %43 = tpu.concatenate %5, %12, %17, %22, %27, %32, %37, %42 in 0 : vector<8x32xf32>, vector<8x32xf32>, vector<8x32xf32>, vector<8x32xf32>, vector<8x32xf32>, vector<8x32xf32>, vector<8x32xf32>, vector<8x32xf32> -> vector<64x32xf32>
    %c0_17 = arith.constant 0 : index
    %c0_18 = arith.constant 0 : index
    %44 = vector.load %arg6[%c0_17, %c0_18] : memref<32x96xf32, #tpu.memory_space<vmem>>, vector<32x96xf32>
    %cst_19 = arith.constant dense<0.000000e+00> : vector<64x96xf32>
    %45 = tpu.matmul %43, %44, %cst_19 {dimension_numbers = #tpu.dot_dimension_numbers<[1], [0], [0], [1], [0, 0, 1, 1], [], []>} : vector<64x32xf32>, vector<32x96xf32>, vector<64x96xf32> -> vector<64x96xf32>
    %c0_20 = arith.constant 0 : index
    %c0_21 = arith.constant 0 : index
    %46 = vector.load %arg7[%c0_20, %c0_21] : memref<1x96xf32, #tpu.memory_space<vmem>>, vector<1x96xf32>
    %47 = vector.broadcast %46 : vector<1x96xf32> to vector<64x96xf32>
    %48 = arith.addf %45, %47 : vector<64x96xf32>
    %cst_22 = arith.constant 0.000000e+00 : f32
    %49 = vector.broadcast %cst_22 : f32 to vector<64x96xf32>
    %50 = arith.maximumf %48, %49 : vector<64x96xf32>
    %c0_23 = arith.constant 0 : index
    %c0_24 = arith.constant 0 : index
    %51 = vector.load %arg8[%c0_23, %c0_24] : memref<96x8xf32, #tpu.memory_space<vmem>>, vector<96x8xf32>
    %cst_25 = arith.constant dense<0.000000e+00> : vector<64x8xf32>
    %52 = tpu.matmul %50, %51, %cst_25 {dimension_numbers = #tpu.dot_dimension_numbers<[1], [0], [0], [1], [0, 0, 1, 1], [], []>} : vector<64x96xf32>, vector<96x8xf32>, vector<64x8xf32> -> vector<64x8xf32>
    %c0_26 = arith.constant 0 : index
    %c0_27 = arith.constant 0 : index
    %53 = vector.load %arg9[%c0_26, %c0_27] : memref<1x8xf32, #tpu.memory_space<vmem>>, vector<1x8xf32>
    %54 = vector.broadcast %53 : vector<1x8xf32> to vector<64x8xf32>
    %55 = arith.addf %52, %54 : vector<64x8xf32>
    %56 = vector.extract_strided_slice %55 {offsets = [0, 0], sizes = [64, 6], strides = [1, 1]} : vector<64x8xf32> to vector<64x6xf32>
    %57 = tpu.iota {dimensions = array<i32: 1>} : vector<64x6xi32>
    %cst_28 = arith.constant dense<0xFF800000> : vector<64xf32>
    %58 = vector.multi_reduction <maximumf>, %56, %cst_28 [1] : vector<64x6xf32> to vector<64xf32>
    %59 = vector.shape_cast %58 : vector<64xf32> to vector<64x1xf32>
    %60 = vector.broadcast %59 : vector<64x1xf32> to vector<64x6xf32>
    %61 = arith.cmpf oeq, %56, %60 : vector<64x6xf32>
    %c6_i32 = arith.constant 6 : i32
    %62 = vector.broadcast %c6_i32 : i32 to vector<64x6xi32>
    %63 = arith.select %61, %57, %62 : vector<64x6xi1>, vector<64x6xi32>
    %cst_29 = arith.constant dense<2147483647> : vector<64xi32>
    %64 = vector.multi_reduction <minsi>, %63, %cst_29 [1] : vector<64x6xi32> to vector<64xi32>
    %65 = vector.shape_cast %64 : vector<64xi32> to vector<64x1xi32>
    %c0_30 = arith.constant 0 : index
    %c0_31 = arith.constant 0 : index
    %66 = vector.load %arg10[%c0_30, %c0_31] : memref<64x1xi32, #tpu.memory_space<vmem>>, vector<64x1xi32>
    tpu.vector_store %arg10[%c0_30, %c0_31], %65 {strides = array<i32>} : memref<64x1xi32, #tpu.memory_space<vmem>>, vector<64x1xi32>,
    %67 = vector.extract_strided_slice %55 {offsets = [0, 6], sizes = [64, 1], strides = [1, 1]} : vector<64x8xf32> to vector<64x1xf32>
    %c0_32 = arith.constant 0 : index
    %c0_33 = arith.constant 0 : index
    %68 = vector.load %arg11[%c0_32, %c0_33] : memref<64x1xf32, #tpu.memory_space<vmem>>, vector<64x1xf32>
    tpu.vector_store %arg11[%c0_32, %c0_33], %67 {strides = array<i32>} : memref<64x1xf32, #tpu.memory_space<vmem>>, vector<64x1xf32>,
    %69 = vector.extract_strided_slice %55 {offsets = [0, 7], sizes = [8, 1], strides = [1, 1]} : vector<64x8xf32> to vector<8x1xf32>
    %c0_34 = arith.constant 0 : index
    %c0_35 = arith.constant 0 : index
    %70 = vector.load %arg12[%c0_34, %c0_35] : memref<8x1xf32, #tpu.memory_space<vmem>>, vector<8x1xf32>
    tpu.vector_store %arg12[%c0_34, %c0_35], %69 {strides = array<i32>} : memref<8x1xf32, #tpu.memory_space<vmem>>, vector<8x1xf32>,
    return
  }
  func.func @transform_0(%arg0: i32) -> (i32, i32) {
    %c0_i32 = arith.constant 0 : i32
    %c0_i32_0 = arith.constant 0 : i32
    return %arg0, %c0_i32 : i32, i32
  }
  func.func @transform_1(%arg0: i32) -> (i32, i32, i32) {
    %c0_i32 = arith.constant 0 : i32
    %c0_i32_0 = arith.constant 0 : i32
    %c0_i32_1 = arith.constant 0 : i32
    return %arg0, %c0_i32, %c0_i32_0 : i32, i32, i32
  }
  func.func @transform_2(%arg0: i32) -> (i32, i32) {
    %c0_i32 = arith.constant 0 : i32
    %c0_i32_0 = arith.constant 0 : i32
    return %arg0, %c0_i32 : i32, i32
  }
  func.func @transform_3(%arg0: i32) -> (i32, i32) {
    %c0_i32 = arith.constant 0 : i32
    %c0_i32_0 = arith.constant 0 : i32
    %c0_i32_1 = arith.constant 0 : i32
    return %c0_i32, %c0_i32_0 : i32, i32
  }
  func.func @transform_4(%arg0: i32) -> (i32, i32) {
    %c0_i32 = arith.constant 0 : i32
    %c0_i32_0 = arith.constant 0 : i32
    %c0_i32_1 = arith.constant 0 : i32
    return %c0_i32, %c0_i32_0 : i32, i32
  }
  func.func @transform_5(%arg0: i32) -> (i32, i32) {
    %c0_i32 = arith.constant 0 : i32
    %c0_i32_0 = arith.constant 0 : i32
    %c0_i32_1 = arith.constant 0 : i32
    return %c0_i32, %c0_i32_0 : i32, i32
  }
  func.func @transform_6(%arg0: i32) -> (i32, i32) {
    %c0_i32 = arith.constant 0 : i32
    %c0_i32_0 = arith.constant 0 : i32
    %c0_i32_1 = arith.constant 0 : i32
    return %c0_i32, %c0_i32_0 : i32, i32
  }
  func.func @transform_7(%arg0: i32) -> (i32, i32) {
    %c0_i32 = arith.constant 0 : i32
    %c0_i32_0 = arith.constant 0 : i32
    %c0_i32_1 = arith.constant 0 : i32
    return %c0_i32, %c0_i32_0 : i32, i32
  }
  func.func @transform_8(%arg0: i32) -> (i32, i32) {
    %c0_i32 = arith.constant 0 : i32
    %c0_i32_0 = arith.constant 0 : i32
    %c0_i32_1 = arith.constant 0 : i32
    return %c0_i32, %c0_i32_0 : i32, i32
  }
  func.func @transform_9(%arg0: i32) -> (i32, i32) {
    %c0_i32 = arith.constant 0 : i32
    %c0_i32_0 = arith.constant 0 : i32
    return %arg0, %c0_i32 : i32, i32
  }
  func.func @transform_10(%arg0: i32) -> (i32, i32) {
    %c0_i32 = arith.constant 0 : i32
    %c0_i32_0 = arith.constant 0 : i32
    return %arg0, %c0_i32 : i32, i32
  }
  func.func @transform_11(%arg0: i32) -> (i32, i32) {
    %c0_i32 = arith.constant 0 : i32
    %c0_i32_0 = arith.constant 0 : i32
    return %arg0, %c0_i32 : i32, i32
  }
}

</mosaic_0001>

<bundles_post_ra>
// kernel: tpu_custom_call.1
= control target key start
LH: loop header
LB: loop body
LE: loop exit
PB: predicated region body
PF: predicated region fallthrough
CT: control target
= control target key end

     0   :  { %17 = vsyncpa [#allocation3], 0  ;;  %s3196_s17 = smov [#allocation2]   ;;  %s4571_s0 = inlined_call_operand.vmem [shape: f32[8,4], index: 0, kind: input, shape index: {}]   ;;  %s4572_s1 = inlined_call_operand.hbm [shape: f32[8,32,32], index: 1, kind: input, shape index: {}]   ;;  %s4573_s2 = inlined_call_operand.vmem [shape: f32[8,32], index: 2, kind: input, shape index: {}]   ;;  %s4574_s3 = inlined_call_operand.vmem [shape: f32[4,32], index: 3, kind: input, shape index: {}]   ;;  %s4575_s4 = inlined_call_operand.vmem [shape: f32[1,32], index: 4, kind: input, shape index: {}]   ;;  %s4576_s5 = inlined_call_operand.vmem [shape: f32[32,96], index: 5, kind: input, shape index: {}]   ;;  %s4577_s6 = inlined_call_operand.vmem [shape: f32[1,96], index: 6, kind: input, shape index: {}]   ;;  %s4578_s7 = inlined_call_operand.vmem [shape: f32[96,8], index: 7, kind: input, shape index: {}]   ;;  %s4579_s8 = inlined_call_operand.vmem [shape: f32[1,8], index: 8, kind: input, shape index: {}]   ;;  %s4580_s9 = inlined_call_operand.vmem [shape: s32[64,1], index: 9, kind: output, shape index: {0}]   ;;  %s4581_s10 = inlined_call_operand.vmem [shape: f32[64,1], index: 10, kind: output, shape index: {1}]   ;;  %s4582_s11 = inlined_call_operand.vmem [shape: f32[8,1], index: 11, kind: output, shape index: {2}]  }
   0x1   :  { %s25_s18 = sshll.u32 %s3196_s17, 4  ;;  %s3172_s21 = scalar_lea.hbm %s4572_s1, 4096  ;;  %s26_s18 = int_to_ptr.vmem [resolvable:$true] %s25_s18 }
   0x2   :  { %p3173_p0 = scmp.ne.s32.totalorder %s4572_s1, %s3172_s21  ;;  %p3176_p1 = scmp.lt.u32.totalorder %s3172_s21, %s4572_s1 }
   0x4   :  { %p3178_p2 = pnand %p3176_p1, %p3173_p0 }
   0x6   :  { %3181 = shalt.err (!%p3178_p2)
}
   0x7   :  { %s3182_s26 = scalar_lea.vmem %s26_s18, 4096  ;;  %p3187_p4 = scmp.lt.s32.totalorder %s26_s18, %s26_s18 }
   0x8   :  { %p3183_p3 = scmp.ne.s32.totalorder %s26_s18, %s3182_s26  ;;  %p3188_p5 = scmp.lt.s32.totalorder %s3182_s26, %s3182_s26 }
   0xa   :  { %p3189_p6 = por %p3188_p5, %p3187_p4 }
   0xc   :  { %p3190_p7 = pnand %p3189_p6, %p3183_p3 }
   0xe   :  { %3193 = shalt.err (!%p3190_p7)
}
   0xf   :  { %s3197_s27 = smov 128   ;;  %s3198_s28 = smov 8  }
  0x10   :  { %31 = dma.hbm_to_vmem [thread:$0]  %s4572_s1, 4096, %s26_s18, [#allocation3], %s3197_s27, %s3197_s27, %s3198_s28  }
  0x11   :  { %3194 = dma.done.wait [#allocation3], 4096  }
  0x12   :  { %3195 = vsyncadd [#allocation3], 4294963200  ;;  %v3199_v0 = vmov 0.0   ;;  %vm3200_vm0 = vmmov 0   ;;  %vm62_vm1 = vcmask 1043456   ;;  %vm58_vm2 = vcmask 31744  }
  0x13   :  { %2993 = vmatprep.subr.mxu0 %v3199_v0  ;;  %2995 = vmatprep.mubr.msk.f32.mxu0 %vm3200_vm0, %v3199_v0  ;;  %v50_v1 = vld [vmem:[%s4574_s3] sm:$0xf]  ;;  %v4583_v3 = vlaneseq  ;;  %vm353_vm3 = vcmask 261120   ;;  %v2420_v26 = vld [vmem:[%s4576_s5 + $0x8] sm:$0xff]  ;;  %v2421_v28 = vld [vmem:[%s4576_s5 + $0x10] sm:$0xff]  ;;  %vm2267_vm4 = vcmask 1041409  }
  0x14   :  { %v49_v2 = vld [vmem:[%s4571_s0] sm:$0xff]  ;;  %2994 = vmatpush3.msk.msra.mxu0 %vm62_vm1, %v50_v1  ;;  %v2422_v29 = vld [vmem:[%s4576_s5 + $0x18] sm:$0xff]  ;;  %v3303_v39 = vld [vmem:[#allocation2 + $0x28] sm:$0xff]  ;;  %vm2270_vm5 = vcmask 1042434   ;;  %vm2273_vm6 = vcmask 1043459   ;;  %vm2276_vm7 = vcmask 1044484  }
  0x15   :  { %2996 = vmatmul.mubr.msk.f32.vlgmr.msra.gmra.mrb[0].mxu0 %vm58_vm2, %v49_v2  ;;  %v170_v4 = vshrl.u32 %v4583_v3, 7  ;;  %v2938_v5 = vld [vmem:[%s4575_s4] ss:$0 sm:$0xff]  ;;  %v3058_v30 = vpack.c.bf16 %v2422_v29, %v2421_v28  ;;  %v3307_v41 = vld [vmem:[#allocation2 + $0x30] sm:$0xff]  ;;  %v3317_v50 = vld [vmem:[#allocation2 + $0x48] sm:$0xff]  ;;  %vm2279_vm8 = vcmask 1045509  }
  0x16   :  { %v2419_v25 = vld [vmem:[%s4576_s5] sm:$0xff]  ;;  %v3319_v51 = vld [vmem:[#allocation2 + $0x38] sm:$0xff]  ;;  %v3325_v56 = vld [vmem:[#allocation2 + $0x50] sm:$0xff]  ;;  %vm2282_vm9 = vcmask 1046534   ;;  %vm2285_vm10 = vcmask 1047559   ;;  %vm2579_vm11 = vcmask 785408  }
  0x17   :  { %v209_v6 = vsub.s32 2, %v170_v4  ;;  %v190_v7 = vsub.s32 1, %v170_v4  ;;  %v3286_v13 = vsub.s32 0, %v170_v4  ;;  %v228_v15 = vsub.s32 3, %v170_v4  ;;  %v3305_v40 = vld [vmem:[#allocation2 + $0x20] sm:$0xff]  ;;  %v3359_v29 = vld [vmem:[#allocation2 + $0x70] sm:$0xff] }
  0x18   :  { %v247_v17 = vsub.s32 4, %v170_v4  ;;  %v266_v19 = vsub.s32 5, %v170_v4  ;;  %v285_v21 = vsub.s32 6, %v170_v4  ;;  %v304_v23 = vsub.s32 7, %v170_v4  ;;  %v3323_v54 = vld [vmem:[#allocation2 + $0x40] sm:$0xff]  ;;  %s3201_s14 = smov 122  }
  0x19   :  { %v3054_v27 = vpack.c.bf16 %v2420_v26, %v2419_v25  ;;  %v3355_v26 = vld [vmem:[%s4573_s2] sm:$0xff]  ;;  %vm2711_vm12 = vcmask 48128   ;;  %s3202_s30 = smov 121  }
  0x1b   :  { %3055 = vmatprep.subr.bf16.mxu1 %v3054_v27 }
  0x1c   :  { %3057 = vmatpush3.bf16.msra.mxu1 %v3054_v27  ;;  %v3357_v27 = vld [vmem:[#allocation2 + $0x60] sm:$0xff] }
  0x1d   :  { %3059 = vmatprep.subr.bf16.mxu1 %v3058_v30 }
  0x20   :  { %3061 = vmatpush3.bf16.msra.mxu1 %v3058_v30 }
  0xe8   :  { %v132_v8 = vpop.f32.mrb[0].mxu0 }
  0xe9   :  { %v133_v9 = vadd.f32 %v2938_v5, %v132_v8  ;;  %v2997_v10 = vpop.f32.mrb[1].mxu0 }
  0xeb   :  { %3006 = vmatprep.mubr.msk.f32.mxu1 %vm353_vm3, %v133_v9  ;;  %v210_v11 = vrot.slane %v133_v9, %v209_v6  ;;  %v191_v12 = vrot.slane %v133_v9, %v190_v7  ;;  %v172_v14 = vrot.slane %v133_v9, %v3286_v13  ;;  %v229_v16 = vrot.slane %v133_v9, %v228_v15  ;;  %v3335_v6 = vld [vmem:[#allocation2 + $0x8] sm:$0xff]  ;;  %v3337_v7 = vld [vmem:[#allocation2] sm:$0xff]  ;;  %v3343_v15 = vld [vmem:[#allocation2 + $0x10] sm:$0xff] }
  0xec   :  { %v248_v18 = vrot.slane %v133_v9, %v247_v17  ;;  %v267_v20 = vrot.slane %v133_v9, %v266_v19  ;;  %v286_v22 = vrot.slane %v133_v9, %v285_v21  ;;  %v305_v24 = vrot.slane %v133_v9, %v304_v23  ;;  %v3339_v9 = vld [vmem:[#allocation2 + $0x58] sm:$0xff] }
  0xed   :  { %212 = vbcast.lane.b32.xlu1 %v210_v11, 256  ;;  %193 = vbcast.lane.b32.xlu0 %v191_v12, 256 }
  0xf1   :  { %216 = vbcast.lane.b32.xlu1 %v210_v11, 264  ;;  %197 = vbcast.lane.b32.xlu0 %v191_v12, 264 }
  0xf5   :  { %178 = vbcast.lane.b32.xlu1 %v172_v14, 264  ;;  %174 = vbcast.lane.b32.xlu0 %v172_v14, 256 }
  0xf9   :  { %231 = vbcast.lane.b32.xlu1 %v229_v16, 256  ;;  %201 = vbcast.lane.b32.xlu0 %v191_v12, 272 }
  0xfd   :  { %220 = vbcast.lane.b32.xlu1 %v210_v11, 272  ;;  %235 = vbcast.lane.b32.xlu0 %v229_v16, 264 }
 0x101   :  { %254 = vbcast.lane.b32.xlu1 %v248_v18, 264  ;;  %250 = vbcast.lane.b32.xlu0 %v248_v18, 256 }
 0x105   :  { %205 = vbcast.lane.b32.xlu1 %v191_v12, 280  ;;  %182 = vbcast.lane.b32.xlu0 %v172_v14, 272 }
 0x109   :  { %269 = vbcast.lane.b32.xlu1 %v267_v20, 256  ;;  %239 = vbcast.lane.b32.xlu0 %v229_v16, 272 }
 0x10d   :  { %224 = vbcast.lane.b32.xlu1 %v210_v11, 280  ;;  %273 = vbcast.lane.b32.xlu0 %v267_v20, 264 }
 0x111   :  { %288 = vbcast.lane.b32.xlu1 %v286_v22, 256  ;;  %258 = vbcast.lane.b32.xlu0 %v248_v18, 272 }
 0x115   :  { %186 = vbcast.lane.b32.xlu1 %v172_v14, 280  ;;  %292 = vbcast.lane.b32.xlu0 %v286_v22, 264 }
 0x119   :  { %277 = vbcast.lane.b32.xlu1 %v267_v20, 272  ;;  %243 = vbcast.lane.b32.xlu0 %v229_v16, 280 }
 0x11d   :  { %311 = vbcast.lane.b32.xlu1 %v305_v24, 264  ;;  %307 = vbcast.lane.b32.xlu0 %v305_v24, 256 }
 0x121   :  { %296 = vbcast.lane.b32.xlu1 %v286_v22, 272  ;;  %262 = vbcast.lane.b32.xlu0 %v248_v18, 280 }
 0x125   :  { %315 = vbcast.lane.b32.xlu1 %v305_v24, 272  ;;  %281 = vbcast.lane.b32.xlu0 %v267_v20, 280 }
 0x129   :  { %319 = vbcast.lane.b32.xlu1 %v305_v24, 280  ;;  %300 = vbcast.lane.b32.xlu0 %v286_v22, 280  ;;  %v3348_v22 = vld [vmem:[#allocation2 + $0x68] sm:$0xff] }
 0x15f   :  { %v213_v31 = vpop.permute.xlu1 %212  ;;  %v194_v32 = vpop.permute.xlu0 %193 }
 0x160   :  { %v325_v45 = vmul.f32 %v194_v32, %v3305_v40  ;;  %v329_v62 = vmul.f32 %v213_v31, %v3323_v54 }
 0x162   :  { %v367_v52 = vsel %vm353_vm3, %v325_v45, 0.0  ;;  %v380_v10 = vsel %vm353_vm3, %v329_v62, 0.0 }
 0x163   :  { %v217_v33 = vpop.permute.xlu1 %216  ;;  %v198_v34 = vpop.permute.xlu0 %197 }
 0x164   :  { %v326_v44 = vmul.f32 %v198_v34, %v3303_v39  ;;  %v330_v59 = vmul.f32 %v217_v33, %v3317_v50 }
 0x166   :  { %v368_v49 = vsel %vm353_vm3, %v326_v44, 0.0  ;;  %v381_v5 = vsel %vm353_vm3, %v330_v59, 0.0  ;;  %v3369_v44 = vrot.slane %v3355_v26, 1 }
 0x167   :  { %v179_v35 = vpop.permute.xlu1 %178  ;;  %v175_v36 = vpop.permute.xlu0 %174  ;;  %v369_v55 = vadd.f32 %v368_v49, %v367_v52  ;;  %v382_v12 = vadd.f32 %v381_v5, %v380_v10 }
 0x168   :  { %v322_v18 = vmul.f32 %v179_v35, %v3335_v6  ;;  %v321_v19 = vmul.f32 %v175_v36, %v3337_v7  ;;  %4619 = vst [vmem:[#allocation5_spill] sm:$0xff] %v3369_v44 }
 0x16a   :  { %v355_v33 = vsel %vm353_vm3, %v322_v18, 0.0  ;;  %v354_v34 = vsel %vm353_vm3, %v321_v19, 0.0 }
 0x16b   :  { %v3301_v37 = vpop.permute.xlu1 %231  ;;  %v202_v38 = vpop.permute.xlu0 %201 }
 0x16c   :  { %v327_v46 = vmul.f32 %v202_v38, %v3307_v41  ;;  %v333_v45 = vmul.f32 %v3301_v37, %v3357_v27 }
 0x16e   :  { %v370_v53 = vsel %vm353_vm3, %v327_v46, 0.0  ;;  %v3373_v46 = vld [vmem:[#allocation2 + $0x88] sm:$0xff]  ;;  %v393_v5 = vsel %vm353_vm3, %v333_v45, 0.0 }
 0x16f   :  { %v221_v42 = vpop.permute.xlu1 %220  ;;  %v236_v43 = vpop.permute.xlu0 %235  ;;  %v371_v61 = vadd.f32 %v370_v53, %v369_v55  ;;  %v356_v53 = vadd.f32 %v355_v33, %v354_v34  ;;  %v3377_v55 = vld [vmem:[#allocation2 + $0x80] sm:$0xff]  ;;  %v3409_v34 = vld [vmem:[#allocation2 + $0xb0] sm:$0xff] }
 0x170   :  { %v331_v63 = vmul.f32 %v221_v42, %v3325_v56  ;;  %v334_v35 = vmul.f32 %v236_v43, %v3348_v22  ;;  %v3366_v42 = vld [vmem:[#allocation2 + $0x18] sm:$0xff] }
 0x172   :  { %v383_v11 = vsel %vm353_vm3, %v331_v63, 0.0 }
 0x173   :  { %v3312_v47 = vpop.permute.xlu1 %254  ;;  %v3314_v48 = vpop.permute.xlu0 %250  ;;  %v384_v21 = vadd.f32 %v383_v11, %v382_v12 }
 0x174   :  { %v338_v37 = vmul.f32 %v3312_v47, %v3373_v46  ;;  %v3395_v47 = vld [vmem:[#allocation2 + $0xa0] sm:$0xff] }
 0x177   :  { %v206_v57 = vpop.permute.xlu1 %205  ;;  %v183_v58 = vpop.permute.xlu0 %182 }
 0x178   :  { %v328_v60 = vmul.f32 %v206_v57, %v3319_v51  ;;  %v323_v24 = vmul.f32 %v183_v58, %v3343_v15 }
 0x17a   :  { %v372_v0 = vsel %vm353_vm3, %v328_v60, 0.0  ;;  %v357_v49 = vsel %vm353_vm3, %v323_v24, 0.0  ;;  %v394_v60 = vsel %vm353_vm3, %v334_v35, 0.0  ;;  %v3406_v24 = vrot.slane %v3355_v26, 2 }
 0x17b   :  { %v373_v1 = vadd.f32 %v372_v0, %v371_v61  ;;  %v3332_v2 = vpop.permute.xlu1 %269  ;;  %v240_v4 = vpop.permute.xlu0 %239  ;;  %v358_v62 = vadd.f32 %v357_v49, %v356_v53  ;;  %v3383_v0 = vld [vmem:[#allocation2 + $0xa8] sm:$0xff]  ;;  %v395_v12 = vadd.f32 %v394_v60, %v393_v5  ;;  %v3418_v49 = vld [vmem:[#allocation2 + $0xc0] sm:$0xff]  ;;  %v3428_v5 = vld [vmem:[#allocation2 + $0x98] sm:$0xff] }
 0x17c   :  { %v335_v52 = vmul.f32 %v240_v4, %v3359_v29  ;;  %4620 = vst [vmem:[#allocation6_spill] sm:$0xff] %v3406_v24  ;;  %v3420_v53 = vld [vmem:[#allocation2 + $0xc8] sm:$0xff]  ;;  %4621 = vst [vmem:[#allocation7_spill] sm:$0xff] %v3428_v5 }
 0x17d   :  { %v374_v8 = vrot.slane %v373_v1, 4 }
 0x17e   :  { %v396_v10 = vsel %vm353_vm3, %v335_v52, 0.0 }
 0x17f   :  { %v375_v14 = vadd.f32 %v374_v8, %v373_v1  ;;  %v225_v16 = vpop.permute.xlu1 %224  ;;  %v274_v17 = vpop.permute.xlu0 %273  ;;  %v3385_v1 = vld [vmem:[#allocation2 + $0x78] sm:$0xff]  ;;  %v337_v8 = vmul.f32 %v3314_v48, %v3377_v55 }
 0x180   :  { %v332_v20 = vmul.f32 %v225_v16, %v3339_v9  ;;  %v3397_v16 = vld [vmem:[#allocation2 + $0x90] sm:$0xff] }
 0x181   :  { %v376_v23 = vrot.slane %v375_v14, 2  ;;  %v406_v35 = vsel %vm353_vm3, %v337_v8, 0.0 }
 0x182   :  { %v385_v25 = vsel %vm353_vm3, %v332_v20, 0.0 }
 0x183   :  { %v377_v28 = vadd.f32 %v376_v23, %v375_v14  ;;  %v386_v30 = vadd.f32 %v385_v25, %v384_v21  ;;  %v3361_v31 = vpop.permute.xlu1 %288  ;;  %v259_v32 = vpop.permute.xlu0 %258  ;;  %v342_v23 = vmul.f32 %v274_v17, %v3383_v0  ;;  %v407_v25 = vsel %vm353_vm3, %v338_v37, 0.0 }
 0x184   :  { %v341_v17 = vmul.f32 %v3332_v2, %v3395_v47  ;;  %v408_v37 = vadd.f32 %v407_v25, %v406_v35 }
 0x185   :  { %v378_v36 = vrot.slane %v377_v28, 1  ;;  %v387_v38 = vrot.slane %v386_v30, 4  ;;  %v420_v60 = vsel %vm353_vm3, %v342_v23, 0.0 }
 0x187   :  { %v379_v43 = vadd.f32 %v378_v36, %v377_v28  ;;  %v388_v57 = vadd.f32 %v387_v38, %v386_v30  ;;  %v187_v58 = vpop.permute.xlu1 %186  ;;  %v293_v59 = vpop.permute.xlu0 %292  ;;  %v397_v28 = vadd.f32 %v396_v10, %v395_v12  ;;  %v339_v36 = vmul.f32 %v259_v32, %v3397_v16  ;;  %v3426_v32 = vld [vmem:[#allocation2 + $0xe0] sm:$0xff] }
 0x188   :  { %v324_v61 = vmul.f32 %v187_v58, %v3366_v42  ;;  %v419_v10 = vsel %vm353_vm3, %v341_v17, 0.0 }
 0x189   :  { %v389_v63 = vrot.slane %v388_v57, 2  ;;  %v3388_v4 = vadd.f32 %v3369_v44, %v379_v43  ;;  %v409_v12 = vsel %vm353_vm3, %v339_v36, 0.0 }
 0x18a   :  { %v359_v11 = vsel %vm353_vm3, %v324_v61, 0.0 }
 0x18b   :  { %v390_v14 = vadd.f32 %v389_v63, %v388_v57  ;;  %v360_v18 = vadd.f32 %v359_v11, %v358_v62  ;;  %v278_v19 = vpop.permute.xlu1 %277  ;;  %v244_v20 = vpop.permute.xlu0 %243  ;;  %v3401_v21 = vrot.slane %v3388_v4, %v3286_v13  ;;  %v3424_v63 = vld [vmem:[#allocation2 + $0xe8] sm:$0xff]  ;;  %v345_v11 = vmul.f32 %v3361_v31, %v3418_v49 }
 0x18c   :  { %v336_v48 = vmul.f32 %v244_v20, %v3385_v1  ;;  %v343_v61 = vmul.f32 %v278_v19, %v3409_v34  ;;  %v421_v19 = vadd.f32 %v420_v60, %v419_v10  ;;  %v3459_v60 = vrot.slane %v3355_v26, 3 }
 0x18d   :  { %v391_v30 = vrot.slane %v390_v14, 1  ;;  %v361_v33 = vrot.slane %v360_v18, 4  ;;  %510 = vbcast.lane.b32.xlu1 %v3401_v21, 264  ;;  %506 = vbcast.lane.b32.xlu0 %v3401_v21, 256 }
 0x18e   :  { %v398_v38 = vsel %vm353_vm3, %v336_v48, 0.0  ;;  %4625 = vst [vmem:[#allocation11_spill] sm:$0xff] %v3459_v60 }
 0x18f   :  { %v392_v45 = vadd.f32 %v391_v30, %v390_v14  ;;  %v362_v52 = vadd.f32 %v361_v33, %v360_v18  ;;  %v399_v43 = vadd.f32 %v398_v38, %v397_v28  ;;  %v312_v57 = vpop.permute.xlu1 %311  ;;  %v308_v58 = vpop.permute.xlu0 %307  ;;  %v346_v14 = vmul.f32 %v293_v59, %v3420_v53  ;;  %v3438_v18 = vld [vmem:[#allocation2 + $0xd0] sm:$0xff] }
 0x190   :  { %4622 = vst [vmem:[#allocation8_spill] sm:$0xff] %v3438_v18  ;;  %v422_v30 = vsel %vm353_vm3, %v343_v61, 0.0  ;;  %v350_v33 = vmul.f32 %v312_v57, %v3424_v63  ;;  %v349_v31 = vmul.f32 %v308_v58, %v3426_v32  ;;  %v410_v59 = vadd.f32 %v409_v12, %v408_v37 }
 0x191   :  { %v363_v62 = vrot.slane %v362_v52, 2  ;;  %v400_v2 = vrot.slane %v399_v43, 4  ;;  %v3431_v8 = vadd.f32 %v3406_v24, %v392_v45  ;;  %v3451_v45 = vld [vmem:[#allocation2 + $0xf0] sm:$0xff]  ;;  %v433_v57 = vsel %vm353_vm3, %v346_v14, 0.0 }
 0x192   :  { %4623 = vst [vmem:[#allocation9_spill] sm:$0xff] %v3451_v45  ;;  %v423_v37 = vadd.f32 %v422_v30, %v421_v19 }
 0x193   :  { %v364_v20 = vadd.f32 %v363_v62, %v362_v52  ;;  %v401_v23 = vadd.f32 %v400_v2, %v399_v43  ;;  %v297_v48 = vpop.permute.xlu1 %296  ;;  %v263_v25 = vpop.permute.xlu0 %262  ;;  %v3442_v28 = vrot.slane %v3431_v8, %v3286_v13  ;;  %v3453_v52 = vld [vmem:[#allocation2 + $0xb8] sm:$0xff]  ;;  %v432_v43 = vsel %vm353_vm3, %v345_v11, 0.0 }
 0x194   :  { %v340_v35 = vmul.f32 %v263_v25, %v3428_v5  ;;  %v347_v38 = vmul.f32 %v297_v48, %v3438_v18  ;;  %4624 = vst [vmem:[#allocation10_spill] sm:$0xff] %v3453_v52  ;;  %v446_v48 = vsel %vm353_vm3, %v350_v33, 0.0  ;;  %v445_v25 = vsel %vm353_vm3, %v349_v31, 0.0  ;;  %v3466_v5 = vld [vmem:[#allocation2 + $0xf8] sm:$0xff] }
 0x195   :  { %v365_v17 = vrot.slane %v364_v20, 1  ;;  %v402_v36 = vrot.slane %v401_v23, 2  ;;  %529 = vbcast.lane.b32.xlu1 %v3442_v28, 264  ;;  %525 = vbcast.lane.b32.xlu0 %v3442_v28, 256 }
 0x196   :  { %v411_v58 = vsel %vm353_vm3, %v340_v35, 0.0  ;;  %v435_v35 = vsel %vm353_vm3, %v347_v38, 0.0 }
 0x197   :  { %v366_v61 = vadd.f32 %v365_v17, %v364_v20  ;;  %v403_v62 = vadd.f32 %v402_v36, %v401_v23  ;;  %v412_v2 = vadd.f32 %v411_v58, %v410_v59  ;;  %v316_v10 = vpop.permute.xlu1 %315  ;;  %v282_v12 = vpop.permute.xlu0 %281  ;;  %v3468_v20 = vld [vmem:[#allocation2 + $0xd8] sm:$0xff]  ;;  %v434_v23 = vadd.f32 %v433_v57, %v432_v43 }
 0x198   :  { %v351_v3 = vmul.f32 %v316_v10, %v3451_v45  ;;  %v344_v11 = vmul.f32 %v282_v12, %v3453_v52  ;;  %v447_v59 = vadd.f32 %v446_v48, %v445_v25 }
 0x199   :  { %v404_v14 = vrot.slane %v403_v62, 1  ;;  %v413_v18 = vrot.slane %v412_v2, 4  ;;  %v474_v19 = vadd.f32 %v366_v61, %v3355_v26  ;;  %v436_v12 = vadd.f32 %v435_v35, %v434_v23 }
 0x19a   :  { %v448_v30 = vsel %vm353_vm3, %v351_v3, 0.0  ;;  %v424_v33 = vsel %vm353_vm3, %v344_v11, 0.0 }
 0x19b   :  { %v405_v31 = vadd.f32 %v404_v14, %v403_v62  ;;  %v414_v17 = vadd.f32 %v413_v18, %v412_v2  ;;  %v425_v36 = vadd.f32 %v424_v33, %v423_v37  ;;  %v320_v58 = vpop.permute.xlu1 %319  ;;  %v301_v10 = vpop.permute.xlu0 %300  ;;  %v3476_v45 = vrot.slane %v474_v19, %v3286_v13 }
 0x19c   :  { %v352_v38 = vmul.f32 %v320_v58, %v3466_v5  ;;  %v348_v52 = vmul.f32 %v301_v10, %v3468_v20  ;;  %v449_v43 = vadd.f32 %v448_v30, %v447_v59  ;;  %v3487_v14 = vrot.slane %v3355_v26, 4 }
 0x19d   :  { %v415_v61 = vrot.slane %v414_v17, 2  ;;  %v426_v57 = vrot.slane %v425_v36, 4  ;;  %v477_v3 = vadd.f32 %v3459_v60, %v405_v31  ;;  %491 = vbcast.lane.b32.xlu1 %v3476_v45, 264  ;;  %487 = vbcast.lane.b32.xlu0 %v3476_v45, 256 }
 0x19e   :  { %v450_v62 = vsel %vm353_vm3, %v352_v38, 0.0  ;;  %v437_v18 = vsel %vm353_vm3, %v348_v52, 0.0 }
 0x19f   :  { %v416_v37 = vadd.f32 %v415_v61, %v414_v17  ;;  %v427_v2 = vadd.f32 %v426_v57, %v425_v36  ;;  %v451_v48 = vadd.f32 %v450_v62, %v449_v43  ;;  %v438_v25 = vadd.f32 %v437_v18, %v436_v12 }
 0x1a0   :  { %v3484_v11 = vrot.slane %v477_v3, %v3286_v13  ;;  %v3492_v36 = vrot.slane %v3355_v26, 5  ;;  %v2266_v18 = vrot.slane %v3388_v4, 7 }
 0x1a1   :  { %v417_v35 = vrot.slane %v416_v37, 1  ;;  %v428_v23 = vrot.slane %v427_v2, 2  ;;  %v452_v30 = vrot.slane %v451_v48, 4  ;;  %v439_v33 = vrot.slane %v438_v25, 4  ;;  %514 = vbcast.lane.b32.xlu0 %v3401_v21, 272 }
 0x1a2   :  { %544 = vbcast.lane.b32.xlu1 %v3484_v11, 256 }
 0x1a3   :  { %v418_v52 = vadd.f32 %v417_v35, %v416_v37  ;;  %v429_v31 = vadd.f32 %v428_v23, %v427_v2  ;;  %v453_v59 = vadd.f32 %v452_v30, %v451_v48  ;;  %v440_v17 = vadd.f32 %v439_v33, %v438_v25 }
 0x1a4   :  { %v3500_v37 = vrot.slane %v3355_v26, 6  ;;  %v3504_v35 = vrot.slane %v3355_v26, 7  ;;  %v2268_v23 = vsel %vm2267_vm4, %v2266_v18, %v474_v19  ;;  %v2272_v30 = vrot.slane %v477_v3, 5 }
 0x1a5   :  { %v430_v58 = vrot.slane %v429_v31, 1  ;;  %v454_v10 = vrot.slane %v453_v59, 2  ;;  %v441_v12 = vrot.slane %v440_v17, 2  ;;  %v478_v38 = vadd.f32 %v3487_v14, %v418_v52  ;;  %548 = vbcast.lane.b32.xlu0 %v3484_v11, 264 }
 0x1a6   :  { %533 = vbcast.lane.b32.xlu1 %v3442_v28, 272  ;;  %v2269_v33 = vrot.slane %v3431_v8, 6 }
 0x1a7   :  { %v431_v61 = vadd.f32 %v430_v58, %v429_v31  ;;  %v455_v43 = vadd.f32 %v454_v10, %v453_v59  ;;  %v442_v57 = vadd.f32 %v441_v12, %v440_v17  ;;  %v561_v62 = vrot.slane %v478_v38, %v3286_v13 }
 0x1a8   :  { %v2275_v31 = vrot.slane %v478_v38, 4  ;;  %v2271_v10 = vsel %vm2270_vm5, %v2269_v33, %v2268_v23  ;;  %v2565_v23 = vld [vmem:[%s4578_s7 + $0x28] sm:$0xff] }
 0x1a9   :  { %v456_v2 = vrot.slane %v455_v43, 1  ;;  %v443_v48 = vrot.slane %v442_v57, 1  ;;  %v479_v25 = vadd.f32 %v3492_v36, %v431_v61  ;;  %563 = vbcast.lane.b32.xlu0 %v561_v62, 256  ;;  %v2274_v19 = vsel %vm2273_vm6, %v2272_v30, %v2271_v10  ;;  %v2566_v30 = vld [vmem:[%s4578_s7 + $0x30] sm:$0xff] }
 0x1aa   :  { %567 = vbcast.lane.b32.xlu1 %v561_v62, 264  ;;  %v2277_v8 = vsel %vm2276_vm7, %v2275_v31, %v2274_v19  ;;  %v2568_v31 = vld [vmem:[%s4578_s7 + $0x40] sm:$0xff]  ;;  %v2570_v19 = vld [vmem:[%s4578_s7 + $0x50] sm:$0xff] }
 0x1ab   :  { %v457_v4 = vadd.f32 %v456_v2, %v455_v43  ;;  %v444_v52 = vadd.f32 %v443_v48, %v442_v57  ;;  %v2278_v59 = vrot.slane %v479_v25, 3  ;;  %v580_v38 = vrot.slane %v479_v25, %v3286_v13  ;;  %v2563_v2 = vld [vmem:[%s4578_s7 + $0x18] sm:$0xff]  ;;  %v2564_v25 = vld [vmem:[%s4578_s7 + $0x20] sm:$0xff] }
 0x1ac   :  { %v3070_v33 = vpack.c.bf16 %v2565_v23, %v2564_v25 }
 0x1ad   :  { %v480_v17 = vadd.f32 %v3500_v37, %v444_v52  ;;  %v481_v58 = vadd.f32 %v3504_v35, %v457_v4  ;;  %495 = vbcast.lane.b32.xlu0 %v3476_v45, 272  ;;  %v2280_v61 = vsel %vm2279_vm8, %v2278_v59, %v2277_v8  ;;  %v2567_v4 = vld [vmem:[%s4578_s7 + $0x38] sm:$0xff]  ;;  %v2569_v59 = vld [vmem:[%s4578_s7 + $0x48] sm:$0xff] }
 0x1ae   :  { %518 = vbcast.lane.b32.xlu1 %v3401_v21, 280  ;;  %v3074_v52 = vpack.c.bf16 %v2567_v4, %v2566_v30  ;;  %v2571_v8 = vld [vmem:[%s4578_s7 + $0x58] sm:$0xff] }
 0x1af   :  { %v2281_v3 = vrot.slane %v480_v17, 2  ;;  %v2284_v12 = vrot.slane %v481_v58, 1  ;;  %v599_v57 = vrot.slane %v480_v17, %v3286_v13  ;;  %v618_v18 = vrot.slane %v481_v58, %v3286_v13 }
 0x1b0   :  { %v3078_v17 = vpack.c.bf16 %v2569_v59, %v2568_v31 }
 0x1b1   :  { %v2283_v43 = vsel %vm2282_vm9, %v2281_v3, %v2280_v61  ;;  %552 = vbcast.lane.b32.xlu0 %v3484_v11, 272  ;;  %v3082_v3 = vpack.c.bf16 %v2571_v8, %v2570_v19 }
 0x1b2   :  { %582 = vbcast.lane.b32.xlu1 %v580_v38, 256  ;;  %v2286_v21 = vsel %vm2285_vm10, %v2284_v12, %v2283_v43 }
 0x1b3   :  { %3007 = vmatmul.mubr.msk.f32.vlgmr.msra.gmra.mrb[0].mxu1 %vm353_vm3, %v2286_v21 }
 0x1b5   :  { %586 = vbcast.lane.b32.xlu0 %v580_v38, 264 }
 0x1b6   :  { %537 = vbcast.lane.b32.xlu1 %v3442_v28, 280  ;;  %v2560_v28 = vld [vmem:[%s4578_s7] sm:$0xff] }
 0x1b9   :  { %571 = vbcast.lane.b32.xlu0 %v561_v62, 272 }
 0x1ba   :  { %601 = vbcast.lane.b32.xlu1 %v599_v57, 256 }
 0x1bd   :  { %605 = vbcast.lane.b32.xlu0 %v599_v57, 264 }
 0x1be   :  { %499 = vbcast.lane.b32.xlu1 %v3476_v45, 280  ;;  %v2561_v45 = vld [vmem:[%s4578_s7 + $0x8] sm:$0xff] }
 0x1c1   :  { %556 = vbcast.lane.b32.xlu0 %v3484_v11, 280  ;;  %v3062_v11 = vpack.c.bf16 %v2561_v45, %v2560_v28 }
 0x1c2   :  { %590 = vbcast.lane.b32.xlu1 %v580_v38, 272 }
 0x1c3   :  { %3063 = vmatprep.subr.bf16.mxu0 %v3062_v11  ;;  %3086 = vmatprep.subr.bf16.mxu1 %v3062_v11 }
 0x1c4   :  { %3065 = vmatpush3.bf16.msra.mxu0 %v3062_v11  ;;  %3092 = vmatpush3.bf16.msra.mxu1 %v3062_v11 }
 0x1c5   :  { %620 = vbcast.lane.b32.xlu0 %v618_v18, 256 }
 0x1c6   :  { %624 = vbcast.lane.b32.xlu1 %v618_v18, 264 }
 0x1c9   :  { %575 = vbcast.lane.b32.xlu0 %v561_v62, 280  ;;  %v2562_v62 = vld [vmem:[%s4578_s7 + $0x10] sm:$0xff] }
 0x1ca   :  { %609 = vbcast.lane.b32.xlu1 %v599_v57, 272  ;;  %v3066_v48 = vpack.c.bf16 %v2563_v2, %v2562_v62 }
 0x1cc   :  { %3067 = vmatprep.subr.bf16.mxu0 %v3066_v48  ;;  %3087 = vmatprep.subr.bf16.mxu1 %v3066_v48 }
 0x1cd   :  { %594 = vbcast.lane.b32.xlu0 %v580_v38, 280  ;;  %3069 = vmatpush3.bf16.msra.mxu0 %v3066_v48 }
 0x1ce   :  { %628 = vbcast.lane.b32.xlu1 %v618_v18, 272  ;;  %3093 = vmatpush3.bf16.msra.mxu1 %v3066_v48 }
 0x1cf   :  { %3071 = vmatprep.subr.bf16.mxu0 %v3070_v33  ;;  %3088 = vmatprep.subr.bf16.mxu1 %v3070_v33 }
 0x1d1   :  { %613 = vbcast.lane.b32.xlu0 %v599_v57, 280  ;;  %3073 = vmatpush3.bf16.msra.mxu0 %v3070_v33 }
 0x1d2   :  { %632 = vbcast.lane.b32.xlu1 %v618_v18, 280  ;;  %3094 = vmatpush3.bf16.msra.mxu1 %v3070_v33 }
 0x1d3   :  { %3075 = vmatprep.subr.bf16.mxu0 %v3074_v52  ;;  %3089 = vmatprep.subr.bf16.mxu1 %v3074_v52 }
 0x1d5   :  { %3077 = vmatpush3.bf16.msra.mxu0 %v3074_v52 }
 0x1d6   :  { %3095 = vmatpush3.bf16.msra.mxu1 %v3074_v52  ;;  %3079 = vmatprep.subr.bf16.mxu0 %v3078_v17 }
 0x1d7   :  { %3090 = vmatprep.subr.bf16.mxu1 %v3078_v17 }
 0x1d9   :  { %3081 = vmatpush3.bf16.msra.mxu0 %v3078_v17 }
 0x1da   :  { %3096 = vmatpush3.bf16.msra.mxu1 %v3078_v17  ;;  %3083 = vmatprep.subr.bf16.mxu0 %v3082_v3 }
 0x1db   :  { %3091 = vmatprep.subr.bf16.mxu1 %v3082_v3 }
 0x1dd   :  { %3085 = vmatpush3.bf16.msra.mxu0 %v3082_v3 }
 0x1de   :  { %3097 = vmatpush3.bf16.msra.mxu1 %v3082_v3 }
 0x1ff   :  { %v511_v58 = vpop.permute.xlu1 %510  ;;  %v507_v10 = vpop.permute.xlu0 %506 }
 0x200   :  { %v639_v45 = vmul.f32 %v511_v58, %v3303_v39  ;;  %v638_v11 = vmul.f32 %v507_v10, %v3305_v40 }
 0x202   :  { %v680_v25 = vsel %vm353_vm3, %v639_v45, 0.0  ;;  %v679_v23 = vsel %vm353_vm3, %v638_v11, 0.0 }
 0x203   :  { %v681_v33 = vadd.f32 %v680_v25, %v679_v23 }
 0x207   :  { %v530_v12 = vpop.permute.xlu1 %529  ;;  %v526_v38 = vpop.permute.xlu0 %525 }
 0x208   :  { %v643_v31 = vmul.f32 %v530_v12, %v3317_v50  ;;  %v642_v59 = vmul.f32 %v526_v38, %v3323_v54 }
 0x20a   :  { %v693_v8 = vsel %vm353_vm3, %v643_v31, 0.0  ;;  %v692_v3 = vsel %vm353_vm3, %v642_v59, 0.0 }
 0x20b   :  { %v694_v50 = vadd.f32 %v693_v8, %v692_v3 }
 0x20f   :  { %v492_v61 = vpop.permute.xlu1 %491  ;;  %v488_v43 = vpop.permute.xlu0 %487 }
 0x213   :  { %v515_v57 = vpop.permute.xlu0 %514 }
 0x214   :  { %v545_v21 = vpop.permute.xlu1 %544  ;;  %v640_v62 = vmul.f32 %v515_v57, %v3307_v41 }
 0x216   :  { %v682_v30 = vsel %vm353_vm3, %v640_v62, 0.0 }
 0x217   :  { %v549_v28 = vpop.permute.xlu0 %548  ;;  %v683_v40 = vadd.f32 %v682_v30, %v681_v33 }
 0x218   :  { %v534_v18 = vpop.permute.xlu1 %533 }
 0x219   :  { %v644_v41 = vmul.f32 %v534_v18, %v3325_v56  ;;  %v634_v56 = vmul.f32 %v488_v43, %v3337_v7 }
 0x21b   :  { %v564_v48 = vpop.permute.xlu0 %563  ;;  %v695_v45 = vsel %vm353_vm3, %v644_v41, 0.0 }
 0x21c   :  { %v568_v2 = vpop.permute.xlu1 %567  ;;  %v696_v11 = vadd.f32 %v695_v45, %v694_v50 }
 0x21f   :  { %v496_v52 = vpop.permute.xlu0 %495 }
 0x220   :  { %v519_v4 = vpop.permute.xlu1 %518  ;;  %v636_v25 = vmul.f32 %v496_v52, %v3343_v15 }
 0x221   :  { %v641_v39 = vmul.f32 %v519_v4, %v3319_v51  ;;  %v635_v51 = vmul.f32 %v492_v61, %v3335_v6  ;;  %v647_v6 = vmul.f32 %v549_v28, %v3348_v22 }
 0x222   :  { %v669_v43 = vsel %vm353_vm3, %v636_v25, 0.0 }
 0x223   :  { %v684_v17 = vsel %vm353_vm3, %v641_v39, 0.0  ;;  %v553_v19 = vpop.permute.xlu0 %552  ;;  %v667_v59 = vsel %vm353_vm3, %v635_v51, 0.0  ;;  %v666_v39 = vsel %vm353_vm3, %v634_v56, 0.0  ;;  %v706_v8 = vsel %vm353_vm3, %v647_v6, 0.0 }
 0x224   :  { %v685_v58 = vadd.f32 %v684_v17, %v683_v40  ;;  %v583_v10 = vpop.permute.xlu1 %582  ;;  %v648_v15 = vmul.f32 %v553_v19, %v3359_v29  ;;  %v668_v52 = vadd.f32 %v667_v59, %v666_v39  ;;  %v650_v29 = vmul.f32 %v564_v48, %v3377_v55 }
 0x225   :  { %v654_v25 = vmul.f32 %v583_v10, %v3395_v47 }
 0x226   :  { %v686_v57 = vrot.slane %v685_v58, 4  ;;  %v670_v22 = vadd.f32 %v669_v43, %v668_v52 }
 0x227   :  { %v587_v38 = vpop.permute.xlu0 %586  ;;  %v731_v47 = vsel %vm353_vm3, %v654_v25, 0.0 }
 0x228   :  { %v687_v12 = vadd.f32 %v686_v57, %v685_v58  ;;  %v538_v54 = vpop.permute.xlu1 %537  ;;  %v651_v57 = vmul.f32 %v568_v2, %v3373_v46  ;;  %v655_v2 = vmul.f32 %v587_v38, %v3383_v0 }
 0x229   :  { %v645_v18 = vmul.f32 %v538_v54, %v3339_v9  ;;  %v646_v9 = vmul.f32 %v545_v21, %v3357_v27  ;;  %v708_v21 = vsel %vm353_vm3, %v648_v15, 0.0 }
 0x22a   :  { %v688_v62 = vrot.slane %v687_v12, 2  ;;  %v732_v39 = vsel %vm353_vm3, %v655_v2, 0.0 }
 0x22b   :  { %v697_v23 = vsel %vm353_vm3, %v645_v18, 0.0  ;;  %v572_v31 = vpop.permute.xlu0 %571  ;;  %v705_v27 = vsel %vm353_vm3, %v646_v9, 0.0  ;;  %v719_v18 = vsel %vm353_vm3, %v651_v57, 0.0  ;;  %v733_v15 = vadd.f32 %v732_v39, %v731_v47 }
 0x22c   :  { %v689_v30 = vadd.f32 %v688_v62, %v687_v12  ;;  %v698_v33 = vadd.f32 %v697_v23, %v696_v11  ;;  %v602_v4 = vpop.permute.xlu1 %601  ;;  %v707_v50 = vadd.f32 %v706_v8, %v705_v27  ;;  %v718_v62 = vsel %vm353_vm3, %v650_v29, 0.0 }
 0x22d   :  { %v652_v23 = vmul.f32 %v572_v31, %v3397_v16  ;;  %v658_v16 = vmul.f32 %v602_v4, %v3418_v49  ;;  %v4626_v49 = vld [vmem:[#allocation7_spill] sm:$0xff] }
 0x22e   :  { %v690_v61 = vrot.slane %v689_v30, 1  ;;  %v699_v7 = vrot.slane %v698_v33, 4  ;;  %v709_v55 = vadd.f32 %v708_v21, %v707_v50 }
 0x22f   :  { %v606_v58 = vpop.permute.xlu0 %605  ;;  %v721_v10 = vsel %vm353_vm3, %v652_v23, 0.0  ;;  %v744_v29 = vsel %vm353_vm3, %v658_v16, 0.0 }
 0x230   :  { %v691_v40 = vadd.f32 %v690_v61, %v689_v30  ;;  %v700_v41 = vadd.f32 %v699_v7, %v698_v33  ;;  %v500_v17 = vpop.permute.xlu1 %499  ;;  %v720_v61 = vadd.f32 %v719_v18, %v718_v62  ;;  %v659_v31 = vmul.f32 %v606_v58, %v3420_v53  ;;  %v4627_v58 = vld [vmem:[#allocation8_spill] sm:$0xff] }
 0x231   :  { %v637_v3 = vmul.f32 %v500_v17, %v3366_v42 }
 0x232   :  { %v701_v28 = vrot.slane %v700_v41, 2  ;;  %v3591_v45 = vadd.f32 %v691_v40, %v3369_v44  ;;  %v745_v21 = vsel %vm353_vm3, %v659_v31, 0.0 }
 0x233   :  { %v671_v19 = vsel %vm353_vm3, %v637_v3, 0.0  ;;  %v557_v42 = vpop.permute.xlu0 %556 }
 0x234   :  { %v702_v12 = vadd.f32 %v701_v28, %v700_v41  ;;  %v672_v54 = vadd.f32 %v671_v19, %v670_v22  ;;  %v591_v51 = vpop.permute.xlu1 %590  ;;  %v3599_v46 = vrot.slane %v3591_v45, %v3286_v13  ;;  %v649_v56 = vmul.f32 %v557_v42, %v3385_v1 }
 0x235   :  { %v656_v6 = vmul.f32 %v591_v51, %v3409_v34  ;;  %v722_v22 = vadd.f32 %v721_v10, %v720_v61 }
 0x236   :  { %v703_v48 = vrot.slane %v702_v12, 1  ;;  %v673_v11 = vrot.slane %v672_v54, 4  ;;  %806 = vbcast.lane.b32.xlu1 %v3599_v46, 264  ;;  %802 = vbcast.lane.b32.xlu0 %v3599_v46, 256  ;;  %v710_v30 = vsel %vm353_vm3, %v649_v56, 0.0  ;;  %v4628_v56 = vld [vmem:[#allocation9_spill] sm:$0xff] }
 0x237   :  { %v711_v1 = vadd.f32 %v710_v30, %v709_v55  ;;  %v621_v59 = vpop.permute.xlu0 %620  ;;  %v734_v8 = vsel %vm353_vm3, %v656_v6, 0.0  ;;  %v4629_v55 = vld [vmem:[#allocation10_spill] sm:$0xff]  ;;  %v746_v30 = vadd.f32 %v745_v21, %v744_v29 }
 0x238   :  { %v704_v0 = vadd.f32 %v703_v48, %v702_v12  ;;  %v674_v38 = vadd.f32 %v673_v11, %v672_v54  ;;  %v625_v33 = vpop.permute.xlu1 %624  ;;  %v662_v57 = vmul.f32 %v621_v59, %v3426_v32  ;;  %v735_v50 = vadd.f32 %v734_v8, %v733_v15 }
 0x239   :  { %v712_v9 = vrot.slane %v711_v1, 4  ;;  %v663_v3 = vmul.f32 %v625_v33, %v3424_v63 }
 0x23a   :  { %v675_v7 = vrot.slane %v674_v38, 2  ;;  %v3613_v43 = vadd.f32 %v704_v0, %v3406_v24  ;;  %v757_v2 = vsel %vm353_vm3, %v662_v57, 0.0 }
 0x23b   :  { %v713_v40 = vadd.f32 %v712_v9, %v711_v1  ;;  %v576_v17 = vpop.permute.xlu0 %575  ;;  %v758_v42 = vsel %vm353_vm3, %v663_v3, 0.0 }
 0x23c   :  { %v676_v52 = vadd.f32 %v675_v7, %v674_v38  ;;  %v610_v41 = vpop.permute.xlu1 %609  ;;  %v3621_v34 = vrot.slane %v3613_v43, %v3286_v13  ;;  %v653_v4 = vmul.f32 %v576_v17, %v4626_v49  ;;  %v759_v33 = vadd.f32 %v758_v42, %v757_v2 }
 0x23d   :  { %v714_v53 = vrot.slane %v713_v40, 2  ;;  %v660_v27 = vmul.f32 %v610_v41, %v4627_v58 }
 0x23e   :  { %v677_v28 = vrot.slane %v676_v52, 1  ;;  %825 = vbcast.lane.b32.xlu1 %v3621_v34, 264  ;;  %821 = vbcast.lane.b32.xlu0 %v3621_v34, 256  ;;  %v723_v19 = vsel %vm353_vm3, %v653_v4, 0.0 }
 0x23f   :  { %v715_v32 = vadd.f32 %v714_v53, %v713_v40  ;;  %v724_v12 = vadd.f32 %v723_v19, %v722_v22  ;;  %v595_v51 = vpop.permute.xlu0 %594  ;;  %v747_v62 = vsel %vm353_vm3, %v660_v27, 0.0 }
 0x240   :  { %v678_v63 = vadd.f32 %v677_v28, %v676_v52  ;;  %v629_v54 = vpop.permute.xlu1 %628  ;;  %v657_v48 = vmul.f32 %v595_v51, %v4629_v55  ;;  %v748_v7 = vadd.f32 %v747_v62, %v746_v30  ;;  %v2297_v55 = vrot.slane %v3613_v43, 6 }
 0x241   :  { %v664_v18 = vmul.f32 %v629_v54, %v4628_v56  ;;  %v716_v11 = vrot.slane %v715_v32, 1  ;;  %v725_v25 = vrot.slane %v724_v12, 4  ;;  %v2295_v54 = vrot.slane %v3591_v45, 7 }
 0x242   :  { %v770_v23 = vadd.f32 %v678_v63, %v3355_v26  ;;  %v736_v38 = vsel %vm353_vm3, %v657_v48, 0.0 }
 0x243   :  { %v760_v0 = vsel %vm353_vm3, %v664_v18, 0.0  ;;  %v717_v1 = vadd.f32 %v716_v11, %v715_v32  ;;  %v726_v59 = vadd.f32 %v725_v25, %v724_v12  ;;  %v737_v39 = vadd.f32 %v736_v38, %v735_v50  ;;  %v614_v61 = vpop.permute.xlu0 %613 }
 0x244   :  { %v633_v6 = vpop.permute.xlu1 %632  ;;  %v661_v47 = vmul.f32 %v614_v61, %v3468_v20  ;;  %v3644_v16 = vrot.slane %v770_v23, %v3286_v13  ;;  %v761_v10 = vadd.f32 %v760_v0, %v759_v33  ;;  %v2296_v56 = vsel %vm2267_vm4, %v2295_v54, %v770_v23 }
 0x245   :  { %v665_v9 = vmul.f32 %v633_v6, %v3466_v5  ;;  %v727_v26 = vrot.slane %v726_v59, 2  ;;  %v738_v31 = vrot.slane %v737_v39, 4  ;;  %v773_v15 = vadd.f32 %v717_v1, %v3459_v60 }
 0x246   :  { %v749_v40 = vsel %vm353_vm3, %v661_v47, 0.0  ;;  %787 = vbcast.lane.b32.xlu1 %v3644_v16, 264  ;;  %783 = vbcast.lane.b32.xlu0 %v3644_v16, 256  ;;  %v2298_v45 = vsel %vm2270_vm5, %v2297_v55, %v2296_v56  ;;  %v3710_v55 = vld [vmem:[#allocation2 + $0x50] sm:$0xff] }
 0x247   :  { %v762_v52 = vsel %vm353_vm3, %v665_v9, 0.0  ;;  %v728_v41 = vadd.f32 %v727_v26, %v726_v59  ;;  %v739_v5 = vadd.f32 %v738_v31, %v737_v39  ;;  %v750_v20 = vadd.f32 %v749_v40, %v748_v7 }
 0x248   :  { %v763_v17 = vadd.f32 %v762_v52, %v761_v10  ;;  %v838_v8 = vrot.slane %v773_v15, %v3286_v13  ;;  %v2299_v18 = vrot.slane %v773_v15, 5 }
 0x249   :  { %v729_v3 = vrot.slane %v728_v41, 1  ;;  %v740_v57 = vrot.slane %v739_v5, 2  ;;  %v751_v4 = vrot.slane %v750_v20, 4 }
 0x24a   :  { %v764_v49 = vrot.slane %v763_v17, 4  ;;  %810 = vbcast.lane.b32.xlu0 %v3599_v46, 272  ;;  %840 = vbcast.lane.b32.xlu1 %v838_v8, 256  ;;  %v2300_v23 = vsel %vm2273_vm6, %v2299_v18, %v2298_v45 }
 0x24b   :  { %v730_v22 = vadd.f32 %v729_v3, %v728_v41  ;;  %v741_v28 = vadd.f32 %v740_v57, %v739_v5  ;;  %v752_v58 = vadd.f32 %v751_v4, %v750_v20  ;;  %v3685_v57 = vld [vmem:[#allocation2 + $0x28] sm:$0xff]  ;;  %v3688_v4 = vld [vmem:[#allocation2 + $0x20] sm:$0xff] }
 0x24c   :  { %v765_v53 = vadd.f32 %v764_v49, %v763_v17 }
 0x24d   :  { %v742_v27 = vrot.slane %v741_v28, 1  ;;  %v753_v21 = vrot.slane %v752_v58, 2  ;;  %v774_v19 = vadd.f32 %v730_v22, %v3487_v14 }
 0x24e   :  { %v766_v29 = vrot.slane %v765_v53, 2  ;;  %844 = vbcast.lane.b32.xlu0 %v838_v8, 264  ;;  %829 = vbcast.lane.b32.xlu1 %v3621_v34, 272 }
 0x24f   :  { %v743_v63 = vadd.f32 %v742_v27, %v741_v28  ;;  %v754_v32 = vadd.f32 %v753_v21, %v752_v58  ;;  %v857_v12 = vrot.slane %v774_v19, %v3286_v13  ;;  %v2301_v62 = vrot.slane %v774_v19, 4  ;;  %v3691_v28 = vld [vmem:[#allocation2 + $0x30] sm:$0xff] }
 0x250   :  { %v767_v50 = vadd.f32 %v766_v29, %v765_v53 }
 0x251   :  { %v755_v42 = vrot.slane %v754_v32, 1  ;;  %v775_v2 = vadd.f32 %v743_v63, %v3492_v36  ;;  %v2302_v38 = vsel %vm2276_vm7, %v2301_v62, %v2300_v23 }
 0x252   :  { %v768_v51 = vrot.slane %v767_v50, 1  ;;  %863 = vbcast.lane.b32.xlu1 %v857_v12, 264  ;;  %859 = vbcast.lane.b32.xlu0 %v857_v12, 256 }
 0x253   :  { %v756_v11 = vadd.f32 %v755_v42, %v754_v32  ;;  %v2303_v25 = vrot.slane %v775_v2, 3  ;;  %v876_v33 = vrot.slane %v775_v2, %v3286_v13  ;;  %v3707_v2 = vld [vmem:[#allocation2 + $0x38] sm:$0xff] }
 0x254   :  { %v769_v48 = vadd.f32 %v768_v51, %v767_v50  ;;  %v3704_v51 = vld [vmem:[#allocation2 + $0x40] sm:$0xff] }
 0x255   :  { %v776_v30 = vadd.f32 %v756_v11, %v3500_v37  ;;  %v2304_v59 = vsel %vm2279_vm8, %v2303_v25, %v2302_v38 }
 0x256   :  { %v777_v0 = vadd.f32 %v769_v48, %v3504_v35  ;;  %814 = vbcast.lane.b32.xlu1 %v3599_v46, 280  ;;  %791 = vbcast.lane.b32.xlu0 %v3644_v16, 272 }
 0x257   :  { %v2305_v1 = vrot.slane %v776_v30, 2  ;;  %v895_v46 = vrot.slane %v776_v30, %v3286_v13 }
 0x258   :  { %v2307_v43 = vrot.slane %v777_v0, 1  ;;  %v914_v61 = vrot.slane %v777_v0, %v3286_v13 }
 0x259   :  { %v2306_v39 = vsel %vm2282_vm9, %v2305_v1, %v2304_v59 }
 0x25a   :  { %848 = vbcast.lane.b32.xlu0 %v838_v8, 272  ;;  %878 = vbcast.lane.b32.xlu1 %v876_v33, 256  ;;  %v2308_v6 = vsel %vm2285_vm10, %v2307_v43, %v2306_v39  ;;  %v3719_v39 = vld [vmem:[#allocation2 + $0x8] sm:$0xff] }
 0x25b   :  { %3009 = vmatprep.mubr.msk.f32.mxu1 %vm353_vm3, %v2308_v6 }
 0x25e   :  { %882 = vbcast.lane.b32.xlu0 %v876_v33, 264  ;;  %833 = vbcast.lane.b32.xlu1 %v3621_v34, 280  ;;  %v3679_v34 = vld [vmem:[%s4577_s6] ss:$0 sm:$0xff] }
 0x25f   :  { %4630 = vst [vmem:[#allocation7_spill] sm:$0xff] %v3679_v34 }
 0x262   :  { %867 = vbcast.lane.b32.xlu0 %v857_v12, 272  ;;  %897 = vbcast.lane.b32.xlu1 %v895_v46, 256 }
 0x266   :  { %901 = vbcast.lane.b32.xlu0 %v895_v46, 264  ;;  %795 = vbcast.lane.b32.xlu1 %v3644_v16, 280 }
 0x26a   :  { %852 = vbcast.lane.b32.xlu0 %v838_v8, 280  ;;  %886 = vbcast.lane.b32.xlu1 %v876_v33, 272 }
 0x26e   :  { %916 = vbcast.lane.b32.xlu0 %v914_v61, 256  ;;  %920 = vbcast.lane.b32.xlu1 %v914_v61, 264 }
 0x272   :  { %871 = vbcast.lane.b32.xlu0 %v857_v12, 280  ;;  %905 = vbcast.lane.b32.xlu1 %v895_v46, 272  ;;  %v3701_v12 = vld [vmem:[#allocation2 + $0x48] sm:$0xff] }
 0x276   :  { %890 = vbcast.lane.b32.xlu0 %v876_v33, 280  ;;  %924 = vbcast.lane.b32.xlu1 %v914_v61, 272 }
 0x27a   :  { %909 = vbcast.lane.b32.xlu0 %v895_v46, 280  ;;  %928 = vbcast.lane.b32.xlu1 %v914_v61, 280  ;;  %v3722_v46 = vld [vmem:[#allocation2] sm:$0xff] }
 0x286   :  { %v3008_v7 = vpop.f32.mrb[0].mxu1 }
 0x287   :  { %v2519_v9 = vadd.f32 %v3008_v7, %v3679_v34  ;;  %v2513_v47 = vpop.f32.mrb[1].mxu1  ;;  %v3725_v7 = vld [vmem:[#allocation2 + $0x58] sm:$0xff] }
 0x288   :  { %v2514_v16 = vadd.f32 %v3679_v34, %v2513_v47 }
 0x289   :  { %v2553_v10 = vmax.f32 %v2519_v9, 0.0 }
 0x28a   :  { %v2552_v26 = vmax.f32 %v2514_v16, 0.0 }
 0x28c   :  { %3042 = vmatprep.mubr.msk.f32.mxu0 %vm2579_vm11, %v2552_v26  ;;  %v3728_v26 = vld [vmem:[#allocation2 + $0x10] sm:$0xff] }
 0x28d   :  { %3043 = vmatmul.mubr.msk.f32.vlgmr.msra.gmra.mrb[2].mxu0 %vm2579_vm11, %v2553_v10 }
 0x2a8   :  { %v807_v31 = vpop.permute.xlu1 %806  ;;  %v803_v15 = vpop.permute.xlu0 %802 }
 0x2a9   :  { %v935_v49 = vmul.f32 %v3685_v57, %v807_v31  ;;  %v934_v22 = vmul.f32 %v3688_v4, %v803_v15 }
 0x2ab   :  { %v976_v29 = vsel %vm353_vm3, %v935_v49, 0.0  ;;  %v975_v21 = vsel %vm353_vm3, %v934_v22, 0.0 }
 0x2ac   :  { %v977_v63 = vadd.f32 %v976_v29, %v975_v21  ;;  %v3739_v29 = vld [vmem:[#allocation2 + $0x60] sm:$0xff] }
 0x2b0   :  { %v826_v52 = vpop.permute.xlu1 %825  ;;  %v822_v40 = vpop.permute.xlu0 %821 }
 0x2b1   :  { %v939_v54 = vmul.f32 %v3701_v12, %v826_v52  ;;  %v938_v42 = vmul.f32 %v3704_v51, %v822_v40 }
 0x2b3   :  { %v989_v0 = vsel %vm353_vm3, %v939_v54, 0.0  ;;  %v988_v45 = vsel %vm353_vm3, %v938_v42, 0.0 }
 0x2b4   :  { %v990_v1 = vadd.f32 %v989_v0, %v988_v45 }
 0x2b8   :  { %v788_v41 = vpop.permute.xlu1 %787  ;;  %v784_v5 = vpop.permute.xlu0 %783 }
 0x2b9   :  { %v931_v6 = vmul.f32 %v3719_v39, %v788_v41  ;;  %v930_v61 = vmul.f32 %v3722_v46, %v784_v5 }
 0x2bb   :  { %v962_v5 = vsel %vm353_vm3, %v930_v61, 0.0 }
 0x2bc   :  { %v841_v17 = vpop.permute.xlu1 %840  ;;  %v811_v20 = vpop.permute.xlu0 %810 }
 0x2bd   :  { %v936_v53 = vmul.f32 %v3691_v28, %v811_v20  ;;  %v963_v20 = vsel %vm353_vm3, %v931_v6, 0.0  ;;  %v942_v21 = vmul.f32 %v3739_v29, %v841_v17 }
 0x2bf   :  { %v978_v19 = vsel %vm353_vm3, %v936_v53, 0.0 }
 0x2c0   :  { %v830_v8 = vpop.permute.xlu1 %829  ;;  %v845_v3 = vpop.permute.xlu0 %844  ;;  %v979_v18 = vadd.f32 %v978_v19, %v977_v63  ;;  %v3743_v63 = vld [vmem:[#allocation2 + $0x70] sm:$0xff] }
 0x2c1   :  { %v940_v48 = vmul.f32 %v3710_v55, %v830_v8  ;;  %v3736_v8 = vld [vmem:[#allocation2 + $0x68] sm:$0xff] }
 0x2c2   :  { %v943_v49 = vmul.f32 %v3736_v8, %v845_v3  ;;  %v3747_v3 = vld [vmem:[#allocation2 + $0x18] sm:$0xff] }
 0x2c3   :  { %v991_v38 = vsel %vm353_vm3, %v940_v48, 0.0 }
 0x2c4   :  { %v3694_v58 = vpop.permute.xlu1 %863  ;;  %v3696_v27 = vpop.permute.xlu0 %859  ;;  %v992_v47 = vadd.f32 %v991_v38, %v990_v1  ;;  %v1002_v48 = vsel %vm353_vm3, %v943_v49, 0.0  ;;  %v3758_v38 = vld [vmem:[#allocation2 + $0x80] sm:$0xff] }
 0x2c5   :  { %v946_v1 = vmul.f32 %v3758_v38, %v3696_v27 }
 0x2c8   :  { %v815_v50 = vpop.permute.xlu1 %814  ;;  %v792_v32 = vpop.permute.xlu0 %791 }
 0x2c9   :  { %v937_v56 = vmul.f32 %v3707_v2, %v815_v50  ;;  %v932_v10 = vmul.f32 %v3728_v26, %v792_v32  ;;  %v964_v32 = vadd.f32 %v963_v20, %v962_v5 }
 0x2cb   :  { %v980_v11 = vsel %vm353_vm3, %v937_v56, 0.0  ;;  %v965_v19 = vsel %vm353_vm3, %v932_v10, 0.0  ;;  %v3768_v10 = vld [vmem:[#allocation2 + $0xa8] sm:$0xff] }
 0x2cc   :  { %v981_v62 = vadd.f32 %v980_v11, %v979_v18  ;;  %v3714_v25 = vpop.permute.xlu1 %878  ;;  %v849_v30 = vpop.permute.xlu0 %848  ;;  %v966_v0 = vadd.f32 %v965_v19, %v964_v32 }
 0x2cd   :  { %v944_v50 = vmul.f32 %v3743_v63, %v849_v30 }
 0x2ce   :  { %v982_v23 = vrot.slane %v981_v62, 4 }
 0x2d0   :  { %v983_v43 = vadd.f32 %v982_v23, %v981_v62  ;;  %v834_v33 = vpop.permute.xlu1 %833  ;;  %v883_v59 = vpop.permute.xlu0 %882  ;;  %v3750_v62 = vld [vmem:[#allocation2 + $0x88] sm:$0xff]  ;;  %v1001_v23 = vsel %vm353_vm3, %v942_v21, 0.0  ;;  %v3782_v21 = vld [vmem:[#allocation2 + $0x90] sm:$0xff] }
 0x2d1   :  { %v941_v9 = vmul.f32 %v3725_v7, %v834_v33  ;;  %v947_v17 = vmul.f32 %v3750_v62, %v3694_v58  ;;  %v1003_v6 = vadd.f32 %v1002_v48, %v1001_v23 }
 0x2d2   :  { %v984_v16 = vrot.slane %v983_v43, 2 }
 0x2d3   :  { %v993_v31 = vsel %vm353_vm3, %v941_v9, 0.0 }
 0x2d4   :  { %v985_v15 = vadd.f32 %v984_v16, %v983_v43  ;;  %v994_v52 = vadd.f32 %v993_v31, %v992_v47  ;;  %v3732_v40 = vpop.permute.xlu1 %897  ;;  %v868_v41 = vpop.permute.xlu0 %867  ;;  %v1004_v43 = vsel %vm353_vm3, %v944_v50, 0.0  ;;  %v951_v31 = vmul.f32 %v3768_v10, %v883_v59 }
 0x2d5   :  { %v1005_v20 = vadd.f32 %v1004_v43, %v1003_v6  ;;  %v948_v19 = vmul.f32 %v3782_v21, %v868_v41  ;;  %v3794_v43 = vld [vmem:[#allocation2 + $0xc0] sm:$0xff] }
 0x2d6   :  { %v986_v22 = vrot.slane %v985_v15, 1  ;;  %v995_v53 = vrot.slane %v994_v52, 4  ;;  %4631 = vst [vmem:[#allocation8_spill] sm:$0xff] %v3794_v43 }
 0x2d7   :  { %v1017_v6 = vsel %vm353_vm3, %v948_v19, 0.0 }
 0x2d8   :  { %v987_v54 = vadd.f32 %v986_v22, %v985_v15  ;;  %v996_v42 = vadd.f32 %v995_v53, %v994_v52  ;;  %v796_v56 = vpop.permute.xlu1 %795  ;;  %v902_v18 = vpop.permute.xlu0 %901  ;;  %v3771_v15 = vld [vmem:[#allocation2 + $0x78] sm:$0xff]  ;;  %v1015_v52 = vsel %vm353_vm3, %v947_v17, 0.0  ;;  %v1014_v22 = vsel %vm353_vm3, %v946_v1, 0.0  ;;  %v3778_v53 = vld [vmem:[#allocation2 + $0xa0] sm:$0xff]  ;;  %v3787_v17 = vld [vmem:[#allocation2 + $0xb0] sm:$0xff] }
 0x2d9   :  { %v933_v11 = vmul.f32 %v3747_v3, %v796_v56  ;;  %v950_v59 = vmul.f32 %v3778_v53, %v3714_v25 }
 0x2da   :  { %v997_v45 = vrot.slane %v996_v42, 2  ;;  %v3755_v30 = vadd.f32 %v987_v54, %v3369_v44 }
 0x2db   :  { %v967_v33 = vsel %vm353_vm3, %v933_v11, 0.0  ;;  %v1028_v11 = vsel %vm353_vm3, %v951_v31, 0.0  ;;  %v1027_v41 = vsel %vm353_vm3, %v950_v59, 0.0 }
 0x2dc   :  { %v998_v61 = vadd.f32 %v997_v45, %v996_v42  ;;  %v968_v9 = vadd.f32 %v967_v33, %v966_v0  ;;  %v887_v58 = vpop.permute.xlu1 %886  ;;  %v853_v47 = vpop.permute.xlu0 %852  ;;  %v3766_v16 = vrot.slane %v3755_v30, %v3286_v13  ;;  %v1016_v45 = vadd.f32 %v1015_v52, %v1014_v22  ;;  %v3810_v22 = vld [vmem:[#allocation2 + $0xe0] sm:$0xff] }
 0x2dd   :  { %v945_v27 = vmul.f32 %v3771_v15, %v853_v47  ;;  %v952_v0 = vmul.f32 %v3787_v17, %v887_v58  ;;  %v954_v33 = vmul.f32 %v3794_v43, %v3732_v40  ;;  %v1029_v58 = vadd.f32 %v1028_v11, %v1027_v41  ;;  %4634 = vst [vmem:[#allocation12_spill] sm:$0xff] %v3810_v22 }
 0x2de   :  { %v999_v5 = vrot.slane %v998_v61, 1  ;;  %v969_v49 = vrot.slane %v968_v9, 4  ;;  %1102 = vbcast.lane.b32.xlu1 %v3766_v16, 264  ;;  %1098 = vbcast.lane.b32.xlu0 %v3766_v16, 256 }
 0x2df   :  { %v1006_v50 = vsel %vm353_vm3, %v945_v27, 0.0 }
 0x2e0   :  { %v1000_v32 = vadd.f32 %v999_v5, %v998_v61  ;;  %v970_v54 = vadd.f32 %v969_v49, %v968_v9  ;;  %v1007_v42 = vadd.f32 %v1006_v50, %v1005_v20  ;;  %v921_v56 = vpop.permute.xlu1 %920  ;;  %v917_v48 = vpop.permute.xlu0 %916  ;;  %v3799_v61 = vld [vmem:[#allocation2 + $0xc8] sm:$0xff]  ;;  %v1030_v5 = vsel %vm353_vm3, %v952_v0, 0.0 }
 0x2e1   :  { %4632 = vst [vmem:[#allocation9_spill] sm:$0xff] %v3799_v61  ;;  %v955_v9 = vmul.f32 %v3799_v61, %v902_v18  ;;  %v3807_v49 = vld [vmem:[#allocation2 + $0xe8] sm:$0xff]  ;;  %v958_v59 = vmul.f32 %v3810_v22, %v917_v48  ;;  %v3813_v18 = vld [vmem:[#allocation2 + $0x98] sm:$0xff]  ;;  %v1018_v50 = vadd.f32 %v1017_v6, %v1016_v45 }
 0x2e2   :  { %v971_v23 = vrot.slane %v970_v54, 2  ;;  %v1008_v25 = vrot.slane %v1007_v42, 4  ;;  %v3791_v1 = vadd.f32 %v1000_v32, %v3406_v24  ;;  %4633 = vst [vmem:[#allocation10_spill] sm:$0xff] %v3807_v49  ;;  %v959_v40 = vmul.f32 %v3807_v49, %v921_v56  ;;  %4635 = vst [vmem:[#allocation13_spill] sm:$0xff] %v3813_v18  ;;  %v3829_v22 = vld [vmem:[#allocation2 + $0xb8] sm:$0xff] }
 0x2e3   :  { %v1040_v56 = vsel %vm353_vm3, %v954_v33, 0.0  ;;  %v1041_v0 = vsel %vm353_vm3, %v955_v9, 0.0  ;;  %4638 = vst [vmem:[#allocation16_spill] sm:$0xff] %v3829_v22  ;;  %v3844_v49 = vld [vmem:[#allocation2 + $0xd8] sm:$0xff] }
 0x2e4   :  { %v972_v47 = vadd.f32 %v971_v23, %v970_v54  ;;  %v1009_v31 = vadd.f32 %v1008_v25, %v1007_v42  ;;  %v906_v27 = vpop.permute.xlu1 %905  ;;  %v872_v52 = vpop.permute.xlu0 %871  ;;  %v3804_v20 = vrot.slane %v3791_v1, %v3286_v13  ;;  %v3816_v42 = vld [vmem:[#allocation2 + $0xd0] sm:$0xff]  ;;  %v1031_v25 = vadd.f32 %v1030_v5, %v1029_v58  ;;  %4640 = vst [vmem:[#allocation18_spill] sm:$0xff] %v3844_v49 }
 0x2e5   :  { %v949_v19 = vmul.f32 %v3813_v18, %v872_v52  ;;  %4636 = vst [vmem:[#allocation14_spill] sm:$0xff] %v3816_v42  ;;  %v956_v11 = vmul.f32 %v3816_v42, %v906_v27  ;;  %v1054_v34 = vsel %vm353_vm3, %v959_v40, 0.0  ;;  %v1053_v27 = vsel %vm353_vm3, %v958_v59, 0.0  ;;  %v3826_v42 = vld [vmem:[#allocation2 + $0xf0] sm:$0xff] }
 0x2e6   :  { %v973_v32 = vrot.slane %v972_v47, 1  ;;  %v1010_v54 = vrot.slane %v1009_v31, 2  ;;  %1121 = vbcast.lane.b32.xlu1 %v3804_v20, 264  ;;  %1117 = vbcast.lane.b32.xlu0 %v3804_v20, 256  ;;  %4637 = vst [vmem:[#allocation15_spill] sm:$0xff] %v3826_v42  ;;  %v1042_v40 = vadd.f32 %v1041_v0, %v1040_v56 }
 0x2e7   :  { %v1019_v48 = vsel %vm353_vm3, %v949_v19, 0.0 }
 0x2e8   :  { %v974_v23 = vadd.f32 %v973_v32, %v972_v47  ;;  %v1011_v41 = vadd.f32 %v1010_v54, %v1009_v31  ;;  %v1020_v45 = vadd.f32 %v1019_v48, %v1018_v50  ;;  %v925_v6 = vpop.permute.xlu1 %924  ;;  %v891_v52 = vpop.permute.xlu0 %890  ;;  %v1043_v47 = vsel %vm353_vm3, %v956_v11, 0.0  ;;  %v3836_v31 = vld [vmem:[%s4573_s2] sm:$0xff] }
 0x2e9   :  { %v960_v18 = vmul.f32 %v3826_v42, %v925_v6  ;;  %v953_v33 = vmul.f32 %v3829_v22, %v891_v52  ;;  %4639 = vst [vmem:[#allocation17_spill] sm:$0xff] %v3836_v31  ;;  %v1055_v32 = vadd.f32 %v1054_v34, %v1053_v27  ;;  %v1044_v11 = vadd.f32 %v1043_v47, %v1042_v40  ;;  %v3841_v22 = vld [vmem:[#allocation2 + $0xf8] sm:$0xff] }
 0x2ea   :  { %v1012_v9 = vrot.slane %v1011_v41, 1  ;;  %v1021_v58 = vrot.slane %v1020_v45, 4  ;;  %v1066_v5 = vadd.f32 %v3836_v31, %v974_v23 }
 0x2eb   :  { %v1056_v59 = vsel %vm353_vm3, %v960_v18, 0.0  ;;  %v1032_v19 = vsel %vm353_vm3, %v953_v33, 0.0 }
 0x2ec   :  { %v1013_v50 = vadd.f32 %v1012_v9, %v1011_v41  ;;  %v1022_v54 = vadd.f32 %v1021_v58, %v1020_v45  ;;  %v1033_v48 = vadd.f32 %v1032_v19, %v1031_v25  ;;  %v929_v6 = vpop.permute.xlu1 %928  ;;  %v910_v52 = vpop.permute.xlu0 %909  ;;  %v3848_v56 = vrot.slane %v1066_v5, %v3286_v13 }
 0x2ed   :  { %v961_v42 = vmul.f32 %v3841_v22, %v929_v6  ;;  %v957_v23 = vmul.f32 %v3844_v49, %v910_v52  ;;  %v1057_v0 = vadd.f32 %v1056_v59, %v1055_v32 }
 0x2ee   :  { %v1023_v18 = vrot.slane %v1022_v54, 2  ;;  %v1034_v41 = vrot.slane %v1033_v48, 4  ;;  %v1069_v34 = vadd.f32 %v1013_v50, %v3459_v60  ;;  %1083 = vbcast.lane.b32.xlu1 %v3848_v56, 264  ;;  %1079 = vbcast.lane.b32.xlu0 %v3848_v56, 256 }
 0x2ef   :  { %v1058_v25 = vsel %vm353_vm3, %v961_v42, 0.0  ;;  %v1045_v45 = vsel %vm353_vm3, %v957_v23, 0.0 }
 0x2f0   :  { %v1024_v27 = vadd.f32 %v1023_v18, %v1022_v54  ;;  %v1035_v33 = vadd.f32 %v1034_v41, %v1033_v48  ;;  %v1059_v9 = vadd.f32 %v1058_v25, %v1057_v0  ;;  %v1046_v47 = vadd.f32 %v1045_v45, %v1044_v11 }
 0x2f1   :  { %v1134_v58 = vrot.slane %v1069_v34, %v3286_v13  ;;  %v2317_v41 = vrot.slane %v3755_v30, 7 }
 0x2f2   :  { %v1025_v40 = vrot.slane %v1024_v27, 1  ;;  %v1036_v19 = vrot.slane %v1035_v33, 2  ;;  %v1060_v59 = vrot.slane %v1059_v9, 4  ;;  %v1047_v32 = vrot.slane %v1046_v47, 4  ;;  %1106 = vbcast.lane.b32.xlu0 %v3766_v16, 272 }
 0x2f3   :  { %1136 = vbcast.lane.b32.xlu1 %v1134_v58, 256 }
 0x2f4   :  { %v1026_v42 = vadd.f32 %v1025_v40, %v1024_v27  ;;  %v1037_v50 = vadd.f32 %v1036_v19, %v1035_v33  ;;  %v1061_v6 = vadd.f32 %v1060_v59, %v1059_v9  ;;  %v1048_v52 = vadd.f32 %v1047_v32, %v1046_v47 }
 0x2f5   :  { %v2318_v33 = vsel %vm2267_vm4, %v2317_v41, %v1066_v5  ;;  %v2321_v9 = vrot.slane %v1069_v34, 5  ;;  %v2319_v47 = vrot.slane %v3791_v1, 6 }
 0x2f6   :  { %v1038_v23 = vrot.slane %v1037_v50, 1  ;;  %v1062_v60 = vrot.slane %v1061_v6, 2  ;;  %v1049_v49 = vrot.slane %v1048_v52, 2  ;;  %v1070_v54 = vadd.f32 %v1026_v42, %v3487_v14  ;;  %1140 = vbcast.lane.b32.xlu0 %v1134_v58, 264 }
 0x2f7   :  { %1125 = vbcast.lane.b32.xlu1 %v3804_v20, 272  ;;  %v2320_v30 = vsel %vm2270_vm5, %v2319_v47, %v2318_v33 }
 0x2f8   :  { %v1039_v48 = vadd.f32 %v1038_v23, %v1037_v50  ;;  %v1063_v11 = vadd.f32 %v1062_v60, %v1061_v6  ;;  %v1050_v18 = vadd.f32 %v1049_v49, %v1048_v52  ;;  %v1153_v0 = vrot.slane %v1070_v54, %v3286_v13 }
 0x2f9   :  { %v2323_v59 = vrot.slane %v1070_v54, 4  ;;  %v2322_v5 = vsel %vm2273_vm6, %v2321_v9, %v2320_v30 }
 0x2fa   :  { %v1064_v25 = vrot.slane %v1063_v11, 1  ;;  %v1051_v45 = vrot.slane %v1050_v18, 1  ;;  %v1071_v27 = vadd.f32 %v1039_v48, %v3492_v36  ;;  %1155 = vbcast.lane.b32.xlu0 %v1153_v0, 256 }
 0x2fb   :  { %1159 = vbcast.lane.b32.xlu1 %v1153_v0, 264  ;;  %v2324_v34 = vsel %vm2276_vm7, %v2323_v59, %v2322_v5 }
 0x2fc   :  { %v1065_v40 = vadd.f32 %v1064_v25, %v1063_v11  ;;  %v1052_v19 = vadd.f32 %v1051_v45, %v1050_v18  ;;  %v2325_v60 = vrot.slane %v1071_v27, 3  ;;  %v1172_v50 = vrot.slane %v1071_v27, %v3286_v13 }
 0x2fe   :  { %v1072_v49 = vadd.f32 %v1052_v19, %v3500_v37  ;;  %v1073_v32 = vadd.f32 %v1065_v40, %v3504_v35  ;;  %1087 = vbcast.lane.b32.xlu0 %v3848_v56, 272  ;;  %v2326_v6 = vsel %vm2279_vm8, %v2325_v60, %v2324_v34 }
 0x2ff   :  { %1110 = vbcast.lane.b32.xlu1 %v3766_v16, 280 }
 0x300   :  { %v2327_v42 = vrot.slane %v1072_v49, 2  ;;  %v2329_v1 = vrot.slane %v1073_v32, 1  ;;  %v1191_v16 = vrot.slane %v1072_v49, %v3286_v13  ;;  %v1210_v54 = vrot.slane %v1073_v32, %v3286_v13 }
 0x302   :  { %v2328_v52 = vsel %vm2282_vm9, %v2327_v42, %v2326_v6  ;;  %1144 = vbcast.lane.b32.xlu0 %v1134_v58, 272 }
 0x303   :  { %1174 = vbcast.lane.b32.xlu1 %v1172_v50, 256  ;;  %v2330_v23 = vsel %vm2285_vm10, %v2329_v1, %v2328_v52 }
 0x304   :  { %3010 = vmatmul.mubr.msk.f32.gmra.mrb[2].mxu1 %vm353_vm3, %v2330_v23 }
 0x306   :  { %1178 = vbcast.lane.b32.xlu0 %v1172_v50, 264 }
 0x307   :  { %1129 = vbcast.lane.b32.xlu1 %v3804_v20, 280 }
 0x30a   :  { %1163 = vbcast.lane.b32.xlu0 %v1153_v0, 272 }
 0x30b   :  { %1193 = vbcast.lane.b32.xlu1 %v1191_v16, 256 }
 0x30e   :  { %1197 = vbcast.lane.b32.xlu0 %v1191_v16, 264 }
 0x30f   :  { %1091 = vbcast.lane.b32.xlu1 %v3848_v56, 280 }
 0x312   :  { %1148 = vbcast.lane.b32.xlu0 %v1134_v58, 280 }
 0x313   :  { %1182 = vbcast.lane.b32.xlu1 %v1172_v50, 272 }
 0x316   :  { %1212 = vbcast.lane.b32.xlu0 %v1210_v54, 256 }
 0x317   :  { %1216 = vbcast.lane.b32.xlu1 %v1210_v54, 264 }
 0x31a   :  { %1167 = vbcast.lane.b32.xlu0 %v1153_v0, 280 }
 0x31b   :  { %1201 = vbcast.lane.b32.xlu1 %v1191_v16, 272 }
 0x31e   :  { %1186 = vbcast.lane.b32.xlu0 %v1172_v50, 280 }
 0x31f   :  { %1220 = vbcast.lane.b32.xlu1 %v1210_v54, 272 }
 0x322   :  { %1205 = vbcast.lane.b32.xlu0 %v1191_v16, 280 }
 0x323   :  { %1224 = vbcast.lane.b32.xlu1 %v1210_v54, 280 }
 0x350   :  { %v1103_v20 = vpop.permute.xlu1 %1102  ;;  %v1099_v48 = vpop.permute.xlu0 %1098 }
 0x351   :  { %v1231_v0 = vmul.f32 %v3685_v57, %v1103_v20  ;;  %v1230_v47 = vmul.f32 %v3688_v4, %v1099_v48 }
 0x353   :  { %v1272_v60 = vsel %vm353_vm3, %v1231_v0, 0.0  ;;  %v1271_v49 = vsel %vm353_vm3, %v1230_v47, 0.0 }
 0x354   :  { %v1273_v30 = vadd.f32 %v1272_v60, %v1271_v49 }
 0x358   :  { %v1122_v11 = vpop.permute.xlu1 %1121  ;;  %v1118_v18 = vpop.permute.xlu0 %1117 }
 0x359   :  { %v1235_v42 = vmul.f32 %v3701_v12, %v1122_v11  ;;  %v1234_v1 = vmul.f32 %v3704_v51, %v1118_v18 }
 0x35b   :  { %v1285_v48 = vsel %vm353_vm3, %v1235_v42, 0.0 }
 0x360   :  { %v3880_v41 = vpop.f32.mrb[2].mxu0  ;;  %v1084_v56 = vpop.permute.xlu1 %1083 }
 0x361   :  { %4641 = vst [vmem:[#allocation19_spill] sm:$0xff] %v3880_v41  ;;  %v3882_v25 = vpop.f32.mrb[3].mxu0  ;;  %v1080_v58 = vpop.permute.xlu0 %1079  ;;  %v1227_v49 = vmul.f32 %v3719_v39, %v1084_v56 }
 0x362   :  { %4642 = vst [vmem:[#allocation20_spill] sm:$0xff] %v3882_v25 }
 0x365   :  { %v1137_v45 = vpop.permute.xlu1 %1136  ;;  %v1107_v27 = vpop.permute.xlu0 %1106 }
 0x366   :  { %v1232_v40 = vmul.f32 %v3691_v28, %v1107_v27  ;;  %v1284_v27 = vsel %vm353_vm3, %v1234_v1, 0.0 }
 0x367   :  { %v1286_v11 = vadd.f32 %v1285_v48, %v1284_v27 }
 0x368   :  { %v1274_v32 = vsel %vm353_vm3, %v1232_v40, 0.0 }
 0x369   :  { %v1126_v33 = vpop.permute.xlu1 %1125  ;;  %v1141_v9 = vpop.permute.xlu0 %1140  ;;  %v1275_v6 = vadd.f32 %v1274_v32, %v1273_v30 }
 0x36a   :  { %v1236_v52 = vmul.f32 %v3710_v55, %v1126_v33  ;;  %v1226_v33 = vmul.f32 %v3722_v46, %v1080_v58  ;;  %v1239_v56 = vmul.f32 %v3736_v8, %v1141_v9 }
 0x36c   :  { %v1287_v47 = vsel %vm353_vm3, %v1236_v52, 0.0  ;;  %v1258_v48 = vsel %vm353_vm3, %v1226_v33, 0.0 }
 0x36d   :  { %v1160_v19 = vpop.permute.xlu1 %1159  ;;  %v1156_v59 = vpop.permute.xlu0 %1155  ;;  %v1288_v30 = vadd.f32 %v1287_v47, %v1286_v11 }
 0x36e   :  { %v1243_v33 = vmul.f32 %v3750_v62, %v1160_v19 }
 0x371   :  { %v1111_v5 = vpop.permute.xlu1 %1110  ;;  %v1088_v34 = vpop.permute.xlu0 %1087 }
 0x372   :  { %v1233_v50 = vmul.f32 %v3707_v2, %v1111_v5 }
 0x374   :  { %v1276_v23 = vsel %vm353_vm3, %v1233_v50, 0.0  ;;  %v1228_v50 = vmul.f32 %v3728_v26, %v1088_v34 }
 0x375   :  { %v1277_v16 = vadd.f32 %v1276_v23, %v1275_v6  ;;  %v1175_v54 = vpop.permute.xlu1 %1174  ;;  %v1145_v20 = vpop.permute.xlu0 %1144 }
 0x376   :  { %v1261_v47 = vsel %vm353_vm3, %v1228_v50, 0.0  ;;  %v1240_v34 = vmul.f32 %v3743_v63, %v1145_v20  ;;  %v1242_v20 = vmul.f32 %v3758_v38, %v1156_v59 }
 0x377   :  { %v1278_v0 = vrot.slane %v1277_v16, 4 }
 0x378   :  { %v1300_v50 = vsel %vm353_vm3, %v1240_v34, 0.0 }
 0x379   :  { %v1279_v40 = vadd.f32 %v1278_v0, %v1277_v16  ;;  %v1130_v18 = vpop.permute.xlu1 %1129  ;;  %v1179_v60 = vpop.permute.xlu0 %1178  ;;  %v1259_v16 = vsel %vm353_vm3, %v1227_v49, 0.0  ;;  %v1238_v0 = vmul.f32 %v3739_v29, %v1137_v45 }
 0x37a   :  { %v1237_v32 = vmul.f32 %v3725_v7, %v1130_v18  ;;  %v1260_v11 = vadd.f32 %v1259_v16, %v1258_v48 }
 0x37b   :  { %v1280_v5 = vrot.slane %v1279_v40, 2  ;;  %v1297_v45 = vsel %vm353_vm3, %v1238_v0, 0.0  ;;  %v1311_v0 = vsel %vm353_vm3, %v1243_v33, 0.0 }
 0x37c   :  { %v1289_v42 = vsel %vm353_vm3, %v1237_v32, 0.0  ;;  %v1262_v9 = vadd.f32 %v1261_v47, %v1260_v11 }
 0x37d   :  { %v1281_v1 = vadd.f32 %v1280_v5, %v1279_v40  ;;  %v1290_v6 = vadd.f32 %v1289_v42, %v1288_v30  ;;  %v1194_v23 = vpop.permute.xlu1 %1193  ;;  %v1164_v52 = vpop.permute.xlu0 %1163  ;;  %v1298_v5 = vsel %vm353_vm3, %v1239_v56, 0.0 }
 0x37f   :  { %v1282_v27 = vrot.slane %v1281_v1, 1  ;;  %v1291_v58 = vrot.slane %v1290_v6, 4 }
 0x381   :  { %v1283_v18 = vadd.f32 %v1282_v27, %v1281_v1  ;;  %v1292_v40 = vadd.f32 %v1291_v58, %v1290_v6  ;;  %v1092_v32 = vpop.permute.xlu1 %1091  ;;  %v1198_v30 = vpop.permute.xlu0 %1197  ;;  %v1299_v6 = vadd.f32 %v1298_v5, %v1297_v45  ;;  %v1247_v58 = vmul.f32 %v3768_v10, %v1179_v60 }
 0x382   :  { %v1229_v49 = vmul.f32 %v3747_v3, %v1092_v32  ;;  %v1244_v32 = vmul.f32 %v3782_v21, %v1164_v52  ;;  %v1250_v52 = vmul.f32 %v3794_v43, %v1194_v23  ;;  %v4645_v23 = vld [vmem:[#allocation13_spill] sm:$0xff] }
 0x383   :  { %v1293_v42 = vrot.slane %v1292_v40, 2  ;;  %v3913_v41 = vadd.f32 %v1283_v18, %v3369_v44  ;;  %v1301_v59 = vadd.f32 %v1300_v50, %v1299_v6  ;;  %v1310_v18 = vsel %vm353_vm3, %v1242_v20, 0.0 }
 0x384   :  { %v1263_v1 = vsel %vm353_vm3, %v1229_v49, 0.0  ;;  %v1324_v45 = vsel %vm353_vm3, %v1247_v58, 0.0 }
 0x385   :  { %v1294_v16 = vadd.f32 %v1293_v42, %v1292_v40  ;;  %v1264_v48 = vadd.f32 %v1263_v1, %v1262_v9  ;;  %v1183_v56 = vpop.permute.xlu1 %1182  ;;  %v1149_v27 = vpop.permute.xlu0 %1148  ;;  %v3921_v19 = vrot.slane %v3913_v41, %v3286_v13  ;;  %v1246_v40 = vmul.f32 %v3778_v53, %v1175_v54 }
 0x386   :  { %v1241_v47 = vmul.f32 %v3771_v15, %v1149_v27  ;;  %v1248_v50 = vmul.f32 %v3787_v17, %v1183_v56  ;;  %v1312_v1 = vadd.f32 %v1311_v0, %v1310_v18  ;;  %v4643_v18 = vld [vmem:[#allocation10_spill] sm:$0xff] }
 0x387   :  { %v1295_v11 = vrot.slane %v1294_v16, 1  ;;  %v1265_v34 = vrot.slane %v1264_v48, 4  ;;  %1398 = vbcast.lane.b32.xlu1 %v3921_v19, 264  ;;  %1394 = vbcast.lane.b32.xlu0 %v3921_v19, 256  ;;  %v1323_v54 = vsel %vm353_vm3, %v1246_v40, 0.0  ;;  %v4644_v40 = vld [vmem:[#allocation12_spill] sm:$0xff] }
 0x388   :  { %v1302_v5 = vsel %vm353_vm3, %v1241_v47, 0.0  ;;  %v1325_v47 = vadd.f32 %v1324_v45, %v1323_v54  ;;  %v1326_v0 = vsel %vm353_vm3, %v1248_v50, 0.0  ;;  %v4646_v45 = vld [vmem:[#allocation14_spill] sm:$0xff] }
 0x389   :  { %v1296_v60 = vadd.f32 %v1295_v11, %v1294_v16  ;;  %v1266_v49 = vadd.f32 %v1265_v34, %v1264_v48  ;;  %v1303_v9 = vadd.f32 %v1302_v5, %v1301_v59  ;;  %v1217_v42 = vpop.permute.xlu1 %1216  ;;  %v1213_v33 = vpop.permute.xlu0 %1212  ;;  %v1313_v16 = vsel %vm353_vm3, %v1244_v32, 0.0 }
 0x38a   :  { %v1251_v48 = vmul.f32 %v3799_v61, %v1198_v30  ;;  %v1255_v5 = vmul.f32 %v4643_v18, %v1217_v42  ;;  %v1314_v32 = vadd.f32 %v1313_v16, %v1312_v1 }
 0x38b   :  { %v1267_v6 = vrot.slane %v1266_v49, 2  ;;  %v1304_v27 = vrot.slane %v1303_v9, 4  ;;  %v3935_v20 = vadd.f32 %v1296_v60, %v3406_v24  ;;  %v1254_v60 = vmul.f32 %v4644_v40, %v1213_v33  ;;  %v4648_v40 = vld [vmem:[#allocation16_spill] sm:$0xff] }
 0x38c   :  { %v1350_v16 = vsel %vm353_vm3, %v1255_v5, 0.0 }
 0x38d   :  { %v1268_v59 = vadd.f32 %v1267_v6, %v1266_v49  ;;  %v1305_v11 = vadd.f32 %v1304_v27, %v1303_v9  ;;  %v1202_v58 = vpop.permute.xlu1 %1201  ;;  %v1168_v34 = vpop.permute.xlu0 %1167  ;;  %v3943_v56 = vrot.slane %v3935_v20, %v3286_v13  ;;  %v1336_v9 = vsel %vm353_vm3, %v1250_v52, 0.0 }
 0x38e   :  { %v1245_v25 = vmul.f32 %v4645_v23, %v1168_v34  ;;  %v1252_v49 = vmul.f32 %v4646_v45, %v1202_v58  ;;  %v1337_v6 = vsel %vm353_vm3, %v1251_v48, 0.0  ;;  %v1327_v27 = vadd.f32 %v1326_v0, %v1325_v47  ;;  %v4647_v45 = vld [vmem:[#allocation15_spill] sm:$0xff] }
 0x38f   :  { %v1269_v43 = vrot.slane %v1268_v59, 1  ;;  %v1306_v30 = vrot.slane %v1305_v11, 2  ;;  %1417 = vbcast.lane.b32.xlu1 %v3943_v56, 264  ;;  %1413 = vbcast.lane.b32.xlu0 %v3943_v56, 256  ;;  %v1349_v58 = vsel %vm353_vm3, %v1254_v60, 0.0 }
 0x390   :  { %v1315_v50 = vsel %vm353_vm3, %v1245_v25, 0.0  ;;  %v1339_v52 = vsel %vm353_vm3, %v1252_v49, 0.0  ;;  %v1351_v0 = vadd.f32 %v1350_v16, %v1349_v58 }
 0x391   :  { %v1270_v42 = vadd.f32 %v1269_v43, %v1268_v59  ;;  %v1307_v33 = vadd.f32 %v1306_v30, %v1305_v11  ;;  %v1316_v54 = vadd.f32 %v1315_v50, %v1314_v32  ;;  %v1221_v34 = vpop.permute.xlu1 %1220  ;;  %v1187_v1 = vpop.permute.xlu0 %1186  ;;  %v1338_v43 = vadd.f32 %v1337_v6, %v1336_v9 }
 0x392   :  { %v1256_v23 = vmul.f32 %v4647_v45, %v1221_v34  ;;  %v1249_v18 = vmul.f32 %v4648_v40, %v1187_v1  ;;  %v4649_v1 = vld [vmem:[#allocation18_spill] sm:$0xff] }
 0x393   :  { %v1308_v61 = vrot.slane %v1307_v33, 1  ;;  %v1317_v48 = vrot.slane %v1316_v54, 4  ;;  %v1362_v25 = vadd.f32 %v3836_v31, %v1270_v42  ;;  %v1340_v50 = vadd.f32 %v1339_v52, %v1338_v43 }
 0x394   :  { %v1352_v47 = vsel %vm353_vm3, %v1256_v23, 0.0  ;;  %v1328_v59 = vsel %vm353_vm3, %v1249_v18, 0.0  ;;  %v4650_v23 = vld [vmem:[#allocation11_spill] sm:$0xff] }
 0x395   :  { %v1309_v11 = vadd.f32 %v1308_v61, %v1307_v33  ;;  %v1318_v5 = vadd.f32 %v1317_v48, %v1316_v54  ;;  %v1329_v32 = vadd.f32 %v1328_v59, %v1327_v27  ;;  %v1225_v60 = vpop.permute.xlu1 %1224  ;;  %v1206_v30 = vpop.permute.xlu0 %1205  ;;  %v3966_v49 = vrot.slane %v1362_v25, %v3286_v13 }
 0x396   :  { %v1257_v34 = vmul.f32 %v3841_v22, %v1225_v60  ;;  %v1253_v40 = vmul.f32 %v4649_v1, %v1206_v30  ;;  %v1353_v9 = vadd.f32 %v1352_v47, %v1351_v0 }
 0x397   :  { %v1319_v42 = vrot.slane %v1318_v5, 2  ;;  %v1330_v6 = vrot.slane %v1329_v32, 4  ;;  %v1365_v31 = vadd.f32 %v1309_v11, %v4650_v23  ;;  %1379 = vbcast.lane.b32.xlu1 %v3966_v49, 264  ;;  %1375 = vbcast.lane.b32.xlu0 %v3966_v49, 256 }
 0x398   :  { %v1354_v61 = vsel %vm353_vm3, %v1257_v34, 0.0  ;;  %v1341_v18 = vsel %vm353_vm3, %v1253_v40, 0.0 }
 0x399   :  { %v1320_v27 = vadd.f32 %v1319_v42, %v1318_v5  ;;  %v1331_v33 = vadd.f32 %v1330_v6, %v1329_v32  ;;  %v1355_v54 = vadd.f32 %v1354_v61, %v1353_v9  ;;  %v1342_v16 = vadd.f32 %v1341_v18, %v1340_v50 }
 0x39a   :  { %v1430_v58 = vrot.slane %v1365_v31, %v3286_v13  ;;  %v2339_v6 = vrot.slane %v3913_v41, 7 }
 0x39b   :  { %v1321_v52 = vrot.slane %v1320_v27, 1  ;;  %v1332_v48 = vrot.slane %v1331_v33, 2  ;;  %v1356_v43 = vrot.slane %v1355_v54, 4  ;;  %v1343_v47 = vrot.slane %v1342_v16, 4  ;;  %1402 = vbcast.lane.b32.xlu0 %v3921_v19, 272 }
 0x39c   :  { %1432 = vbcast.lane.b32.xlu1 %v1430_v58, 256 }
 0x39d   :  { %v1322_v59 = vadd.f32 %v1321_v52, %v1320_v27  ;;  %v1333_v11 = vadd.f32 %v1332_v48, %v1331_v33  ;;  %v1357_v40 = vadd.f32 %v1356_v43, %v1355_v54  ;;  %v1344_v0 = vadd.f32 %v1343_v47, %v1342_v16 }
 0x39e   :  { %v2340_v33 = vsel %vm2267_vm4, %v2339_v6, %v1362_v25  ;;  %v2343_v54 = vrot.slane %v1365_v31, 5  ;;  %v2341_v16 = vrot.slane %v3935_v20, 6 }
 0x39f   :  { %v1334_v60 = vrot.slane %v1333_v11, 1  ;;  %v1358_v30 = vrot.slane %v1357_v40, 2  ;;  %v1345_v34 = vrot.slane %v1344_v0, 2  ;;  %v1366_v5 = vadd.f32 %v1322_v59, %v3487_v14  ;;  %1436 = vbcast.lane.b32.xlu0 %v1430_v58, 264 }
 0x3a0   :  { %1421 = vbcast.lane.b32.xlu1 %v3943_v56, 272  ;;  %v2342_v41 = vsel %vm2270_vm5, %v2341_v16, %v2340_v33 }
 0x3a1   :  { %v1335_v32 = vadd.f32 %v1334_v60, %v1333_v11  ;;  %v1359_v50 = vadd.f32 %v1358_v30, %v1357_v40  ;;  %v1346_v42 = vadd.f32 %v1345_v34, %v1344_v0  ;;  %v1449_v9 = vrot.slane %v1366_v5, %v3286_v13 }
 0x3a2   :  { %v2345_v43 = vrot.slane %v1366_v5, 4  ;;  %v2344_v31 = vsel %vm2273_vm6, %v2343_v54, %v2342_v41 }
 0x3a3   :  { %v1360_v61 = vrot.slane %v1359_v50, 1  ;;  %v1347_v18 = vrot.slane %v1346_v42, 1  ;;  %v1367_v27 = vadd.f32 %v1335_v32, %v3492_v36  ;;  %1451 = vbcast.lane.b32.xlu0 %v1449_v9, 256  ;;  %v4651_v32 = vld [vmem:[#allocation7_spill] sm:$0xff] }
 0x3a4   :  { %1455 = vbcast.lane.b32.xlu1 %v1449_v9, 264  ;;  %v2346_v25 = vsel %vm2276_vm7, %v2345_v43, %v2344_v31 }
 0x3a5   :  { %v1361_v52 = vadd.f32 %v1360_v61, %v1359_v50  ;;  %v1348_v48 = vadd.f32 %v1347_v18, %v1346_v42  ;;  %v2347_v47 = vrot.slane %v1367_v27, 3  ;;  %v1468_v0 = vrot.slane %v1367_v27, %v3286_v13 }
 0x3a7   :  { %v1368_v59 = vadd.f32 %v1348_v48, %v3500_v37  ;;  %v1369_v11 = vadd.f32 %v1361_v52, %v3504_v35  ;;  %1383 = vbcast.lane.b32.xlu0 %v3966_v49, 272  ;;  %v2348_v60 = vsel %vm2279_vm8, %v2347_v47, %v2346_v25 }
 0x3a8   :  { %1406 = vbcast.lane.b32.xlu1 %v3921_v19, 280 }
 0x3a9   :  { %v2349_v40 = vrot.slane %v1368_v59, 2  ;;  %v2351_v20 = vrot.slane %v1369_v11, 1  ;;  %v1487_v19 = vrot.slane %v1368_v59, %v3286_v13  ;;  %v1506_v5 = vrot.slane %v1369_v11, %v3286_v13 }
 0x3ab   :  { %v2350_v30 = vsel %vm2282_vm9, %v2349_v40, %v2348_v60  ;;  %1440 = vbcast.lane.b32.xlu0 %v1430_v58, 272 }
 0x3ac   :  { %1470 = vbcast.lane.b32.xlu1 %v1468_v0, 256  ;;  %v2352_v34 = vsel %vm2285_vm10, %v2351_v20, %v2350_v30 }
 0x3ad   :  { %3012 = vmatprep.mubr.msk.f32.mxu1 %vm353_vm3, %v2352_v34 }
 0x3af   :  { %1474 = vbcast.lane.b32.xlu0 %v1468_v0, 264 }
 0x3b0   :  { %1425 = vbcast.lane.b32.xlu1 %v3943_v56, 280 }
 0x3b3   :  { %1459 = vbcast.lane.b32.xlu0 %v1449_v9, 272 }
 0x3b4   :  { %1489 = vbcast.lane.b32.xlu1 %v1487_v19, 256 }
 0x3b7   :  { %1493 = vbcast.lane.b32.xlu0 %v1487_v19, 264 }
 0x3b8   :  { %1387 = vbcast.lane.b32.xlu1 %v3966_v49, 280 }
 0x3bb   :  { %1444 = vbcast.lane.b32.xlu0 %v1430_v58, 280 }
 0x3bc   :  { %1478 = vbcast.lane.b32.xlu1 %v1468_v0, 272 }
 0x3bf   :  { %1508 = vbcast.lane.b32.xlu0 %v1506_v5, 256 }
 0x3c0   :  { %1512 = vbcast.lane.b32.xlu1 %v1506_v5, 264 }
 0x3c3   :  { %1463 = vbcast.lane.b32.xlu0 %v1449_v9, 280 }
 0x3c4   :  { %1497 = vbcast.lane.b32.xlu1 %v1487_v19, 272 }
 0x3c7   :  { %1482 = vbcast.lane.b32.xlu0 %v1468_v0, 280 }
 0x3c8   :  { %1516 = vbcast.lane.b32.xlu1 %v1506_v5, 272 }
 0x3cb   :  { %1501 = vbcast.lane.b32.xlu0 %v1487_v19, 280 }
 0x3cc   :  { %1520 = vbcast.lane.b32.xlu1 %v1506_v5, 280 }
 0x3d7   :  { %v3011_v56 = vpop.f32.mrb[2].mxu1 }
 0x3d8   :  { %v2529_v50 = vadd.f32 %v3011_v56, %v4651_v32  ;;  %v2523_v42 = vpop.f32.mrb[3].mxu1 }
 0x3d9   :  { %v2524_v6 = vadd.f32 %v4651_v32, %v2523_v42 }
 0x3da   :  { %v2555_v49 = vmax.f32 %v2529_v50, 0.0 }
 0x3db   :  { %v2554_v61 = vmax.f32 %v2524_v6, 0.0 }
 0x3dd   :  { %3045 = vmatprep.mubr.msk.f32.mxu0 %vm2579_vm11, %v2554_v61 }
 0x3de   :  { %3046 = vmatmul.mubr.msk.f32.gmra.mrb[4].mxu0 %vm2579_vm11, %v2555_v49 }
 0x3f9   :  { %v1399_v58 = vpop.permute.xlu1 %1398  ;;  %v1395_v18 = vpop.permute.xlu0 %1394 }
 0x3fa   :  { %v1527_v47 = vmul.f32 %v3685_v57, %v1399_v58  ;;  %v1526_v59 = vmul.f32 %v3688_v4, %v1395_v18 }
 0x3fc   :  { %v1568_v25 = vsel %vm353_vm3, %v1527_v47, 0.0  ;;  %v1567_v40 = vsel %vm353_vm3, %v1526_v59, 0.0 }
 0x3fd   :  { %v1569_v0 = vadd.f32 %v1568_v25, %v1567_v40 }
 0x401   :  { %v1418_v9 = vpop.permute.xlu1 %1417  ;;  %v1414_v27 = vpop.permute.xlu0 %1413 }
 0x402   :  { %v1531_v34 = vmul.f32 %v3701_v12, %v1418_v9  ;;  %v1530_v19 = vmul.f32 %v3704_v51, %v1414_v27 }
 0x404   :  { %v1581_v42 = vsel %vm353_vm3, %v1531_v34, 0.0  ;;  %v1580_v6 = vsel %vm353_vm3, %v1530_v19, 0.0 }
 0x405   :  { %v1582_v12 = vadd.f32 %v1581_v42, %v1580_v6 }
 0x409   :  { %v1380_v33 = vpop.permute.xlu1 %1379  ;;  %v1376_v54 = vpop.permute.xlu0 %1375 }
 0x40d   :  { %v1403_v52 = vpop.permute.xlu0 %1402 }
 0x40e   :  { %v1433_v16 = vpop.permute.xlu1 %1432  ;;  %v1528_v11 = vmul.f32 %v3691_v28, %v1403_v52 }
 0x410   :  { %v1570_v20 = vsel %vm353_vm3, %v1528_v11, 0.0 }
 0x411   :  { %v1437_v43 = vpop.permute.xlu0 %1436  ;;  %v1571_v4 = vadd.f32 %v1570_v20, %v1569_v0 }
 0x412   :  { %v1422_v48 = vpop.permute.xlu1 %1421 }
 0x413   :  { %v1532_v28 = vmul.f32 %v3710_v55, %v1422_v48  ;;  %v1522_v55 = vmul.f32 %v3722_v46, %v1376_v54 }
 0x415   :  { %v1452_v31 = vpop.permute.xlu0 %1451  ;;  %v1583_v49 = vsel %vm353_vm3, %v1532_v28, 0.0  ;;  %v1554_v0 = vsel %vm353_vm3, %v1522_v55, 0.0 }
 0x416   :  { %v1456_v41 = vpop.permute.xlu1 %1455  ;;  %v1584_v27 = vadd.f32 %v1583_v49, %v1582_v12 }
 0x419   :  { %v1384_v30 = vpop.permute.xlu0 %1383 }
 0x41a   :  { %v1407_v60 = vpop.permute.xlu1 %1406  ;;  %v1524_v48 = vmul.f32 %v3728_v26, %v1384_v30 }
 0x41b   :  { %v1529_v57 = vmul.f32 %v3707_v2, %v1407_v60  ;;  %v1523_v2 = vmul.f32 %v3719_v39, %v1380_v33  ;;  %v1535_v39 = vmul.f32 %v3736_v8, %v1437_v43 }
 0x41c   :  { %v1557_v54 = vsel %vm353_vm3, %v1524_v48, 0.0 }
 0x41d   :  { %v1572_v5 = vsel %vm353_vm3, %v1529_v57, 0.0  ;;  %v1441_v50 = vpop.permute.xlu0 %1440  ;;  %v1555_v20 = vsel %vm353_vm3, %v1523_v2, 0.0 }
 0x41e   :  { %v1573_v56 = vadd.f32 %v1572_v5, %v1571_v4  ;;  %v1471_v32 = vpop.permute.xlu1 %1470  ;;  %v1536_v26 = vmul.f32 %v3743_v63, %v1441_v50  ;;  %v1556_v60 = vadd.f32 %v1555_v20, %v1554_v0  ;;  %v1594_v4 = vsel %vm353_vm3, %v1535_v39, 0.0 }
 0x41f   :  { %v1539_v5 = vmul.f32 %v3750_v62, %v1456_v41  ;;  %v1538_v63 = vmul.f32 %v3758_v38, %v1452_v31  ;;  %v1542_v55 = vmul.f32 %v3778_v53, %v1471_v32 }
 0x420   :  { %v1574_v61 = vrot.slane %v1573_v56, 4  ;;  %v1558_v8 = vadd.f32 %v1557_v54, %v1556_v60 }
 0x421   :  { %v1475_v18 = vpop.permute.xlu0 %1474  ;;  %v1606_v2 = vsel %vm353_vm3, %v1538_v63, 0.0  ;;  %v1619_v53 = vsel %vm353_vm3, %v1542_v55, 0.0  ;;  %v4657_v63 = vld [vmem:[#allocation14_spill] sm:$0xff] }
 0x422   :  { %v1575_v58 = vadd.f32 %v1574_v61, %v1573_v56  ;;  %v1426_v51 = vpop.permute.xlu1 %1425  ;;  %v1543_v41 = vmul.f32 %v3768_v10, %v1475_v18 }
 0x423   :  { %v1533_v9 = vmul.f32 %v3725_v7, %v1426_v51  ;;  %v1534_v7 = vmul.f32 %v3739_v29, %v1433_v16  ;;  %v1596_v16 = vsel %vm353_vm3, %v1536_v26, 0.0 }
 0x424   :  { %v1576_v52 = vrot.slane %v1575_v58, 2 }
 0x425   :  { %v1585_v47 = vsel %vm353_vm3, %v1533_v9, 0.0  ;;  %v1460_v40 = vpop.permute.xlu0 %1459  ;;  %v1593_v29 = vsel %vm353_vm3, %v1534_v7, 0.0 }
 0x426   :  { %v1577_v59 = vadd.f32 %v1576_v52, %v1575_v58  ;;  %v1586_v11 = vadd.f32 %v1585_v47, %v1584_v27  ;;  %v1490_v25 = vpop.permute.xlu1 %1489  ;;  %v1595_v42 = vadd.f32 %v1594_v4, %v1593_v29  ;;  %v1607_v58 = vsel %vm353_vm3, %v1539_v5, 0.0 }
 0x427   :  { %v1540_v9 = vmul.f32 %v3782_v21, %v1460_v40  ;;  %v1620_v47 = vsel %vm353_vm3, %v1543_v41, 0.0  ;;  %v4652_v21 = vld [vmem:[#allocation8_spill] sm:$0xff] }
 0x428   :  { %v1578_v33 = vrot.slane %v1577_v59, 1  ;;  %v1587_v46 = vrot.slane %v1586_v11, 4  ;;  %v1597_v38 = vadd.f32 %v1596_v16, %v1595_v42  ;;  %v1546_v32 = vmul.f32 %v4652_v21, %v1490_v25  ;;  %v4656_v25 = vld [vmem:[#allocation13_spill] sm:$0xff] }
 0x429   :  { %v1494_v57 = vpop.permute.xlu0 %1493  ;;  %v1609_v40 = vsel %vm353_vm3, %v1540_v9, 0.0  ;;  %v1621_v7 = vadd.f32 %v1620_v47, %v1619_v53 }
 0x42a   :  { %v1579_v30 = vadd.f32 %v1578_v33, %v1577_v59  ;;  %v1588_v34 = vadd.f32 %v1587_v46, %v1586_v11  ;;  %v1388_v19 = vpop.permute.xlu1 %1387  ;;  %v1608_v11 = vadd.f32 %v1607_v58, %v1606_v2  ;;  %v4653_v33 = vld [vmem:[#allocation9_spill] sm:$0xff]  ;;  %v4658_v2 = vld [vmem:[#allocation16_spill] sm:$0xff] }
 0x42b   :  { %v1525_v28 = vmul.f32 %v3747_v3, %v1388_v19  ;;  %v1547_v46 = vmul.f32 %v4653_v33, %v1494_v57  ;;  %v4654_v19 = vld [vmem:[#allocation10_spill] sm:$0xff] }
 0x42c   :  { %v1589_v43 = vrot.slane %v1588_v34, 2  ;;  %v4031_v56 = vadd.f32 %v1579_v30, %v3369_v44 }
 0x42d   :  { %v1559_v50 = vsel %vm353_vm3, %v1525_v28, 0.0  ;;  %v1445_v3 = vpop.permute.xlu0 %1444  ;;  %v4655_v28 = vld [vmem:[#allocation12_spill] sm:$0xff]  ;;  %v1633_v42 = vsel %vm353_vm3, %v1547_v46, 0.0 }
 0x42e   :  { %v1590_v6 = vadd.f32 %v1589_v43, %v1588_v34  ;;  %v1560_v61 = vadd.f32 %v1559_v50, %v1558_v8  ;;  %v1479_v49 = vpop.permute.xlu1 %1478  ;;  %v4039_v62 = vrot.slane %v4031_v56, %v3286_v13  ;;  %v1537_v12 = vmul.f32 %v3771_v15, %v1445_v3 }
 0x42f   :  { %v1544_v59 = vmul.f32 %v3787_v17, %v1479_v49  ;;  %v1610_v43 = vadd.f32 %v1609_v40, %v1608_v11  ;;  %v1632_v50 = vsel %vm353_vm3, %v1546_v32, 0.0 }
 0x430   :  { %v1591_v31 = vrot.slane %v1590_v6, 1  ;;  %v1561_v51 = vrot.slane %v1560_v61, 4  ;;  %1694 = vbcast.lane.b32.xlu1 %v4039_v62, 264  ;;  %1690 = vbcast.lane.b32.xlu0 %v4039_v62, 256  ;;  %v1598_v27 = vsel %vm353_vm3, %v1537_v12, 0.0 }
 0x431   :  { %v1599_v15 = vadd.f32 %v1598_v27, %v1597_v38  ;;  %v1509_v48 = vpop.permute.xlu0 %1508  ;;  %v1622_v34 = vsel %vm353_vm3, %v1544_v59, 0.0 }
 0x432   :  { %v1592_v10 = vadd.f32 %v1591_v31, %v1590_v6  ;;  %v1562_v18 = vadd.f32 %v1561_v51, %v1560_v61  ;;  %v1513_v52 = vpop.permute.xlu1 %1512  ;;  %v1550_v5 = vmul.f32 %v4655_v28, %v1509_v48  ;;  %v1623_v49 = vadd.f32 %v1622_v34, %v1621_v7 }
 0x433   :  { %v1600_v0 = vrot.slane %v1599_v15, 4  ;;  %v1551_v4 = vmul.f32 %v4654_v19, %v1513_v52  ;;  %v1634_v52 = vadd.f32 %v1633_v42, %v1632_v50 }
 0x434   :  { %v1563_v20 = vrot.slane %v1562_v18, 2  ;;  %v4053_v39 = vadd.f32 %v1592_v10, %v3406_v24  ;;  %v1645_v31 = vsel %vm353_vm3, %v1550_v5, 0.0 }
 0x435   :  { %v1601_v26 = vadd.f32 %v1600_v0, %v1599_v15  ;;  %v1464_v30 = vpop.permute.xlu0 %1463  ;;  %v1646_v38 = vsel %vm353_vm3, %v1551_v4, 0.0 }
 0x436   :  { %v1564_v54 = vadd.f32 %v1563_v20, %v1562_v18  ;;  %v1498_v60 = vpop.permute.xlu1 %1497  ;;  %v4061_v17 = vrot.slane %v4053_v39, %v3286_v13  ;;  %v1541_v8 = vmul.f32 %v4656_v25, %v1464_v30  ;;  %v4659_v18 = vld [vmem:[#allocation17_spill] sm:$0xff]  ;;  %v1647_v11 = vadd.f32 %v1646_v38, %v1645_v31 }
 0x437   :  { %v1602_v57 = vrot.slane %v1601_v26, 2  ;;  %v1548_v16 = vmul.f32 %v4657_v63, %v1498_v60 }
 0x438   :  { %v1565_v29 = vrot.slane %v1564_v54, 1  ;;  %1713 = vbcast.lane.b32.xlu1 %v4061_v17, 264  ;;  %1709 = vbcast.lane.b32.xlu0 %v4061_v17, 256  ;;  %v1611_v6 = vsel %vm353_vm3, %v1541_v8, 0.0 }
 0x439   :  { %v1603_v3 = vadd.f32 %v1602_v57, %v1601_v26  ;;  %v1612_v41 = vadd.f32 %v1611_v6, %v1610_v43  ;;  %v1483_v58 = vpop.permute.xlu0 %1482  ;;  %v1635_v27 = vsel %vm353_vm3, %v1548_v16, 0.0 }
 0x43a   :  { %v1566_v61 = vadd.f32 %v1565_v29, %v1564_v54  ;;  %v1517_v12 = vpop.permute.xlu1 %1516  ;;  %v1545_v55 = vmul.f32 %v4658_v2, %v1483_v58 }
 0x43b   :  { %v1552_v51 = vmul.f32 %v4647_v45, %v1517_v12  ;;  %v1604_v9 = vrot.slane %v1603_v3, 1  ;;  %v1613_v10 = vrot.slane %v1612_v41, 4  ;;  %v1636_v45 = vadd.f32 %v1635_v27, %v1634_v52 }
 0x43c   :  { %v1658_v15 = vadd.f32 %v4659_v18, %v1566_v61  ;;  %v1624_v47 = vsel %vm353_vm3, %v1545_v55, 0.0  ;;  %v2361_v12 = vrot.slane %v4031_v56, 7  ;;  %v2363_v55 = vrot.slane %v4053_v39, 6 }
 0x43d   :  { %v1648_v48 = vsel %vm353_vm3, %v1552_v51, 0.0  ;;  %v1605_v59 = vadd.f32 %v1604_v9, %v1603_v3  ;;  %v1614_v20 = vadd.f32 %v1613_v10, %v1612_v41  ;;  %v1625_v0 = vadd.f32 %v1624_v47, %v1623_v49  ;;  %v1502_v21 = vpop.permute.xlu0 %1501 }
 0x43e   :  { %v1521_v53 = vpop.permute.xlu1 %1520  ;;  %v1549_v40 = vmul.f32 %v4649_v1, %v1502_v21  ;;  %v4084_v33 = vrot.slane %v1658_v15, %v3286_v13  ;;  %v1649_v7 = vadd.f32 %v1648_v48, %v1647_v11  ;;  %v2362_v51 = vsel %vm2267_vm4, %v2361_v12, %v1658_v15 }
 0x43f   :  { %v1553_v32 = vmul.f32 %v3841_v22, %v1521_v53  ;;  %v1615_v46 = vrot.slane %v1614_v20, 2  ;;  %v1626_v54 = vrot.slane %v1625_v0, 4  ;;  %v1661_v26 = vadd.f32 %v1605_v59, %v4650_v23 }
 0x440   :  { %v1637_v30 = vsel %vm353_vm3, %v1549_v40, 0.0  ;;  %1675 = vbcast.lane.b32.xlu1 %v4084_v33, 264  ;;  %1671 = vbcast.lane.b32.xlu0 %v4084_v33, 256  ;;  %v2364_v56 = vsel %vm2270_vm5, %v2363_v55, %v2362_v51 }
 0x441   :  { %v1650_v60 = vsel %vm353_vm3, %v1553_v32, 0.0  ;;  %v1616_v34 = vadd.f32 %v1615_v46, %v1614_v20  ;;  %v1627_v22 = vadd.f32 %v1626_v54, %v1625_v0  ;;  %v1638_v1 = vadd.f32 %v1637_v30, %v1636_v45 }
 0x442   :  { %v1651_v19 = vadd.f32 %v1650_v60, %v1649_v7  ;;  %v1726_v4 = vrot.slane %v1661_v26, %v3286_v13  ;;  %v2365_v2 = vrot.slane %v1661_v26, 5 }
 0x443   :  { %v1617_v28 = vrot.slane %v1616_v34, 1  ;;  %v1628_v5 = vrot.slane %v1627_v22, 2  ;;  %v1639_v8 = vrot.slane %v1638_v1, 4 }
 0x444   :  { %v1652_v25 = vrot.slane %v1651_v19, 4  ;;  %1698 = vbcast.lane.b32.xlu0 %v4039_v62, 272  ;;  %1728 = vbcast.lane.b32.xlu1 %v1726_v4, 256  ;;  %v2366_v15 = vsel %vm2273_vm6, %v2365_v2, %v2364_v56 }
 0x445   :  { %v1618_v43 = vadd.f32 %v1617_v28, %v1616_v34  ;;  %v1629_v29 = vadd.f32 %v1628_v5, %v1627_v22  ;;  %v1640_v63 = vadd.f32 %v1639_v8, %v1638_v1  ;;  %v4120_v22 = vld [vmem:[#allocation2 + $0x28] sm:$0xff]  ;;  %v4123_v1 = vld [vmem:[#allocation2 + $0x20] sm:$0xff]  ;;  %v4126_v28 = vld [vmem:[#allocation2 + $0x30] sm:$0xff] }
 0x446   :  { %v1653_v57 = vadd.f32 %v1652_v25, %v1651_v19 }
 0x447   :  { %v1630_v16 = vrot.slane %v1629_v29, 1  ;;  %v1641_v42 = vrot.slane %v1640_v63, 2  ;;  %v1662_v6 = vadd.f32 %v1618_v43, %v3487_v14 }
 0x448   :  { %v1654_v50 = vrot.slane %v1653_v57, 2  ;;  %1732 = vbcast.lane.b32.xlu0 %v1726_v4, 264  ;;  %1717 = vbcast.lane.b32.xlu1 %v4061_v17, 272 }
 0x449   :  { %v1631_v61 = vadd.f32 %v1630_v16, %v1629_v29  ;;  %v1642_v3 = vadd.f32 %v1641_v42, %v1640_v63  ;;  %v1745_v41 = vrot.slane %v1662_v6, %v3286_v13  ;;  %v2367_v10 = vrot.slane %v1662_v6, 4  ;;  %v4136_v42 = vld [vmem:[#allocation2 + $0x48] sm:$0xff] }
 0x44a   :  { %v1655_v49 = vadd.f32 %v1654_v50, %v1653_v57 }
 0x44b   :  { %v1643_v38 = vrot.slane %v1642_v3, 1  ;;  %v1663_v31 = vadd.f32 %v1631_v61, %v3492_v36  ;;  %v2368_v47 = vsel %vm2276_vm7, %v2367_v10, %v2366_v15  ;;  %v4139_v61 = vld [vmem:[#allocation2 + $0x40] sm:$0xff] }
 0x44c   :  { %v1656_v58 = vrot.slane %v1655_v49, 1  ;;  %1751 = vbcast.lane.b32.xlu1 %v1745_v41, 264  ;;  %1747 = vbcast.lane.b32.xlu0 %v1745_v41, 256 }
 0x44d   :  { %v1644_v27 = vadd.f32 %v1643_v38, %v1642_v3  ;;  %v2369_v18 = vrot.slane %v1663_v31, 3  ;;  %v1764_v11 = vrot.slane %v1663_v31, %v3286_v13  ;;  %v4142_v3 = vld [vmem:[#allocation2 + $0x38] sm:$0xff] }
 0x44e   :  { %v1657_v9 = vadd.f32 %v1656_v58, %v1655_v49  ;;  %v4145_v58 = vld [vmem:[#allocation2 + $0x50] sm:$0xff] }
 0x44f   :  { %v1664_v52 = vadd.f32 %v1644_v27, %v3500_v37  ;;  %v2370_v20 = vsel %vm2279_vm8, %v2369_v18, %v2368_v47  ;;  %v4154_v47 = vld [vmem:[#allocation2 + $0x8] sm:$0xff] }
 0x450   :  { %v1665_v48 = vadd.f32 %v1657_v9, %v3504_v35  ;;  %1702 = vbcast.lane.b32.xlu1 %v4039_v62, 280  ;;  %1679 = vbcast.lane.b32.xlu0 %v4084_v33, 272 }
 0x451   :  { %v2371_v59 = vrot.slane %v1664_v52, 2  ;;  %v1783_v62 = vrot.slane %v1664_v52, %v3286_v13 }
 0x452   :  { %v2373_v39 = vrot.slane %v1665_v48, 1  ;;  %v1802_v21 = vrot.slane %v1665_v48, %v3286_v13 }
 0x453   :  { %v2372_v0 = vsel %vm2282_vm9, %v2371_v59, %v2370_v20  ;;  %v4160_v20 = vld [vmem:[#allocation2 + $0x58] sm:$0xff] }
 0x454   :  { %1736 = vbcast.lane.b32.xlu0 %v1726_v4, 272  ;;  %1766 = vbcast.lane.b32.xlu1 %v1764_v11, 256  ;;  %v2374_v53 = vsel %vm2285_vm10, %v2373_v39, %v2372_v0  ;;  %v4157_v39 = vld [vmem:[#allocation2] sm:$0xff] }
 0x455   :  { %3013 = vmatmul.mubr.msk.f32.gmra.mrb[4].mxu1 %vm353_vm3, %v2374_v53 }
 0x458   :  { %1770 = vbcast.lane.b32.xlu0 %v1764_v11, 264  ;;  %1721 = vbcast.lane.b32.xlu1 %v4061_v17, 280 }
 0x45c   :  { %1755 = vbcast.lane.b32.xlu0 %v1745_v41, 272  ;;  %1785 = vbcast.lane.b32.xlu1 %v1783_v62, 256 }
 0x460   :  { %1789 = vbcast.lane.b32.xlu0 %v1783_v62, 264  ;;  %1683 = vbcast.lane.b32.xlu1 %v4084_v33, 280 }
 0x464   :  { %1740 = vbcast.lane.b32.xlu0 %v1726_v4, 280  ;;  %1774 = vbcast.lane.b32.xlu1 %v1764_v11, 272 }
 0x468   :  { %1804 = vbcast.lane.b32.xlu0 %v1802_v21, 256  ;;  %1808 = vbcast.lane.b32.xlu1 %v1802_v21, 264 }
 0x46c   :  { %1759 = vbcast.lane.b32.xlu0 %v1745_v41, 280  ;;  %1793 = vbcast.lane.b32.xlu1 %v1783_v62, 272 }
 0x470   :  { %1778 = vbcast.lane.b32.xlu0 %v1764_v11, 280  ;;  %1812 = vbcast.lane.b32.xlu1 %v1802_v21, 272 }
 0x474   :  { %1797 = vbcast.lane.b32.xlu0 %v1783_v62, 280  ;;  %1816 = vbcast.lane.b32.xlu1 %v1802_v21, 280  ;;  %v4163_v21 = vld [vmem:[#allocation2 + $0x10] sm:$0xff] }
 0x4a2   :  { %v1695_v17 = vpop.permute.xlu1 %1694  ;;  %v1691_v45 = vpop.permute.xlu0 %1690 }
 0x4a3   :  { %v1823_v19 = vmul.f32 %v4120_v22, %v1695_v17  ;;  %v1822_v4 = vmul.f32 %v4123_v1, %v1691_v45 }
 0x4a5   :  { %v1864_v43 = vsel %vm353_vm3, %v1823_v19, 0.0  ;;  %v1863_v29 = vsel %vm353_vm3, %v1822_v4, 0.0  ;;  %v4171_v19 = vld [vmem:[#allocation2 + $0x68] sm:$0xff] }
 0x4a6   :  { %v1865_v63 = vadd.f32 %v1864_v43, %v1863_v29  ;;  %v4174_v29 = vld [vmem:[#allocation2 + $0x60] sm:$0xff] }
 0x4aa   :  { %v1714_v32 = vpop.permute.xlu1 %1713  ;;  %v1710_v40 = vpop.permute.xlu0 %1709 }
 0x4ab   :  { %v1827_v6 = vmul.f32 %v4136_v42, %v1714_v32  ;;  %v1826_v49 = vmul.f32 %v4139_v61, %v1710_v40 }
 0x4ad   :  { %v1877_v9 = vsel %vm353_vm3, %v1827_v6, 0.0  ;;  %v1876_v27 = vsel %vm353_vm3, %v1826_v49, 0.0 }
 0x4ae   :  { %v1878_v52 = vadd.f32 %v1877_v9, %v1876_v27  ;;  %v4185_v9 = vld [vmem:[#allocation2 + $0x88] sm:$0xff] }
 0x4b1   :  { %v4116_v46 = vpop.f32.mrb[4].mxu0 }
 0x4b2   :  { %v4118_v7 = vpop.f32.mrb[5].mxu0  ;;  %v1676_v33 = vpop.permute.xlu1 %1675 }
 0x4b3   :  { %v1672_v54 = vpop.permute.xlu0 %1671  ;;  %v1819_v59 = vmul.f32 %v4154_v47, %v1676_v33 }
 0x4b4   :  { %v1818_v11 = vmul.f32 %v4157_v39, %v1672_v54 }
 0x4b6   :  { %v1729_v26 = vpop.permute.xlu1 %1728  ;;  %v1850_v54 = vsel %vm353_vm3, %v1818_v11, 0.0 }
 0x4b7   :  { %v1699_v60 = vpop.permute.xlu0 %1698 }
 0x4b8   :  { %v1824_v5 = vmul.f32 %v4126_v28, %v1699_v60 }
 0x4ba   :  { %v1718_v30 = vpop.permute.xlu1 %1717  ;;  %v1866_v57 = vsel %vm353_vm3, %v1824_v5, 0.0 }
 0x4bb   :  { %v1733_v34 = vpop.permute.xlu0 %1732  ;;  %v1867_v12 = vadd.f32 %v1866_v57, %v1865_v63  ;;  %v1828_v38 = vmul.f32 %v4145_v58, %v1718_v30  ;;  %v1851_v30 = vsel %vm353_vm3, %v1819_v59, 0.0  ;;  %v1830_v57 = vmul.f32 %v4174_v29, %v1729_v26 }
 0x4bc   :  { %v1831_v4 = vmul.f32 %v4171_v19, %v1733_v34  ;;  %v1852_v6 = vadd.f32 %v1851_v30, %v1850_v54  ;;  %v4182_v34 = vld [vmem:[#allocation2 + $0x18] sm:$0xff] }
 0x4bd   :  { %v1879_v18 = vsel %vm353_vm3, %v1828_v38, 0.0 }
 0x4be   :  { %v4129_v25 = vpop.permute.xlu1 %1751  ;;  %v1880_v53 = vadd.f32 %v1879_v18, %v1878_v52  ;;  %v1889_v18 = vsel %vm353_vm3, %v1830_v57, 0.0  ;;  %v4193_v52 = vld [vmem:[#allocation2 + $0x80] sm:$0xff] }
 0x4bf   :  { %v4131_v8 = vpop.permute.xlu0 %1747  ;;  %v1835_v26 = vmul.f32 %v4185_v9, %v4129_v25  ;;  %v4213_v57 = vld [vmem:[#allocation2 + $0xa0] sm:$0xff] }
 0x4c1   :  { %v1903_v30 = vsel %vm353_vm3, %v1835_v26, 0.0 }
 0x4c2   :  { %v1703_v16 = vpop.permute.xlu1 %1702 }
 0x4c3   :  { %v1680_v50 = vpop.permute.xlu0 %1679  ;;  %v1825_v41 = vmul.f32 %v4142_v3, %v1703_v16  ;;  %v4178_v16 = vld [vmem:[#allocation2 + $0x70] sm:$0xff] }
 0x4c4   :  { %v1820_v17 = vmul.f32 %v4163_v21, %v1680_v50 }
 0x4c5   :  { %v1868_v31 = vsel %vm353_vm3, %v1825_v41, 0.0 }
 0x4c6   :  { %v1869_v51 = vadd.f32 %v1868_v31, %v1867_v12  ;;  %v4149_v2 = vpop.permute.xlu1 %1766  ;;  %v1853_v63 = vsel %vm353_vm3, %v1820_v17, 0.0  ;;  %v1890_v31 = vsel %vm353_vm3, %v1831_v4, 0.0 }
 0x4c7   :  { %v1737_v55 = vpop.permute.xlu0 %1736  ;;  %v1854_v27 = vadd.f32 %v1853_v63, %v1852_v6  ;;  %v1891_v11 = vadd.f32 %v1890_v31, %v1889_v18  ;;  %v4217_v63 = vld [vmem:[#allocation2 + $0x90] sm:$0xff] }
 0x4c8   :  { %v1870_v10 = vrot.slane %v1869_v51, 4  ;;  %v1832_v50 = vmul.f32 %v4178_v16, %v1737_v55 }
 0x4ca   :  { %v1871_v48 = vadd.f32 %v1870_v10, %v1869_v51  ;;  %v1722_v56 = vpop.permute.xlu1 %1721 }
 0x4cb   :  { %v1771_v15 = vpop.permute.xlu0 %1770  ;;  %v1829_v0 = vmul.f32 %v4160_v20, %v1722_v56  ;;  %v1892_v56 = vsel %vm353_vm3, %v1832_v50, 0.0 }
 0x4cc   :  { %v1872_v62 = vrot.slane %v1871_v48, 2  ;;  %v1893_v54 = vadd.f32 %v1892_v56, %v1891_v11 }
 0x4cd   :  { %v1881_v45 = vsel %vm353_vm3, %v1829_v0, 0.0 }
 0x4ce   :  { %v1873_v32 = vadd.f32 %v1872_v62, %v1871_v48  ;;  %v1882_v40 = vadd.f32 %v1881_v45, %v1880_v53  ;;  %v4167_v60 = vpop.permute.xlu1 %1785  ;;  %v1834_v48 = vmul.f32 %v4193_v52, %v4131_v8  ;;  %v4203_v45 = vld [vmem:[#allocation2 + $0xa8] sm:$0xff] }
 0x4cf   :  { %v1756_v33 = vpop.permute.xlu0 %1755 }
 0x4d0   :  { %v1874_v5 = vrot.slane %v1873_v32, 1  ;;  %v1883_v43 = vrot.slane %v1882_v40, 4  ;;  %v1836_v50 = vmul.f32 %v4217_v63, %v1756_v33 }
 0x4d2   :  { %v1875_v49 = vadd.f32 %v1874_v5, %v1873_v32  ;;  %v1884_v41 = vadd.f32 %v1883_v43, %v1882_v40  ;;  %v1684_v12 = vpop.permute.xlu1 %1683  ;;  %v1839_v32 = vmul.f32 %v4203_v45, %v1771_v15  ;;  %v4206_v40 = vld [vmem:[#allocation2 + $0x78] sm:$0xff]  ;;  %v1902_v43 = vsel %vm353_vm3, %v1834_v48, 0.0 }
 0x4d3   :  { %v1790_v38 = vpop.permute.xlu0 %1789  ;;  %v1821_v51 = vmul.f32 %v4182_v34, %v1684_v12  ;;  %v1838_v15 = vmul.f32 %v4213_v57, %v4149_v2  ;;  %v1904_v18 = vadd.f32 %v1903_v30, %v1902_v43  ;;  %v4242_v43 = vld [vmem:[#allocation2 + $0xe8] sm:$0xff] }
 0x4d4   :  { %v1885_v10 = vrot.slane %v1884_v41, 2  ;;  %v4190_v55 = vadd.f32 %v1875_v49, %v3369_v44  ;;  %v1916_v26 = vsel %vm353_vm3, %v1839_v32, 0.0 }
 0x4d5   :  { %v1855_v59 = vsel %vm353_vm3, %v1821_v51, 0.0  ;;  %v1915_v33 = vsel %vm353_vm3, %v1838_v15, 0.0  ;;  %v4245_v15 = vld [vmem:[#allocation2 + $0xe0] sm:$0xff] }
 0x4d6   :  { %v1886_v0 = vadd.f32 %v1885_v10, %v1884_v41  ;;  %v1856_v53 = vadd.f32 %v1855_v59, %v1854_v27  ;;  %v1775_v25 = vpop.permute.xlu1 %1774  ;;  %v4201_v17 = vrot.slane %v4190_v55, %v3286_v13  ;;  %v4222_v27 = vld [vmem:[#allocation2 + $0xb0] sm:$0xff]  ;;  %v4229_v59 = vld [vmem:[#allocation2 + $0xc0] sm:$0xff]  ;;  %4661 = vst [vmem:[#allocation18_spill] sm:$0xff] %v4245_v15 }
 0x4d7   :  { %v1741_v62 = vpop.permute.xlu0 %1740  ;;  %v1840_v10 = vmul.f32 %v4222_v27, %v1775_v25  ;;  %4660 = vst [vmem:[#allocation15_spill] sm:$0xff] %v4229_v59  ;;  %v1842_v11 = vmul.f32 %v4229_v59, %v4167_v60  ;;  %v1917_v25 = vadd.f32 %v1916_v26, %v1915_v33  ;;  %v4251_v26 = vld [vmem:[#allocation2 + $0xd0] sm:$0xff] }
 0x4d8   :  { %v1833_v8 = vmul.f32 %v4206_v40, %v1741_v62  ;;  %v1887_v4 = vrot.slane %v1886_v0, 1  ;;  %v1857_v5 = vrot.slane %v1856_v53, 4  ;;  %1990 = vbcast.lane.b32.xlu1 %v4201_v17, 264  ;;  %1986 = vbcast.lane.b32.xlu0 %v4201_v17, 256  ;;  %4663 = vst [vmem:[#allocation8_spill] sm:$0xff] %v4251_v26 }
 0x4da   :  { %v1894_v6 = vsel %vm353_vm3, %v1833_v8, 0.0  ;;  %v1888_v49 = vadd.f32 %v1887_v4, %v1886_v0  ;;  %v1858_v41 = vadd.f32 %v1857_v5, %v1856_v53  ;;  %v1809_v31 = vpop.permute.xlu1 %1808  ;;  %v1905_v0 = vsel %vm353_vm3, %v1836_v50, 0.0  ;;  %v4234_v53 = vld [vmem:[#allocation2 + $0xc8] sm:$0xff] }
 0x4db   :  { %v1895_v12 = vadd.f32 %v1894_v6, %v1893_v54  ;;  %v1805_v51 = vpop.permute.xlu0 %1804  ;;  %v1843_v62 = vmul.f32 %v4234_v53, %v1790_v38  ;;  %v1918_v5 = vsel %vm353_vm3, %v1840_v10, 0.0  ;;  %v1847_v60 = vmul.f32 %v4242_v43, %v1809_v31  ;;  %v4248_v38 = vld [vmem:[#allocation2 + $0x98] sm:$0xff] }
 0x4dc   :  { %v1859_v48 = vrot.slane %v1858_v41, 2  ;;  %v4226_v56 = vadd.f32 %v1888_v49, %v3406_v24  ;;  %v1846_v50 = vmul.f32 %v4245_v15, %v1805_v51  ;;  %4662 = vst [vmem:[#allocation7_spill] sm:$0xff] %v4248_v38  ;;  %v1906_v49 = vadd.f32 %v1905_v0, %v1904_v18  ;;  %v4279_v15 = vld [vmem:[#allocation2 + $0xd8] sm:$0xff] }
 0x4dd   :  { %v1896_v2 = vrot.slane %v1895_v12, 4  ;;  %v1928_v31 = vsel %vm353_vm3, %v1842_v11, 0.0  ;;  %v1929_v10 = vsel %vm353_vm3, %v1843_v62, 0.0  ;;  %v1919_v33 = vadd.f32 %v1918_v5, %v1917_v25 }
 0x4de   :  { %v1860_v32 = vadd.f32 %v1859_v48, %v1858_v41  ;;  %v1794_v30 = vpop.permute.xlu1 %1793  ;;  %v4239_v4 = vrot.slane %v4226_v56, %v3286_v13  ;;  %v1942_v44 = vsel %vm353_vm3, %v1847_v60, 0.0  ;;  %v1930_v60 = vadd.f32 %v1929_v10, %v1928_v31 }
 0x4df   :  { %v1897_v8 = vadd.f32 %v1896_v2, %v1895_v12  ;;  %v1760_v54 = vpop.permute.xlu0 %1759  ;;  %v1844_v48 = vmul.f32 %v4251_v26, %v1794_v30  ;;  %v1941_v30 = vsel %vm353_vm3, %v1846_v50, 0.0  ;;  %v4261_v26 = vld [vmem:[#allocation2 + $0xf0] sm:$0xff] }
 0x4e0   :  { %v1837_v6 = vmul.f32 %v4248_v38, %v1760_v54  ;;  %v1861_v41 = vrot.slane %v1860_v32, 1  ;;  %2009 = vbcast.lane.b32.xlu1 %v4239_v4, 264  ;;  %2005 = vbcast.lane.b32.xlu0 %v4239_v4, 256  ;;  %4664 = vst [vmem:[#allocation9_spill] sm:$0xff] %v4261_v26  ;;  %v4264_v38 = vld [vmem:[#allocation2 + $0xb8] sm:$0xff] }
 0x4e1   :  { %v1898_v12 = vrot.slane %v1897_v8, 2  ;;  %4665 = vst [vmem:[#allocation10_spill] sm:$0xff] %v4264_v38 }
 0x4e2   :  { %v1907_v51 = vsel %vm353_vm3, %v1837_v6, 0.0  ;;  %v1862_v2 = vadd.f32 %v1861_v41, %v1860_v32  ;;  %v1813_v0 = vpop.permute.xlu1 %1812  ;;  %v1931_v32 = vsel %vm353_vm3, %v1844_v48, 0.0  ;;  %v1943_v41 = vadd.f32 %v1942_v44, %v1941_v30 }
 0x4e3   :  { %v1899_v54 = vadd.f32 %v1898_v12, %v1897_v8  ;;  %v1908_v18 = vadd.f32 %v1907_v51, %v1906_v49  ;;  %v1779_v24 = vpop.permute.xlu0 %1778  ;;  %v1848_v59 = vmul.f32 %v4261_v26, %v1813_v0  ;;  %v4271_v8 = vld [vmem:[%s4573_s2] sm:$0xff]  ;;  %v1932_v48 = vadd.f32 %v1931_v32, %v1930_v60 }
 0x4e4   :  { %v1841_v11 = vmul.f32 %v4264_v38, %v1779_v24  ;;  %4666 = vst [vmem:[#allocation12_spill] sm:$0xff] %v4271_v8  ;;  %v1954_v5 = vadd.f32 %v4271_v8, %v1862_v2  ;;  %v4276_v38 = vld [vmem:[#allocation2 + $0xf8] sm:$0xff] }
 0x4e5   :  { %v1900_v62 = vrot.slane %v1899_v54, 1  ;;  %v1909_v25 = vrot.slane %v1908_v18, 4  ;;  %v1944_v50 = vsel %vm353_vm3, %v1848_v59, 0.0 }
 0x4e6   :  { %v1920_v6 = vsel %vm353_vm3, %v1841_v11, 0.0  ;;  %v1817_v51 = vpop.permute.xlu1 %1816  ;;  %v4283_v31 = vrot.slane %v1954_v5, %v3286_v13  ;;  %v1945_v10 = vadd.f32 %v1944_v50, %v1943_v41 }
 0x4e7   :  { %v1901_v49 = vadd.f32 %v1900_v62, %v1899_v54  ;;  %v1910_v12 = vadd.f32 %v1909_v25, %v1908_v18  ;;  %v1921_v24 = vadd.f32 %v1920_v6, %v1919_v33  ;;  %v1798_v0 = vpop.permute.xlu0 %1797  ;;  %v1849_v26 = vmul.f32 %v4276_v38, %v1817_v51 }
 0x4e8   :  { %v1845_v2 = vmul.f32 %v4279_v15, %v1798_v0  ;;  %1971 = vbcast.lane.b32.xlu1 %v4283_v31, 264  ;;  %1967 = vbcast.lane.b32.xlu0 %v4283_v31, 256 }
 0x4e9   :  { %v1911_v59 = vrot.slane %v1910_v12, 2  ;;  %v1922_v54 = vrot.slane %v1921_v24, 4  ;;  %v1957_v44 = vadd.f32 %v1901_v49, %v4650_v23  ;;  %v1946_v33 = vsel %vm353_vm3, %v1849_v26, 0.0 }
 0x4ea   :  { %v1933_v18 = vsel %vm353_vm3, %v1845_v2, 0.0  ;;  %v1947_v62 = vadd.f32 %v1946_v33, %v1945_v10 }
 0x4eb   :  { %v1912_v30 = vadd.f32 %v1911_v59, %v1910_v12  ;;  %v1923_v11 = vadd.f32 %v1922_v54, %v1921_v24  ;;  %v1934_v32 = vadd.f32 %v1933_v18, %v1932_v48  ;;  %v2022_v25 = vrot.slane %v1957_v44, %v3286_v13 }
 0x4ec   :  { %v1948_v50 = vrot.slane %v1947_v62, 4  ;;  %1994 = vbcast.lane.b32.xlu0 %v4201_v17, 272  ;;  %v2383_v54 = vrot.slane %v4190_v55, 7 }
 0x4ed   :  { %v1913_v60 = vrot.slane %v1912_v30, 1  ;;  %v1924_v6 = vrot.slane %v1923_v11, 2  ;;  %v1935_v41 = vrot.slane %v1934_v32, 4  ;;  %2024 = vbcast.lane.b32.xlu1 %v2022_v25, 256 }
 0x4ee   :  { %v1949_v51 = vadd.f32 %v1948_v50, %v1947_v62  ;;  %v2387_v62 = vrot.slane %v1957_v44, 5 }
 0x4ef   :  { %v1914_v26 = vadd.f32 %v1913_v60, %v1912_v30  ;;  %v1925_v49 = vadd.f32 %v1924_v6, %v1923_v11  ;;  %v1936_v0 = vadd.f32 %v1935_v41, %v1934_v32  ;;  %v2384_v11 = vsel %vm2267_vm4, %v2383_v54, %v1954_v5  ;;  %v4667_v54 = vld [vmem:[#allocation20_spill] sm:$0xff] }
 0x4f0   :  { %v1950_v23 = vrot.slane %v1949_v51, 2  ;;  %2028 = vbcast.lane.b32.xlu0 %v2022_v25, 264  ;;  %v2385_v32 = vrot.slane %v4226_v56, 6 }
 0x4f1   :  { %v1926_v2 = vrot.slane %v1925_v49, 1  ;;  %v1937_v8 = vrot.slane %v1936_v0, 2  ;;  %v1958_v12 = vadd.f32 %v1914_v26, %v3487_v14  ;;  %2013 = vbcast.lane.b32.xlu1 %v4239_v4, 272 }
 0x4f2   :  { %v1951_v48 = vadd.f32 %v1950_v23, %v1949_v51  ;;  %v2386_v55 = vsel %vm2270_vm5, %v2385_v32, %v2384_v11  ;;  %v4668_v11 = vld [vmem:[#allocation19_spill] sm:$0xff] }
 0x4f3   :  { %v1927_v24 = vadd.f32 %v1926_v2, %v1925_v49  ;;  %v1938_v59 = vadd.f32 %v1937_v8, %v1936_v0  ;;  %v2041_v10 = vrot.slane %v1958_v12, %v3286_v13  ;;  %v2389_v50 = vrot.slane %v1958_v12, 4 }
 0x4f4   :  { %v1952_v33 = vrot.slane %v1951_v48, 1  ;;  %v2388_v5 = vsel %vm2273_vm6, %v2387_v62, %v2386_v55 }
 0x4f5   :  { %v1939_v18 = vrot.slane %v1938_v59, 1  ;;  %v1959_v30 = vadd.f32 %v1927_v24, %v3492_v36  ;;  %2047 = vbcast.lane.b32.xlu1 %v2041_v10, 264  ;;  %2043 = vbcast.lane.b32.xlu0 %v2041_v10, 256  ;;  %v2390_v44 = vsel %vm2276_vm7, %v2389_v50, %v2388_v5  ;;  %v4318_v24 = vld [vmem:[%s4577_s6] ss:$0 sm:$0xff] }
 0x4f6   :  { %v1953_v60 = vadd.f32 %v1952_v33, %v1951_v48 }
 0x4f7   :  { %v1940_v6 = vadd.f32 %v1939_v18, %v1938_v59  ;;  %v2391_v23 = vrot.slane %v1959_v30, 3  ;;  %v2060_v49 = vrot.slane %v1959_v30, %v3286_v13 }
 0x4f8   :  { %v1961_v41 = vadd.f32 %v1953_v60, %v3504_v35 }
 0x4f9   :  { %v1960_v8 = vadd.f32 %v1940_v6, %v3500_v37  ;;  %1998 = vbcast.lane.b32.xlu1 %v4201_v17, 280  ;;  %1975 = vbcast.lane.b32.xlu0 %v4283_v31, 272  ;;  %v2392_v51 = vsel %vm2279_vm8, %v2391_v23, %v2390_v44 }
 0x4fa   :  { %v2395_v56 = vrot.slane %v1961_v41, 1  ;;  %v2098_v12 = vrot.slane %v1961_v41, %v3286_v13 }
 0x4fb   :  { %v2393_v26 = vrot.slane %v1960_v8, 2  ;;  %v2079_v17 = vrot.slane %v1960_v8, %v3286_v13 }
 0x4fd   :  { %v2394_v0 = vsel %vm2282_vm9, %v2393_v26, %v2392_v51  ;;  %2032 = vbcast.lane.b32.xlu0 %v2022_v25, 272  ;;  %2062 = vbcast.lane.b32.xlu1 %v2060_v49, 256 }
 0x4fe   :  { %v2396_v2 = vsel %vm2285_vm10, %v2395_v56, %v2394_v0 }
 0x4ff   :  { %3015 = vmatprep.mubr.msk.f32.mxu1 %vm353_vm3, %v2396_v2 }
 0x501   :  { %2066 = vbcast.lane.b32.xlu0 %v2060_v49, 264  ;;  %2017 = vbcast.lane.b32.xlu1 %v4239_v4, 280 }
 0x505   :  { %2051 = vbcast.lane.b32.xlu0 %v2041_v10, 272  ;;  %2081 = vbcast.lane.b32.xlu1 %v2079_v17, 256 }
 0x509   :  { %2085 = vbcast.lane.b32.xlu0 %v2079_v17, 264  ;;  %1979 = vbcast.lane.b32.xlu1 %v4283_v31, 280 }
 0x50d   :  { %2036 = vbcast.lane.b32.xlu0 %v2022_v25, 280  ;;  %2070 = vbcast.lane.b32.xlu1 %v2060_v49, 272 }
 0x511   :  { %2100 = vbcast.lane.b32.xlu0 %v2098_v12, 256  ;;  %2104 = vbcast.lane.b32.xlu1 %v2098_v12, 264 }
 0x515   :  { %2055 = vbcast.lane.b32.xlu0 %v2041_v10, 280  ;;  %2089 = vbcast.lane.b32.xlu1 %v2079_v17, 272  ;;  %v4327_v10 = vld [vmem:[%s4579_s8] ss:$0 sm:$0xff] }
 0x516   :  { %v4331_v33 = vadd.f32 %v4327_v10, %v4667_v54  ;;  %v4335_v18 = vadd.f32 %v4116_v46, %v4327_v10  ;;  %v4341_v62 = vadd.f32 %v4668_v11, %v4327_v10  ;;  %v4345_v32 = vadd.f32 %v4327_v10, %v4118_v7 }
 0x518   :  { %v2712_v30 = vsel %vm2711_vm12, %v4331_v33, -inf  ;;  %v2721_v60 = vsel %vm2711_vm12, %v4335_v18, -inf  ;;  %v2715_v46 = vsel %vm2711_vm12, %v4341_v62, -inf  ;;  %v2718_v6 = vsel %vm2711_vm12, %v4345_v32, -inf }
 0x519   :  { %2074 = vbcast.lane.b32.xlu0 %v2060_v49, 280  ;;  %2108 = vbcast.lane.b32.xlu1 %v2098_v12, 272 }
 0x51d   :  { %2093 = vbcast.lane.b32.xlu0 %v2079_v17, 280  ;;  %2112 = vbcast.lane.b32.xlu1 %v2098_v12, 280 }
 0x528   :  { %v3014_v4 = vpop.f32.mrb[4].mxu1 }
 0x529   :  { %v2539_v31 = vadd.f32 %v4318_v24, %v3014_v4  ;;  %v2533_v25 = vpop.f32.mrb[5].mxu1 }
 0x52a   :  { %v2534_v48 = vadd.f32 %v4318_v24, %v2533_v25 }
 0x52b   :  { %v2557_v59 = vmax.f32 %v2539_v31, 0.0 }
 0x52c   :  { %v2556_v13 = vmax.f32 %v2534_v48, 0.0 }
 0x52e   :  { %3048 = vmatprep.mubr.msk.f32.mxu0 %vm2579_vm11, %v2556_v13 }
 0x52f   :  { %3049 = vmatmul.mubr.msk.f32.gmra.mrb[6].mxu0 %vm2579_vm11, %v2557_v59 }
 0x53c   :  { %2713 = vmax.xlane.f32.xlu0 %v2712_v30 }
 0x540   :  { %2722 = vmax.xlane.f32.xlu0 %v2721_v60 }
 0x541   :  { %2716 = vmax.xlane.f32.xlu1 %v2715_v46 }
 0x544   :  { %2719 = vmax.xlane.f32.xlu0 %v2718_v6 }
 0x54a   :  { %v1991_v50 = vpop.permute.xlu1 %1990  ;;  %v1987_v23 = vpop.permute.xlu0 %1986 }
 0x54b   :  { %v2119_v17 = vmul.f32 %v4120_v22, %v1991_v50  ;;  %v2118_v12 = vmul.f32 %v4123_v1, %v1987_v23 }
 0x54d   :  { %v2160_v48 = vsel %vm353_vm3, %v2119_v17, 0.0  ;;  %v2159_v13 = vsel %vm353_vm3, %v2118_v12, 0.0 }
 0x54e   :  { %v2161_v6 = vadd.f32 %v2160_v48, %v2159_v13 }
 0x552   :  { %v2010_v8 = vpop.permute.xlu1 %2009  ;;  %v2006_v41 = vpop.permute.xlu0 %2005 }
 0x553   :  { %v2123_v54 = vmul.f32 %v4136_v42, %v2010_v8  ;;  %v2122_v30 = vmul.f32 %v4139_v61, %v2006_v41 }
 0x555   :  { %v2172_v42 = vsel %vm353_vm3, %v2122_v30, 0.0 }
 0x55a   :  { %v1972_v55 = vpop.permute.xlu1 %1971  ;;  %v1968_v5 = vpop.permute.xlu0 %1967 }
 0x55b   :  { %v2115_v22 = vmul.f32 %v4154_v47, %v1972_v55  ;;  %v2114_v1 = vmul.f32 %v4157_v39, %v1968_v5 }
 0x55d   :  { %v2147_v47 = vsel %vm353_vm3, %v2115_v22, 0.0  ;;  %v2146_v39 = vsel %vm353_vm3, %v2114_v1, 0.0 }
 0x55e   :  { %v1995_v44 = vpop.permute.xlu0 %1994  ;;  %v2148_v17 = vadd.f32 %v2147_v47, %v2146_v39 }
 0x55f   :  { %v2025_v7 = vpop.permute.xlu1 %2024  ;;  %v2120_v25 = vmul.f32 %v4126_v28, %v1995_v44 }
 0x560   :  { %v2126_v44 = vmul.f32 %v4174_v29, %v2025_v7 }
 0x561   :  { %v2162_v46 = vsel %vm353_vm3, %v2120_v25, 0.0 }
 0x562   :  { %v2029_v56 = vpop.permute.xlu0 %2028  ;;  %v2163_v61 = vadd.f32 %v2162_v46, %v2161_v6  ;;  %v2185_v29 = vsel %vm353_vm3, %v2126_v44, 0.0 }
 0x563   :  { %v2014_v26 = vpop.permute.xlu1 %2013  ;;  %v2127_v55 = vmul.f32 %v4171_v19, %v2029_v56 }
 0x564   :  { %v2124_v28 = vmul.f32 %v4145_v58, %v2014_v26 }
 0x565   :  { %v2186_v48 = vsel %vm353_vm3, %v2127_v55, 0.0 }
 0x567   :  { %v2048_v49 = vpop.permute.xlu1 %2047  ;;  %v2044_v51 = vpop.permute.xlu0 %2043 }
 0x568   :  { %v2131_v7 = vmul.f32 %v4185_v9, %v2048_v49  ;;  %v2130_v30 = vmul.f32 %v4193_v52, %v2044_v51 }
 0x56b   :  { %v1999_v0 = vpop.permute.xlu1 %1998  ;;  %v1976_v2 = vpop.permute.xlu0 %1975 }
 0x56c   :  { %v2121_v59 = vmul.f32 %v4142_v3, %v1999_v0  ;;  %v2116_v23 = vmul.f32 %v4163_v21, %v1976_v2  ;;  %v2173_v3 = vsel %vm353_vm3, %v2123_v54, 0.0  ;;  %v2175_v21 = vsel %vm353_vm3, %v2124_v28, 0.0 }
 0x56d   :  { %v2174_v2 = vadd.f32 %v2173_v3, %v2172_v42  ;;  %v2198_v3 = vsel %vm353_vm3, %v2130_v30, 0.0 }
 0x56e   :  { %v2164_v50 = vsel %vm353_vm3, %v2121_v59, 0.0  ;;  %v2149_v26 = vsel %vm353_vm3, %v2116_v23, 0.0  ;;  %v2199_v23 = vsel %vm353_vm3, %v2131_v7, 0.0 }
 0x56f   :  { %v2063_v4 = vpop.permute.xlu1 %2062  ;;  %v2033_v31 = vpop.permute.xlu0 %2032  ;;  %v2165_v58 = vadd.f32 %v2164_v50, %v2163_v61  ;;  %v2150_v59 = vadd.f32 %v2149_v26, %v2148_v17 }
 0x570   :  { %v2128_v0 = vmul.f32 %v4178_v16, %v2033_v31  ;;  %v2187_v31 = vadd.f32 %v2186_v48, %v2185_v29  ;;  %v2134_v42 = vmul.f32 %v4213_v57, %v2063_v4 }
 0x571   :  { %v2166_v56 = vrot.slane %v2165_v58, 4 }
 0x572   :  { %v2188_v54 = vsel %vm353_vm3, %v2128_v0, 0.0 }
 0x573   :  { %v2018_v11 = vpop.permute.xlu1 %2017  ;;  %v2067_v60 = vpop.permute.xlu0 %2066  ;;  %v2167_v6 = vadd.f32 %v2166_v56, %v2165_v58  ;;  %v2189_v28 = vadd.f32 %v2188_v54, %v2187_v31  ;;  %v2200_v58 = vadd.f32 %v2199_v23, %v2198_v3 }
 0x574   :  { %v2125_v5 = vmul.f32 %v4160_v20, %v2018_v11  ;;  %v2176_v20 = vadd.f32 %v2175_v21, %v2174_v2  ;;  %v2135_v39 = vmul.f32 %v4203_v45, %v2067_v60  ;;  %v4669_v60 = vld [vmem:[#allocation18_spill] sm:$0xff] }
 0x576   :  { %v2177_v13 = vsel %vm353_vm3, %v2125_v5, 0.0  ;;  %v2212_v2 = vsel %vm353_vm3, %v2135_v39, 0.0 }
 0x577   :  { %v2082_v8 = vpop.permute.xlu1 %2081  ;;  %v2052_v41 = vpop.permute.xlu0 %2051  ;;  %v2178_v11 = vadd.f32 %v2177_v13, %v2176_v20 }
 0x578   :  { %v2132_v9 = vmul.f32 %v4217_v63, %v2052_v41  ;;  %v2211_v41 = vsel %vm353_vm3, %v2134_v42, 0.0 }
 0x579   :  { %v2179_v52 = vrot.slane %v2178_v11, 4 }
 0x57a   :  { %v2201_v44 = vsel %vm353_vm3, %v2132_v9, 0.0 }
 0x57b   :  { %v1980_v12 = vpop.permute.xlu1 %1979  ;;  %v2086_v25 = vpop.permute.xlu0 %2085  ;;  %v2180_v21 = vadd.f32 %v2179_v52, %v2178_v11 }
 0x57c   :  { %v2117_v19 = vmul.f32 %v4182_v34, %v1980_v12  ;;  %v2139_v26 = vmul.f32 %v4234_v53, %v2086_v25  ;;  %v4670_v12 = vld [vmem:[#allocation7_spill] sm:$0xff]  ;;  %v4672_v53 = vld [vmem:[#allocation8_spill] sm:$0xff] }
 0x57d   :  { %v2181_v54 = vrot.slane %v2180_v21, 2 }
 0x57e   :  { %v2151_v16 = vsel %vm353_vm3, %v2117_v19, 0.0  ;;  %v4671_v19 = vld [vmem:[#allocation15_spill] sm:$0xff] }
 0x57f   :  { %v2152_v22 = vadd.f32 %v2151_v16, %v2150_v59  ;;  %v2071_v1 = vpop.permute.xlu1 %2070  ;;  %v2037_v46 = vpop.permute.xlu0 %2036  ;;  %v2138_v20 = vmul.f32 %v4671_v19, %v2082_v8  ;;  %v2213_v16 = vadd.f32 %v2212_v2, %v2211_v41 }
 0x580   :  { %v2129_v34 = vmul.f32 %v4206_v40, %v2037_v46  ;;  %v2168_v40 = vrot.slane %v2167_v6, 2  ;;  %v2136_v63 = vmul.f32 %v4222_v27, %v2071_v1  ;;  %v2202_v27 = vadd.f32 %v2201_v44, %v2200_v58  ;;  %v4673_v1 = vld [vmem:[#allocation9_spill] sm:$0xff] }
 0x581   :  { %v2153_v50 = vrot.slane %v2152_v22, 4 }
 0x582   :  { %v2190_v49 = vsel %vm353_vm3, %v2129_v34, 0.0  ;;  %v2169_v13 = vadd.f32 %v2168_v40, %v2167_v6  ;;  %v2214_v59 = vsel %vm353_vm3, %v2136_v63, 0.0  ;;  %v4674_v34 = vld [vmem:[#allocation10_spill] sm:$0xff] }
 0x583   :  { %v2191_v51 = vadd.f32 %v2190_v49, %v2189_v28  ;;  %v2105_v61 = vpop.permute.xlu1 %2104  ;;  %v2101_v47 = vpop.permute.xlu0 %2100  ;;  %v2154_v55 = vadd.f32 %v2153_v50, %v2152_v22  ;;  %v2224_v28 = vsel %vm353_vm3, %v2138_v20, 0.0  ;;  %v2215_v23 = vadd.f32 %v2214_v59, %v2213_v16  ;;  %v4675_v16 = vld [vmem:[#allocation5_spill] sm:$0xff] }
 0x584   :  { %v2143_v45 = vmul.f32 %v4242_v43, %v2105_v61  ;;  %v2142_v17 = vmul.f32 %v4669_v60, %v2101_v47  ;;  %v2225_v43 = vsel %vm353_vm3, %v2139_v26, 0.0  ;;  %v2170_v58 = vrot.slane %v2169_v13, 1 }
 0x585   :  { %v2192_v5 = vrot.slane %v2191_v51, 4  ;;  %v2155_v56 = vrot.slane %v2154_v55, 2  ;;  %v2226_v61 = vadd.f32 %v2225_v43, %v2224_v28 }
 0x586   :  { %v2238_v22 = vsel %vm353_vm3, %v2143_v45, 0.0  ;;  %v2237_v8 = vsel %vm353_vm3, %v2142_v17, 0.0  ;;  %v2171_v19 = vadd.f32 %v2170_v58, %v2169_v13 }
 0x587   :  { %v2193_v57 = vadd.f32 %v2192_v5, %v2191_v51  ;;  %v2090_v4 = vpop.permute.xlu1 %2089  ;;  %v2056_v0 = vpop.permute.xlu0 %2055  ;;  %v2156_v50 = vadd.f32 %v2155_v56, %v2154_v55  ;;  %v2182_v51 = vadd.f32 %v2181_v54, %v2180_v21  ;;  %v2239_v47 = vadd.f32 %v2238_v22, %v2237_v8  ;;  %v4676_v22 = vld [vmem:[#allocation12_spill] sm:$0xff] }
 0x588   :  { %v2133_v48 = vmul.f32 %v4670_v12, %v2056_v0  ;;  %v2140_v25 = vmul.f32 %v4672_v53, %v2090_v4  ;;  %v2251_v43 = vadd.f32 %v2171_v19, %v4675_v16 }
 0x589   :  { %v2194_v29 = vrot.slane %v2193_v57, 2  ;;  %v2157_v41 = vrot.slane %v2156_v50, 1  ;;  %v2183_v60 = vrot.slane %v2182_v51, 1 }
 0x58a   :  { %v2203_v7 = vsel %vm353_vm3, %v2133_v48, 0.0  ;;  %v2227_v3 = vsel %vm353_vm3, %v2140_v25, 0.0 }
 0x58b   :  { %v2204_v31 = vadd.f32 %v2203_v7, %v2202_v27  ;;  %v2109_v30 = vpop.permute.xlu1 %2108  ;;  %v2075_v11 = vpop.permute.xlu0 %2074  ;;  %v2195_v49 = vadd.f32 %v2194_v29, %v2193_v57  ;;  %v2228_v26 = vadd.f32 %v2227_v3, %v2226_v61  ;;  %v2184_v53 = vadd.f32 %v2183_v60, %v2182_v51 }
 0x58c   :  { %v2144_v46 = vmul.f32 %v4673_v1, %v2109_v30  ;;  %v2137_v6 = vmul.f32 %v4674_v34, %v2075_v11  ;;  %v4677_v1 = vld [vmem:[#allocation11_spill] sm:$0xff]  ;;  %v4678_v34 = vld [vmem:[#allocation6_spill] sm:$0xff] }
 0x58d   :  { %v2205_v9 = vrot.slane %v2204_v31, 4  ;;  %v2196_v0 = vrot.slane %v2195_v49, 1 }
 0x58e   :  { %v2240_v42 = vsel %vm353_vm3, %v2144_v46, 0.0  ;;  %v2216_v52 = vsel %vm353_vm3, %v2137_v6, 0.0  ;;  %v2252_v6 = vadd.f32 %v2184_v53, %v4678_v34 }
 0x58f   :  { %v2206_v39 = vadd.f32 %v2205_v9, %v2204_v31  ;;  %v2113_v40 = vpop.permute.xlu1 %2112  ;;  %v2094_v5 = vpop.permute.xlu0 %2093  ;;  %v2217_v44 = vadd.f32 %v2216_v52, %v2215_v23  ;;  %v2241_v4 = vadd.f32 %v2240_v42, %v2239_v47  ;;  %v2197_v59 = vadd.f32 %v2196_v0, %v2195_v49 }
 0x590   :  { %v2145_v63 = vmul.f32 %v4276_v38, %v2113_v40  ;;  %v2141_v55 = vmul.f32 %v4279_v15, %v2094_v5  ;;  %v2158_v15 = vadd.f32 %v2157_v41, %v2156_v50  ;;  %v2405_v9 = vrot.slane %v2251_v43, 7 }
 0x591   :  { %v2207_v57 = vrot.slane %v2206_v39, 2  ;;  %v2218_v2 = vrot.slane %v2217_v44, 4  ;;  %v2253_v13 = vadd.f32 %v2197_v59, %v4677_v1  ;;  %v2407_v47 = vrot.slane %v2252_v6, 6 }
 0x592   :  { %v2242_v45 = vsel %vm353_vm3, %v2145_v63, 0.0  ;;  %v2229_v21 = vsel %vm353_vm3, %v2141_v55, 0.0  ;;  %v2250_v8 = vadd.f32 %v4676_v22, %v2158_v15 }
 0x593   :  { %v2208_v17 = vadd.f32 %v2207_v57, %v2206_v39  ;;  %v2243_v12 = vadd.f32 %v2242_v45, %v2241_v4  ;;  %v2230_v48 = vadd.f32 %v2229_v21, %v2228_v26  ;;  %v2219_v20 = vadd.f32 %v2218_v2, %v2217_v44 }
 0x594   :  { %v2406_v52 = vsel %vm2267_vm4, %v2405_v9, %v2250_v8  ;;  %v2409_v51 = vrot.slane %v2253_v13, 5 }
 0x595   :  { %v2209_v27 = vrot.slane %v2208_v17, 1  ;;  %v2244_v38 = vrot.slane %v2243_v12, 4  ;;  %v2231_v56 = vrot.slane %v2230_v48, 4  ;;  %v2220_v29 = vrot.slane %v2219_v20, 2 }
 0x596   :  { %v2408_v63 = vsel %vm2270_vm5, %v2407_v47, %v2406_v52 }
 0x597   :  { %v2210_v25 = vadd.f32 %v2209_v27, %v2208_v17  ;;  %v2245_v7 = vadd.f32 %v2244_v38, %v2243_v12  ;;  %v2232_v54 = vadd.f32 %v2231_v56, %v2230_v48  ;;  %v2221_v31 = vadd.f32 %v2220_v29, %v2219_v20 }
 0x598   :  { %v2410_v55 = vsel %vm2273_vm6, %v2409_v51, %v2408_v63 }
 0x599   :  { %v2246_v30 = vrot.slane %v2245_v7, 2  ;;  %v2233_v11 = vrot.slane %v2232_v54, 2  ;;  %v2222_v46 = vrot.slane %v2221_v31, 1  ;;  %v2254_v28 = vadd.f32 %v2210_v25, %v3487_v14 }
 0x59b   :  { %v2247_v50 = vadd.f32 %v2246_v30, %v2245_v7  ;;  %v2234_v23 = vadd.f32 %v2233_v11, %v2232_v54  ;;  %v2223_v49 = vadd.f32 %v2222_v46, %v2221_v31  ;;  %v2411_v39 = vrot.slane %v2254_v28, 4 }
 0x59d   :  { %v2248_v3 = vrot.slane %v2247_v50, 1  ;;  %v2235_v42 = vrot.slane %v2234_v23, 1  ;;  %v2255_v61 = vadd.f32 %v2223_v49, %v3492_v36  ;;  %v2412_v41 = vsel %vm2276_vm7, %v2411_v39, %v2410_v55 }
 0x59f   :  { %v2249_v40 = vadd.f32 %v2248_v3, %v2247_v50  ;;  %v2236_v5 = vadd.f32 %v2235_v42, %v2234_v23  ;;  %v2413_v58 = vrot.slane %v2255_v61, 3 }
 0x5a1   :  { %v2256_v44 = vadd.f32 %v2236_v5, %v3500_v37  ;;  %v2257_v14 = vadd.f32 %v2249_v40, %v3504_v35  ;;  %v2414_v4 = vsel %vm2279_vm8, %v2413_v58, %v2412_v41  ;;  %v4679_v35 = vlaneseq }
 0x5a3   :  { %v2415_v26 = vrot.slane %v2256_v44, 2  ;;  %v2417_v57 = vrot.slane %v2257_v14, 1  ;;  %v4436_v45 = vand.u32 127, %v4679_v35 }
 0x5a5   :  { %v2416_v36 = vsel %vm2282_vm9, %v2415_v26, %v2414_v4 }
 0x5a6   :  { %v2418_v0 = vsel %vm2285_vm10, %v2417_v57, %v2416_v36 }
 0x5a7   :  { %3016 = vmatmul.mubr.msk.f32.gmra.mrb[6].mxu1 %vm353_vm3, %v2418_v0  ;;  %vm2872_vm3 = vcmask 7168  }
 0x5c9   :  { %v2714_v2 = vpop.xlane.xlu0 %2713 }
 0x5ca   :  { %vm2736_vm13 = vcmp.eq.f32.partialorder %v4331_v33, %v2714_v2 }
 0x5cb   :  { %v2744_v60 = vsel %vm2736_vm13, %v4436_v45, 6 }
 0x5cc   :  { %v2752_v17 = vsel %vm2711_vm12, %v2744_v60, 2147483647 }
 0x5cd   :  { %v4433_v37 = vpop.xlane.xlu0 %2722  ;;  %v2754_v38 = vshra.s32 %v2752_v17, 16  ;;  %v2753_v34 = vand.u32 65535, %v2752_v17 }
 0x5ce   :  { %v2717_v11 = vpop.xlane.xlu1 %2716  ;;  %vm2739_vm5 = vcmp.eq.f32.partialorder %v4335_v18, %v4433_v37 }
 0x5cf   :  { %v2756_v53 = vcvt.s32.f32 %v2754_v38  ;;  %v2755_v50 = vcvt.s32.f32 %v2753_v34  ;;  %vm2737_vm4 = vcmp.eq.f32.partialorder %v4341_v62, %v2717_v11  ;;  %v2747_v4 = vsel %vm2739_vm5, %v4436_v45, 6 }
 0x5d0   :  { %v2745_v41 = vsel %vm2737_vm4, %v4436_v45, 6  ;;  %v2797_v60 = vsel %vm2711_vm12, %v2747_v4, 2147483647 }
 0x5d1   :  { %v2720_v21 = vpop.xlane.xlu0 %2719  ;;  %v2767_v57 = vsel %vm2711_vm12, %v2745_v41, 2147483647 }
 0x5d2   :  { %vm2738_vm14 = vcmp.eq.f32.partialorder %v4345_v32, %v2720_v21  ;;  %v2769_v35 = vshra.s32 %v2767_v57, 16 }
 0x5d3   :  { %v2746_v48 = vsel %vm2738_vm14, %v4436_v45, 6 }
 0x5d4   :  { %v2782_v15 = vsel %vm2711_vm12, %v2746_v48, 2147483647  ;;  %v2799_v48 = vshra.s32 %v2797_v60, 16 }
 0x5d5   :  { %v2784_v29 = vshra.s32 %v2782_v15, 16 }
 0x5d7   :  { %v2786_v25 = vcvt.s32.f32 %v2784_v29 }
 0x602   :  { %v3050_v12 = vpop.f32.mrb[6].mxu0 }
 0x603   :  { %v4444_v19 = vadd.f32 %v3050_v12, %v4327_v10  ;;  %v2690_v20 = vpop.f32.mrb[7].mxu0 }
 0x604   :  { %v4447_v27 = vadd.f32 %v4327_v10, %v2690_v20  ;;  %v2771_v20 = vcvt.s32.f32 %v2769_v35 }
 0x605   :  { %v2727_v56 = vsel %vm2711_vm12, %v4444_v19, -inf }
 0x606   :  { %2728 = vmax.xlane.f32.xlu0 %v2727_v56  ;;  %v2724_v59 = vsel %vm2711_vm12, %v4447_v27, -inf }
 0x607   :  { %2725 = vmax.xlane.f32.xlu1 %v2724_v59  ;;  %v2768_v59 = vand.u32 65535, %v2767_v57 }
 0x60b   :  { %2757 = vmin.xlane.f32.xlu1 %v2756_v53 }
 0x60f   :  { %2787 = vmin.xlane.f32.xlu1 %v2786_v25 }
 0x67a   :  { %v3017_v7 = vpop.f32.mrb[6].mxu1 }
 0x67b   :  { %v2549_v54 = vadd.f32 %v4318_v24, %v3017_v7  ;;  %v2543_v16 = vpop.f32.mrb[7].mxu1  ;;  %v2798_v7 = vand.u32 65535, %v2797_v60 }
 0x67c   :  { %v2544_v43 = vadd.f32 %v4318_v24, %v2543_v16  ;;  %v2783_v24 = vand.u32 65535, %v2782_v15  ;;  %v2801_v15 = vcvt.s32.f32 %v2799_v48 }
 0x67d   :  { %v2559_v30 = vmax.f32 %v2549_v54, 0.0 }
 0x67e   :  { %v2558_v31 = vmax.f32 %v2544_v43, 0.0  ;;  %v2785_v9 = vcvt.s32.f32 %v2783_v24  ;;  %v2770_v43 = vcvt.s32.f32 %v2768_v59 }
 0x680   :  { %3051 = vmatprep.mubr.msk.f32.mxu1 %vm2579_vm11, %v2558_v31 }
 0x681   :  { %3052 = vmatmul.mubr.msk.f32.vlgmr.msra.gmra.mrb[8].mxu1 %vm2579_vm11, %v2559_v30 }
 0x693   :  { %v2729_v26 = vpop.xlane.xlu0 %2728 }
 0x694   :  { %v2726_v22 = vpop.xlane.xlu1 %2725  ;;  %vm2741_vm6 = vcmp.eq.f32.partialorder %v4444_v19, %v2729_v26 }
 0x695   :  { %vm2740_vm15 = vcmp.eq.f32.partialorder %v4447_v27, %v2726_v22  ;;  %v2749_v17 = vsel %vm2741_vm6, %v4436_v45, 6 }
 0x696   :  { %v2748_v8 = vsel %vm2740_vm15, %v4436_v45, 6  ;;  %v2827_v38 = vsel %vm2711_vm12, %v2749_v17, 2147483647 }
 0x697   :  { %v2812_v1 = vsel %vm2711_vm12, %v2748_v8, 2147483647  ;;  %v2829_v56 = vshra.s32 %v2827_v38, 16  ;;  %v2828_v8 = vand.u32 65535, %v2827_v38 }
 0x698   :  { %v2814_v13 = vshra.s32 %v2812_v1, 16  ;;  %v2758_v46 = vpop.xlane.xlu1 %2757  ;;  %v2813_v3 = vand.u32 65535, %v2812_v1 }
 0x699   :  { %vm2759_vm0 = vcmp.eq.f32.partialorder %v2756_v53, %v2758_v46  ;;  %v2764_v51 = vcvt.f32.s32 %v2758_v46  ;;  %v2830_v24 = vcvt.s32.f32 %v2828_v8 }
 0x69a   :  { %v2816_v6 = vcvt.s32.f32 %v2814_v13  ;;  %v2760_v23 = vsel %vm2759_vm0, %v2755_v50, inf  ;;  %v2815_v52 = vcvt.s32.f32 %v2813_v3  ;;  %v2800_v13 = vcvt.s32.f32 %v2798_v7 }
 0x69b   :  { %v2765_v39 = vshll.u32 %v2764_v51, 16 }
 0x69c   :  { %2817 = vmin.xlane.f32.xlu1 %v2816_v6  ;;  %v2788_v28 = vpop.xlane.xlu1 %2787 }
 0x69d   :  { %vm2789_vm1 = vcmp.eq.f32.partialorder %v2786_v25, %v2788_v28  ;;  %v2794_v40 = vcvt.f32.s32 %v2788_v28 }
 0x69e   :  { %v2790_v49 = vsel %vm2789_vm1, %v2785_v9, inf }
 0x69f   :  { %v2795_v14 = vshll.u32 %v2794_v40, 16 }
 0x6a0   :  { %2761 = vmin.xlane.f32.xlu1 %v2760_v23 }
 0x6a4   :  { %2791 = vmin.xlane.f32.xlu1 %v2790_v49 }
 0x729   :  { %v4461_v42 = vpop.xlane.xlu1 %2817 }
 0x72a   :  { %vm2819_vm2 = vcmp.eq.f32.partialorder %v2816_v6, %v4461_v42 }
 0x72b   :  { %v2820_v61 = vsel %vm2819_vm2, %v2815_v52, inf }
 0x72d   :  { %v2762_v47 = vpop.xlane.xlu1 %2761 }
 0x72e   :  { %v2763_v5 = vcvt.f32.s32 %v2762_v47 }
 0x730   :  { %v2766_v58 = vadd.s32 %v2765_v39, %v2763_v5 }
 0x731   :  { %v2792_v44 = vpop.xlane.xlu1 %2791 }
 0x732   :  { %2873 = vst.msk [vmem:[%s4580_s9] sm:$0xff] %vm2872_vm3, %v2766_v58  ;;  %v2793_v63 = vcvt.f32.s32 %v2792_v44 }
 0x734   :  { %v2796_v55 = vadd.s32 %v2795_v14, %v2793_v63 }
 0x736   :  { %2875 = vst.msk [vmem:[%s4580_s9 + $0x10] sm:$0xff] %vm2872_vm3, %v2796_v55 }
 0x754   :  { %v3053_v36 = vpop.f32.mrb[8].mxu1 }
 0x755   :  { %v4480_v0 = vadd.f32 %v3053_v36, %v4327_v10  ;;  %v2700_v2 = vpop.f32.mrb[9].mxu1 }
 0x756   :  { %v2701_v21 = vadd.f32 %v4327_v10, %v2700_v2  ;;  %v2831_v10 = vcvt.s32.f32 %v2829_v56 }
 0x757   :  { %v2733_v37 = vsel %vm2711_vm12, %v4480_v0, -inf }
 0x758   :  { %2734 = vmax.xlane.f32.xlu0 %v2733_v37  ;;  %v2730_v12 = vsel %vm2711_vm12, %v2701_v21, -inf }
 0x759   :  { %2731 = vmax.xlane.f32.xlu1 %v2730_v12 }
 0x75c   :  { %2772 = vmin.xlane.f32.xlu0 %v2771_v20 }
 0x760   :  { %2802 = vmin.xlane.f32.xlu0 %v2801_v15 }
 0x764   :  { %2832 = vmin.xlane.f32.xlu0 %v2831_v10 }
 0x76a   :  { %2889 = vrot.lane.b32.xlu1 %v4331_v33, %s3201_s14 }
 0x78e   :  { %2821 = vmin.xlane.f32.xlu1 %v2820_v61 }
 0x79f   :  { %2893 = vrot.lane.b32.xlu1 %v4345_v32, %s3201_s14 }
 0x7e5   :  { %v2735_v29 = vpop.xlane.xlu0 %2734 }
 0x7e6   :  { %v2732_v53 = vpop.xlane.xlu1 %2731  ;;  %vm2743_vm8 = vcmp.eq.f32.partialorder %v4480_v0, %v2735_v29 }
 0x7e7   :  { %vm2742_vm7 = vcmp.eq.f32.partialorder %v2701_v21, %v2732_v53  ;;  %v2751_v11 = vsel %vm2743_vm8, %v4436_v45, 6 }
 0x7e8   :  { %v2750_v25 = vsel %vm2742_vm7, %v4436_v45, 6  ;;  %v2857_v46 = vsel %vm2711_vm12, %v2751_v11, 2147483647  ;;  %v2824_v45 = vcvt.f32.s32 %v4461_v42 }
 0x7e9   :  { %v2842_v54 = vsel %vm2711_vm12, %v2750_v25, 2147483647  ;;  %v2773_v16 = vpop.xlane.xlu0 %2772  ;;  %v2859_v28 = vshra.s32 %v2857_v46, 16  ;;  %v2858_v26 = vand.u32 65535, %v2857_v46 }
 0x7ea   :  { %v2844_v31 = vshra.s32 %v2842_v54, 16  ;;  %vm2774_vm9 = vcmp.eq.f32.partialorder %v2771_v20, %v2773_v16  ;;  %v2890_v30 = vpop.permute.xlu1 %2889  ;;  %v2825_v49 = vshll.u32 %v2824_v45, 16 }
 0x7eb   :  { %2913 = vst.msk [vmem:[%s4581_s10] sm:$0xff] %vm2872_vm3, %v2890_v30  ;;  %v2775_v32 = vsel %vm2774_vm9, %v2770_v43, inf  ;;  %v2861_v23 = vcvt.s32.f32 %v2859_v28  ;;  %v2860_v60 = vcvt.s32.f32 %v2858_v26 }
 0x7ec   :  { %2776 = vmin.xlane.f32.xlu0 %v2775_v32  ;;  %v2846_v22 = vcvt.s32.f32 %v2844_v31 }
 0x7ed   :  { %v2803_v1 = vpop.xlane.xlu0 %2802 }
 0x7ee   :  { %vm2804_vm10 = vcmp.eq.f32.partialorder %v2801_v15, %v2803_v1  ;;  %2847 = vmin.xlane.f32.xlu1 %v2846_v22  ;;  %v2809_v42 = vcvt.f32.s32 %v2803_v1 }
 0x7ef   :  { %v2805_v34 = vsel %vm2804_vm10, %v2800_v13, inf }
 0x7f0   :  { %2806 = vmin.xlane.f32.xlu0 %v2805_v34  ;;  %v2810_v44 = vshll.u32 %v2809_v42, 16 }
 0x7f1   :  { %v2833_v6 = vpop.xlane.xlu0 %2832 }
 0x7f2   :  { %vm2834_vm11 = vcmp.eq.f32.partialorder %v2831_v10, %v2833_v6  ;;  %v2839_v14 = vcvt.f32.s32 %v2833_v6 }
 0x7f3   :  { %v2835_v50 = vsel %vm2834_vm11, %v2830_v24, inf }
 0x7f4   :  { %2836 = vmin.xlane.f32.xlu0 %v2835_v50  ;;  %v2840_v4 = vshll.u32 %v2839_v14, 16 }
 0x7f8   :  { %2862 = vmin.xlane.f32.xlu0 %v2861_v23 }
 0x7ff   :  { %2895 = vrot.lane.b32.xlu1 %v4335_v18, %s3201_s14  ;;  %v2779_v18 = vcvt.f32.s32 %v2773_v16 }
 0x803   :  { %2899 = vrot.lane.b32.xlu1 %v4444_v19, %s3201_s14 }
 0x80e   :  { %2891 = vrot.lane.b32.xlu0 %v4341_v62, %s3201_s14  ;;  %v2843_v62 = vand.u32 65535, %v2842_v54 }
 0x810   :  { %v2845_v39 = vcvt.s32.f32 %v2843_v62 }
 0x812   :  { %2897 = vrot.lane.b32.xlu0 %v4447_v27, %s3201_s14  ;;  %v2780_v27 = vshll.u32 %v2779_v18, 16 }
 0x816   :  { %2901 = vrot.lane.b32.xlu0 %v2701_v21, %s3201_s14 }
 0x81b   :  { %v2822_v9 = vpop.xlane.xlu1 %2821 }
 0x81c   :  { %v2823_v3 = vcvt.f32.s32 %v2822_v9 }
 0x81e   :  { %v2826_v52 = vadd.s32 %v2825_v49, %v2823_v3 }
 0x81f   :  { %v2894_v51 = vpop.permute.xlu1 %2893 }
 0x820   :  { %2877 = vst.msk [vmem:[%s4580_s9 + $0x20] sm:$0xff] %vm2872_vm3, %v2826_v52  ;;  %2915 = vst.msk [vmem:[%s4581_s10 + $0x10] sm:$0xff] %vm2872_vm3, %v2894_v51 }
 0x879   :  { %v2777_v19 = vpop.xlane.xlu0 %2776 }
 0x87a   :  { %v2778_v61 = vcvt.f32.s32 %v2777_v19 }
 0x87b   :  { %v2848_v47 = vpop.xlane.xlu1 %2847 }
 0x87c   :  { %v2781_v40 = vadd.s32 %v2780_v27, %v2778_v61  ;;  %vm2849_vm12 = vcmp.eq.f32.partialorder %v2846_v22, %v2848_v47  ;;  %v2854_v20 = vcvt.f32.s32 %v2848_v47 }
 0x87d   :  { %v2807_v5 = vpop.xlane.xlu0 %2806  ;;  %v2850_v58 = vsel %vm2849_vm12, %v2845_v39, inf }
 0x87e   :  { %2874 = vst.msk [vmem:[%s4580_s9 + $0x8] sm:$0xff] %vm2872_vm3, %v2781_v40  ;;  %v2808_v63 = vcvt.f32.s32 %v2807_v5  ;;  %2851 = vmin.xlane.f32.xlu1 %v2850_v58  ;;  %v2855_v56 = vshll.u32 %v2854_v20, 16 }
 0x87f   :  { %v2896_v55 = vpop.permute.xlu1 %2895 }
 0x880   :  { %v2811_v41 = vadd.s32 %v2810_v44, %v2808_v63  ;;  %2916 = vst.msk [vmem:[%s4581_s10 + $0x18] sm:$0xff] %vm2872_vm3, %v2896_v55 }
 0x881   :  { %v2837_v57 = vpop.xlane.xlu0 %2836 }
 0x882   :  { %2876 = vst.msk [vmem:[%s4580_s9 + $0x18] sm:$0xff] %vm2872_vm3, %v2811_v41  ;;  %v2838_v36 = vcvt.f32.s32 %v2837_v57 }
 0x883   :  { %v2900_v2 = vpop.permute.xlu1 %2899 }
 0x884   :  { %v2841_v35 = vadd.s32 %v2840_v4, %v2838_v36  ;;  %2918 = vst.msk [vmem:[%s4581_s10 + $0x28] sm:$0xff] %vm2872_vm3, %v2900_v2 }
 0x885   :  { %v2863_v21 = vpop.xlane.xlu0 %2862 }
 0x886   :  { %2878 = vst.msk [vmem:[%s4580_s9 + $0x28] sm:$0xff] %vm2872_vm3, %v2841_v35  ;;  %vm2864_vm13 = vcmp.eq.f32.partialorder %v2861_v23, %v2863_v21 }
 0x887   :  { %v2865_v37 = vsel %vm2864_vm13, %v2860_v60, inf }
 0x888   :  { %2866 = vmin.xlane.f32.xlu0 %v2865_v37 }
 0x889   :  { %v2892_v17 = vpop.permute.xlu0 %2891 }
 0x88a   :  { %2914 = vst.msk [vmem:[%s4581_s10 + $0x8] sm:$0xff] %vm2872_vm3, %v2892_v17 }
 0x88d   :  { %v2898_v12 = vpop.permute.xlu0 %2897 }
 0x88e   :  { %2917 = vst.msk [vmem:[%s4581_s10 + $0x20] sm:$0xff] %vm2872_vm3, %v2898_v12 }
 0x88f   :  { %2903 = vrot.lane.b32.xlu1 %v4480_v0, %s3201_s14  ;;  %v2869_v0 = vcvt.f32.s32 %v2863_v21 }
 0x891   :  { %v2902_v48 = vpop.permute.xlu0 %2901  ;;  %v2870_v53 = vshll.u32 %v2869_v0, 16 }
 0x892   :  { %2919 = vst.msk [vmem:[%s4581_s10 + $0x30] sm:$0xff] %vm2872_vm3, %v2902_v48 }
 0x89e   :  { %2921 = vrot.lane.b32.xlu0 %v4331_v33, %s3202_s30 }
 0x90b   :  { %v2852_v38 = vpop.xlane.xlu1 %2851 }
 0x90c   :  { %v2853_v15 = vcvt.f32.s32 %v2852_v38 }
 0x90e   :  { %v2856_v10 = vadd.s32 %v2855_v56, %v2853_v15 }
 0x90f   :  { %v2904_v59 = vpop.permute.xlu1 %2903 }
 0x910   :  { %2879 = vst.msk [vmem:[%s4580_s9 + $0x30] sm:$0xff] %vm2872_vm3, %v2856_v10  ;;  %2920 = vst.msk [vmem:[%s4581_s10 + $0x38] sm:$0xff] %vm2872_vm3, %v2904_v59 }
 0x915   :  { %v2867_v29 = vpop.xlane.xlu0 %2866 }
 0x916   :  { %v2868_v33 = vcvt.f32.s32 %v2867_v29 }
 0x918   :  { %v2871_v25 = vadd.s32 %v2870_v53, %v2868_v33 }
 0x919   :  { %v2922_v7 = vpop.permute.xlu0 %2921 }
 0x91a   :  { %2880 = vst.msk [vmem:[%s4580_s9 + $0x38] sm:$0xff] %vm2872_vm3, %v2871_v25  ;;  %2924 = vst.msk [vmem:[%s4582_s11] sm:$0xff] %vm2872_vm3, %v2922_v7 }
 0x91b   :  { %2937 = vsyncpa [#allocation3], 1 }

</bundles_post_ra>
